<compile_context>
chip_gen: v7x
topology: tpu7x:2x2x1
jax: 0.10.0
libtpu: 0.0.40
codegen_flags: <defaults>
</compile_context>

<pallas_src>
import functools
import math

import jax
import jax.numpy as jnp
from jax.experimental import pallas as pl
from jax.experimental.pallas import tpu as pltpu


# ----------------------------------------------------------------------------
# helpers
# ----------------------------------------------------------------------------

def _round_up(x, m):
    return (x + m - 1) // m * m


def _pick_tile_m(m):
    """Whole-M single block when it fits VMEM comfortably, else a divisor."""
    if m <= 512:
        return m
    for c in (512, 256, 128, 64, 32, 16, 8):
        if m % c == 0:
            return c
    return 8


def _pick_tile_n(n):
    """Lane-aligned N tile; prefer >= 4 grid steps for megacore/pipelining."""
    for c in (256, 512, 128):
        if n % c == 0 and n // c >= 4:
            return c
    for c in (512, 256, 128):
        if n % c == 0:
            return c
    return 128


def _pick_tile_k(k, single_step):
    if single_step or k <= 2048:
        return k
    for c in (2048, 1024, 512, 256, 128):
        if k % c == 0:
            return c
    return 128


def _gelu_tanh(x):
    c = 0.7978845608028654  # sqrt(2/pi)
    return 0.5 * x * (1.0 + jnp.tanh(c * (x + 0.044715 * x * x * x)))


# ----------------------------------------------------------------------------
# Pallas kernels
# ----------------------------------------------------------------------------

def _make_mm_kernel(*, act, fuse_ln, has_residual, ln_eps):
    """Tiled bf16 matmul, f32 accumulation, optional fused LayerNorm prologue
    and fused (+bias)[+GELU][+residual] epilogue."""

    def kernel(*refs):
        it = iter(refs)
        a_ref = next(it)
        w_ref = next(it)
        bias_ref = next(it)
        g_ref = next(it) if fuse_ln else None
        be_ref = next(it) if fuse_ln else None
        r_ref = next(it) if has_residual else None
        o_ref = next(it)
        acc_ref = next(it)

        k = pl.program_id(2)

        a = a_ref[...]
        if fuse_ln:
            # full K lives in this tile (wrapper guarantees single k-step)
            x = a.astype(jnp.float32)
            mu = jnp.mean(x, axis=-1, keepdims=True)
            xc = x - mu
            var = jnp.mean(xc * xc, axis=-1, keepdims=True)
            inv = jax.lax.rsqrt(var + ln_eps)
            a = (xc * inv * g_ref[...] + be_ref[...]).astype(jnp.bfloat16)

        @pl.when(k == 0)
        def _():
            acc_ref[...] = jnp.zeros_like(acc_ref)

        acc_ref[...] += jnp.dot(a, w_ref[...],
                                preferred_element_type=jnp.float32)

        @pl.when(k == pl.num_programs(2) - 1)
        def _():
            y = acc_ref[...] + bias_ref[...]
            if act == "gelu":
                y = _gelu_tanh(y)
            if has_residual:
                y = y + r_ref[...].astype(jnp.float32)
            o_ref[...] = y.astype(o_ref.dtype)

    return kernel


def _ln_kernel(x_ref, g_ref, b_ref, o_ref, *, eps):
    x = x_ref[...].astype(jnp.float32)
    mu = jnp.mean(x, axis=-1, keepdims=True)
    xc = x - mu
    var = jnp.mean(xc * xc, axis=-1, keepdims=True)
    inv = jax.lax.rsqrt(var + eps)
    o_ref[...] = (xc * inv * g_ref[...] + b_ref[...]).astype(o_ref.dtype)


def _attn_kernel(q_ref, k_ref, v_ref, o_ref, *, heads, dh, s_valid, scale):
    """Full softmax attention for a (batch, head-group) tile.

    q/k/v refs are (S_pad, heads*dh) slices taken directly out of the
    (B*S_pad, 3*D) qkv matmul output; padded key tokens (>= s_valid) are
    masked. The output is written in (B*S_pad, D) layout."""
    s_pad = q_ref.shape[0]
    col = jax.lax.broadcasted_iota(jnp.int32, (1, s_pad), 1)
    key_mask = jnp.where(col < s_valid, 0.0, -1e30).astype(jnp.float32)
    for h in range(heads):
        lo = h * dh
        qh = q_ref[:, lo:lo + dh]                       # (S, dh) bf16
        kh = k_ref[:, lo:lo + dh]
        vh = v_ref[:, lo:lo + dh]
        s = jax.lax.dot_general(qh, kh, (((1,), (1,)), ((), ())),
                                preferred_element_type=jnp.float32) * scale
        s = s + key_mask
        m = jnp.max(s, axis=-1, keepdims=True)
        p = jnp.exp(s - m)
        l = jnp.sum(p, axis=-1, keepdims=True)
        o = jnp.dot(p.astype(vh.dtype), vh, preferred_element_type=jnp.float32)
        o_ref[:, lo:lo + dh] = (o / l).astype(o_ref.dtype)


# ----------------------------------------------------------------------------
# Pallas wrappers
# ----------------------------------------------------------------------------

def matmul_bias_act(a, w, bias, *, residual=None, act="none",
                    ln_gamma=None, ln_beta=None, ln_eps=1e-6,
                    out_dtype=jnp.bfloat16):
    """out = act(LN?(a) @ w + bias) [+ residual], Pallas tiled bf16 matmul."""
    M, K = a.shape
    Kw, N = w.shape
    assert K == Kw
    fuse_ln = ln_gamma is not None

    # All M/K/N dims in this model are 8/128-aligned already, so these pads
    # (and the final slice) are no-ops in practice.
    Mp = _round_up(M, 8)
    Kp = _round_up(K, 128)
    Np = _round_up(N, 128)

    TM = _pick_tile_m(Mp)
    TK = _pick_tile_k(Kp, single_step=fuse_ln)
    TN = _pick_tile_n(Np)
    nk = Kp // TK
    if fuse_ln:
        assert nk == 1 and Kp == K, "LN fusion needs the full K in one tile"

    def pad2(x, r, c):
        if x.shape == (r, c):
            return x
        return jnp.pad(x, ((0, r - x.shape[0]), (0, c - x.shape[1])))

    a_p = pad2(a.astype(jnp.bfloat16), Mp, Kp)
    w_p = pad2(w.astype(jnp.bfloat16), Kp, Np)
    b_p = pad2(bias.astype(jnp.float32).reshape(1, N), 1, Np)

    in_specs = [
        pl.BlockSpec((TM, TK), lambda i, j, k: (i, k)),
        pl.BlockSpec((TK, TN), lambda i, j, k: (k, j)),
        pl.BlockSpec((1, TN), lambda i, j, k: (0, j)),
    ]
    operands = [a_p, w_p, b_p]
    if fuse_ln:
        g_p = ln_gamma.astype(jnp.float32).reshape(1, K)
        be_p = ln_beta.astype(jnp.float32).reshape(1, K)
        in_specs += [pl.BlockSpec((1, TK), lambda i, j, k: (0, k)),
                     pl.BlockSpec((1, TK), lambda i, j, k: (0, k))]
        operands += [g_p, be_p]
    if residual is not None:
        r_p = pad2(residual.astype(jnp.bfloat16), Mp, Np)
        in_specs += [pl.BlockSpec((TM, TN), lambda i, j, k: (i, j))]
        operands += [r_p]

    out_bytes = jnp.dtype(out_dtype).itemsize
    bytes_accessed = int(
        Mp * Kp * 2 * (1 if nk == 1 else Np // TN)        # A (re-)reads
        + Kp * Np * 2 * (Mp // TM)                         # W (re-)reads
        + Mp * Np * (out_bytes + (2 if residual is not None else 0)))
    cost = pl.CostEstimate(
        flops=2 * Mp * Np * Kp,
        transcendentals=Mp * Np if act == "gelu" else 0,
        bytes_accessed=bytes_accessed)

    kernel = _make_mm_kernel(act=act, fuse_ln=fuse_ln,
                             has_residual=residual is not None, ln_eps=ln_eps)

    out = pl.pallas_call(
        kernel,
        out_shape=jax.ShapeDtypeStruct((Mp, Np), out_dtype),
        grid_spec=pltpu.PrefetchScalarGridSpec(
            num_scalar_prefetch=0,
            grid=(Mp // TM, Np // TN, nk),
            in_specs=in_specs,
            out_specs=pl.BlockSpec((TM, TN), lambda i, j, k: (i, j)),
            scratch_shapes=[pltpu.VMEM((TM, TN), jnp.float32)]),
        compiler_params=pltpu.CompilerParams(
            dimension_semantics=("parallel", "parallel", "arbitrary")),
        cost_estimate=cost,
    )(*operands)

    if Mp != M or Np != N:
        out = out[:M, :N]
    return out


def layernorm(x, gamma, beta, eps=1e-6, out_dtype=jnp.bfloat16):
    """Standalone row-wise LayerNorm (used only for the final norm)."""
    M, D = x.shape
    TM = _pick_tile_m(_round_up(M, 8))
    Mp = _round_up(_round_up(M, 8), TM)
    x_p = x if Mp == M else jnp.pad(x, ((0, Mp - M), (0, 0)))
    g = gamma.astype(jnp.float32).reshape(1, D)
    b = beta.astype(jnp.float32).reshape(1, D)
    out = pl.pallas_call(
        functools.partial(_ln_kernel, eps=eps),
        out_shape=jax.ShapeDtypeStruct((Mp, D), out_dtype),
        grid_spec=pltpu.PrefetchScalarGridSpec(
            num_scalar_prefetch=0, grid=(Mp // TM,),
            in_specs=[pl.BlockSpec((TM, D), lambda i: (i, 0)),
                      pl.BlockSpec((1, D), lambda i: (0, 0)),
                      pl.BlockSpec((1, D), lambda i: (0, 0))],
            out_specs=pl.BlockSpec((TM, D), lambda i: (i, 0))),
        compiler_params=pltpu.CompilerParams(dimension_semantics=("parallel",)),
    )(x_p, g, b)
    return out[:M] if Mp != M else out


def attention(qkv, *, batch, s_pad, s_valid, dim, num_heads):
    """qkv: (B*S_pad, 3*dim) bf16 (q|k|v column sections) -> (B*S_pad, dim)."""
    dh = dim // num_heads
    scale = 1.0 / math.sqrt(dh)

    # Smallest head group whose lane width is a multiple of 128 -> lane-dense
    # loads/stores and several parallel grid steps.
    hg = num_heads
    for cand in range(1, num_heads + 1):
        if num_heads % cand == 0 and (cand * dh) % 128 == 0:
            hg = cand
            break
    ng = num_heads // hg
    wcols = hg * dh

    q_spec = pl.BlockSpec((s_pad, wcols), lambda b, g: (b, g))
    k_spec = pl.BlockSpec((s_pad, wcols), lambda b, g: (b, ng + g))
    v_spec = pl.BlockSpec((s_pad, wcols), lambda b, g: (b, 2 * ng + g))
    o_spec = pl.BlockSpec((s_pad, wcols), lambda b, g: (b, g))

    return pl.pallas_call(
        functools.partial(_attn_kernel, heads=hg, dh=dh,
                          s_valid=s_valid, scale=scale),
        out_shape=jax.ShapeDtypeStruct((batch * s_pad, dim), jnp.bfloat16),
        grid_spec=pltpu.PrefetchScalarGridSpec(
            num_scalar_prefetch=0, grid=(batch, ng),
            in_specs=[q_spec, k_spec, v_spec],
            out_specs=o_spec),
        compiler_params=pltpu.CompilerParams(
            dimension_semantics=("parallel", "parallel")),
    )(qkv, qkv, qkv)


# ----------------------------------------------------------------------------
# ViT parameters (deterministic synthetic init)
# ----------------------------------------------------------------------------

def init_vit_params(key, cfg):
    D = cfg["embed_dim"]
    P = cfg["patch_size"]
    C = cfg["in_chans"]
    depth = cfg["depth"]
    hidden = int(D * cfg["mlp_ratio"])
    n_patches = (cfg["img_size"] // P) ** 2
    S = n_patches + 1

    def dense(k, fan_in, fan_out):
        kw, kb = jax.random.split(k)
        w = (jax.random.normal(kw, (fan_in, fan_out), jnp.float32) * 0.02
             ).astype(jnp.bfloat16)
        b = 0.02 * jax.random.normal(kb, (fan_out,), jnp.float32)
        return w, b

    keys = jax.random.split(key, 4 + depth)
    pw, pb = dense(keys[0], P * P * C, D)
    params = {
        "patch_w": pw, "patch_b": pb,
        "cls_token": 0.02 * jax.random.normal(keys[1], (1, 1, D), jnp.float32),
        "pos_embed": 0.02 * jax.random.normal(keys[2], (1, S, D), jnp.float32),
        "norm_g": jnp.ones((D,), jnp.float32),
        "norm_b": jnp.zeros((D,), jnp.float32),
        "blocks": [],
    }
    for i in range(depth):
        bkeys = jax.random.split(keys[4 + i], 4)
        qkv_w, qkv_b = dense(bkeys[0], D, 3 * D)
        proj_w, proj_b = dense(bkeys[1], D, D)
        fc1_w, fc1_b = dense(bkeys[2], D, hidden)
        fc2_w, fc2_b = dense(bkeys[3], hidden, D)
        params["blocks"].append({
            "ln1_g": jnp.ones((D,), jnp.float32),
            "ln1_b": jnp.zeros((D,), jnp.float32),
            "qkv_w": qkv_w, "qkv_b": qkv_b,
            "proj_w": proj_w, "proj_b": proj_b,
            "ln2_g": jnp.ones((D,), jnp.float32),
            "ln2_b": jnp.zeros((D,), jnp.float32),
            "fc1_w": fc1_w, "fc1_b": fc1_b,
            "fc2_w": fc2_w, "fc2_b": fc2_b,
        })
    return params


# ----------------------------------------------------------------------------
# Forward pass
# ----------------------------------------------------------------------------

def _patch_embed(x_nchw, w, b, patch):
    """Conv2d(C, D, kernel=stride=patch) as one reshape + Pallas matmul."""
    B, C, H, W = x_nchw.shape
    gh, gw = H // patch, W // patch
    x = x_nchw.astype(jnp.bfloat16)              # halve the reshuffle bandwidth
    x = jnp.transpose(x, (0, 2, 3, 1))           # NHWC
    x = x.reshape(B, gh, patch, gw, patch, C)
    x = jnp.transpose(x, (0, 1, 3, 2, 4, 5))     # B, gh, gw, ph, pw, C
    patches = x.reshape(B * gh * gw, patch * patch * C)
    y = matmul_bias_act(patches, w, b)           # (B*N, D) bf16
    return y.reshape(B, gh * gw, -1)


def _vit_block(x2d, blk, *, batch, s_pad, s_valid, dim, num_heads):
    # --- multi-head self-attention (pre-LN); LN1 fused into the qkv matmul ---
    qkv = matmul_bias_act(x2d, blk["qkv_w"], blk["qkv_b"],
                          ln_gamma=blk["ln1_g"], ln_beta=blk["ln1_b"])
    o = attention(qkv, batch=batch, s_pad=s_pad, s_valid=s_valid,
                  dim=dim, num_heads=num_heads)
    x2d = matmul_bias_act(o, blk["proj_w"], blk["proj_b"], residual=x2d)
    # --- MLP (pre-LN); LN2 + GELU fused into fc1, residual fused into fc2 ---
    h = matmul_bias_act(x2d, blk["fc1_w"], blk["fc1_b"], act="gelu",
                        ln_gamma=blk["ln2_g"], ln_beta=blk["ln2_b"])
    x2d = matmul_bias_act(h, blk["fc2_w"], blk["fc2_b"], residual=x2d)
    return x2d


def vit_forward(params, x_nchw, cfg):
    B = x_nchw.shape[0]
    D = cfg["embed_dim"]
    H = cfg["num_heads"]
    P = cfg["patch_size"]

    tok = _patch_embed(x_nchw, params["patch_w"], params["patch_b"], P)
    cls = jnp.broadcast_to(params["cls_token"].astype(jnp.bfloat16), (B, 1, D))
    x = jnp.concatenate([cls, tok], axis=1)                       # (B, S, D)
    x = x + params["pos_embed"].astype(jnp.bfloat16)
    s_valid = x.shape[1]

    # Pad the sequence once and carry the padded length through every block;
    # padded key tokens are masked inside the attention kernel.
    s_pad = _round_up(s_valid, 8)
    if s_pad != s_valid:
        x = jnp.pad(x, ((0, 0), (0, s_pad - s_valid), (0, 0)))

    x2d = x.reshape(B * s_pad, D)
    for blk in params["blocks"]:
        x2d = _vit_block(x2d, blk, batch=B, s_pad=s_pad, s_valid=s_valid,
                         dim=D, num_heads=H)

    x2d = layernorm(x2d, params["norm_g"], params["norm_b"],
                    out_dtype=jnp.float32)
    x = x2d.reshape(B, s_pad, D)
    return x[:, 0]                 # class token -> (B, D) fixed-size vector


# ----------------------------------------------------------------------------
# Main
# ----------------------------------------------------------------------------

if __name__ == "__main__":
    # Small ViT with the same structure as vit_large_patch32_224 (scaled down
    # so the test runs fast).  Real ViT-L/32: img=224, patch=32, dim=1024,
    # depth=24, heads=16 -> output (B, 1024).
    cfg = dict(img_size=64, patch_size=16, in_chans=3, embed_dim=256,
               depth=4, num_heads=8, mlp_ratio=4.0)

    key = jax.random.PRNGKey(0)
    pkey, xkey = jax.random.split(key)
    params = init_vit_params(pkey, cfg)
    x = jax.random.normal(
        xkey, (2, cfg["in_chans"], cfg["img_size"], cfg["img_size"]),
        jnp.float32)

    fwd = jax.jit(functools.partial(vit_forward, cfg=cfg))
    out = jax.block_until_ready(fwd(params, x))

    assert out.shape == (2, cfg["embed_dim"]), out.shape
    assert bool(jnp.all(jnp.isfinite(out)))
    print("KERNEL_OK")
</pallas_src>

<mosaic_0001>
module attributes {stable_mosaic.version = 11 : i64} {
  func.func @kernel(%arg0: i32, %arg1: i32, %arg2: i32, %arg3: memref<32x768xbf16, #tpu.memory_space<vmem>>, %arg4: memref<768x256xbf16, #tpu.memory_space<vmem>>, %arg5: memref<1x256xf32, #tpu.memory_space<vmem>>, %arg6: memref<32x256xbf16, #tpu.memory_space<vmem>>, %arg7: memref<32x256xf32, #tpu.memory_space<vmem>>) attributes {dimension_semantics = [#tpu.dimension_semantics<parallel>, #tpu.dimension_semantics<parallel>, #tpu.dimension_semantics<arbitrary>], iteration_bounds = array<i64: 1, 1, 1>, scalar_prefetch = 0 : i64, scratch_operands = 1 : i64, tpu.core_type = #tpu.core_type<tc>, window_params = [{transform_indices = @transform_0, window_bounds = array<i64: 32, 768>}, {transform_indices = @transform_1, window_bounds = array<i64: 768, 256>}, {transform_indices = @transform_2, window_bounds = array<i64: 1, 256>}, {transform_indices = @transform_3, window_bounds = array<i64: 32, 256>}]} {
    %c0 = arith.constant 0 : index
    %c0_0 = arith.constant 0 : index
    %0 = vector.load %arg3[%c0, %c0_0] : memref<32x768xbf16, #tpu.memory_space<vmem>>, vector<32x768xbf16>
    %c0_i32 = arith.constant 0 : i32
    %1 = arith.cmpi eq, %arg2, %c0_i32 : i32
    %2 = arith.extui %1 : i1 to i32
    %c0_i32_1 = arith.constant 0 : i32
    %3 = arith.cmpi ne, %2, %c0_i32_1 : i32
    scf.if %3 {
      %cst_10 = arith.constant 0.000000e+00 : f32
      %12 = vector.broadcast %cst_10 : f32 to vector<32x256xf32>
      %c0_11 = arith.constant 0 : index
      %c0_12 = arith.constant 0 : index
      %13 = vector.load %arg7[%c0_11, %c0_12] : memref<32x256xf32, #tpu.memory_space<vmem>>, vector<32x256xf32>
      tpu.vector_store %arg7[%c0_11, %c0_12], %12 {strides = array<i32>} : memref<32x256xf32, #tpu.memory_space<vmem>>, vector<32x256xf32>,
    } else {
    }
    %c0_2 = arith.constant 0 : index
    %c0_3 = arith.constant 0 : index
    %4 = vector.load %arg7[%c0_2, %c0_3] : memref<32x256xf32, #tpu.memory_space<vmem>>, vector<32x256xf32>
    %c0_4 = arith.constant 0 : index
    %c0_5 = arith.constant 0 : index
    %5 = vector.load %arg4[%c0_4, %c0_5] : memref<768x256xbf16, #tpu.memory_space<vmem>>, vector<768x256xbf16>
    %cst = arith.constant dense<0.000000e+00> : vector<32x256xf32>
    %6 = tpu.matmul %0, %5, %cst {dimension_numbers = #tpu.dot_dimension_numbers<[1], [0], [0], [1], [0, 0, 1, 1], [], []>} : vector<32x768xbf16>, vector<768x256xbf16>, vector<32x256xf32> -> vector<32x256xf32>
    %7 = arith.addf %4, %6 : vector<32x256xf32>
    %c0_6 = arith.constant 0 : index
    %c0_7 = arith.constant 0 : index
    %8 = vector.load %arg7[%c0_6, %c0_7] : memref<32x256xf32, #tpu.memory_space<vmem>>, vector<32x256xf32>
    tpu.vector_store %arg7[%c0_6, %c0_7], %7 {strides = array<i32>} : memref<32x256xf32, #tpu.memory_space<vmem>>, vector<32x256xf32>,
    %c0_i32_8 = arith.constant 0 : i32
    %9 = arith.cmpi eq, %arg2, %c0_i32_8 : i32
    %10 = arith.extui %9 : i1 to i32
    %c0_i32_9 = arith.constant 0 : i32
    %11 = arith.cmpi ne, %10, %c0_i32_9 : i32
    scf.if %11 {
      %c0_10 = arith.constant 0 : index
      %c0_11 = arith.constant 0 : index
      %12 = vector.load %arg7[%c0_10, %c0_11] : memref<32x256xf32, #tpu.memory_space<vmem>>, vector<32x256xf32>
      %c0_12 = arith.constant 0 : index
      %c0_13 = arith.constant 0 : index
      %13 = vector.load %arg5[%c0_12, %c0_13] : memref<1x256xf32, #tpu.memory_space<vmem>>, vector<1x256xf32>
      %14 = vector.broadcast %13 : vector<1x256xf32> to vector<32x256xf32>
      %15 = arith.addf %12, %14 : vector<32x256xf32>
      %16 = arith.truncf %15 : vector<32x256xf32> to vector<32x256xbf16>
      %c0_14 = arith.constant 0 : index
      %c0_15 = arith.constant 0 : index
      %17 = vector.load %arg6[%c0_14, %c0_15] : memref<32x256xbf16, #tpu.memory_space<vmem>>, vector<32x256xbf16>
      tpu.vector_store %arg6[%c0_14, %c0_15], %16 {strides = array<i32>} : memref<32x256xbf16, #tpu.memory_space<vmem>>, vector<32x256xbf16>,
    } else {
    }
    return
  }
  func.func @transform_0(%arg0: i32, %arg1: i32, %arg2: i32) -> (i32, i32) {
    %c0_i32 = arith.constant 0 : i32
    return %arg0, %arg2 : i32, i32
  }
  func.func @transform_1(%arg0: i32, %arg1: i32, %arg2: i32) -> (i32, i32) {
    %c0_i32 = arith.constant 0 : i32
    return %arg2, %arg1 : i32, i32
  }
  func.func @transform_2(%arg0: i32, %arg1: i32, %arg2: i32) -> (i32, i32) {
    %c0_i32 = arith.constant 0 : i32
    %c0_i32_0 = arith.constant 0 : i32
    return %c0_i32, %arg1 : i32, i32
  }
  func.func @transform_3(%arg0: i32, %arg1: i32, %arg2: i32) -> (i32, i32) {
    %c0_i32 = arith.constant 0 : i32
    return %arg0, %arg1 : i32, i32
  }
}

module attributes {stable_mosaic.version = 11 : i64} {
  func.func @kernel(%arg0: i32, %arg1: i32, %arg2: i32, %arg3: memref<48x256xbf16, #tpu.memory_space<vmem>>, %arg4: memref<256x128xbf16, #tpu.memory_space<vmem>>, %arg5: memref<1x128xf32, #tpu.memory_space<vmem>>, %arg6: memref<1x256xf32, #tpu.memory_space<vmem>>, %arg7: memref<1x256xf32, #tpu.memory_space<vmem>>, %arg8: memref<48x128xbf16, #tpu.memory_space<vmem>>, %arg9: memref<48x128xf32, #tpu.memory_space<vmem>>) attributes {dimension_semantics = [#tpu.dimension_semantics<parallel>, #tpu.dimension_semantics<parallel>, #tpu.dimension_semantics<arbitrary>], iteration_bounds = array<i64: 1, 6, 1>, scalar_prefetch = 0 : i64, scratch_operands = 1 : i64, tpu.core_type = #tpu.core_type<tc>, window_params = [{transform_indices = @transform_0, window_bounds = array<i64: 48, 256>}, {transform_indices = @transform_1, window_bounds = array<i64: 256, 128>}, {transform_indices = @transform_2, window_bounds = array<i64: 1, 128>}, {transform_indices = @transform_3, window_bounds = array<i64: 1, 256>}, {transform_indices = @transform_4, window_bounds = array<i64: 1, 256>}, {transform_indices = @transform_5, window_bounds = array<i64: 48, 128>}]} {
    %c0 = arith.constant 0 : index
    %c0_0 = arith.constant 0 : index
    %0 = vector.load %arg3[%c0, %c0_0] : memref<48x256xbf16, #tpu.memory_space<vmem>>, vector<48x256xbf16>
    %1 = arith.extf %0 : vector<48x256xbf16> to vector<48x256xf32>
    %cst = arith.constant dense<0.000000e+00> : vector<48xf32>
    %2 = vector.multi_reduction <add>, %1, %cst [1] : vector<48x256xf32> to vector<48xf32>
    %3 = vector.shape_cast %2 : vector<48xf32> to vector<48x1xf32>
    %cst_1 = arith.constant 2.560000e+02 : f32
    %4 = vector.broadcast %cst_1 : f32 to vector<48x1xf32>
    %5 = arith.divf %3, %4 : vector<48x1xf32>
    %6 = vector.broadcast %5 : vector<48x1xf32> to vector<48x256xf32>
    %7 = arith.subf %1, %6 : vector<48x256xf32>
    %8 = arith.mulf %7, %7 : vector<48x256xf32>
    %cst_2 = arith.constant dense<0.000000e+00> : vector<48xf32>
    %9 = vector.multi_reduction <add>, %8, %cst_2 [1] : vector<48x256xf32> to vector<48xf32>
    %10 = vector.shape_cast %9 : vector<48xf32> to vector<48x1xf32>
    %cst_3 = arith.constant 2.560000e+02 : f32
    %11 = vector.broadcast %cst_3 : f32 to vector<48x1xf32>
    %12 = arith.divf %10, %11 : vector<48x1xf32>
    %cst_4 = arith.constant 9.99999997E-7 : f32
    %13 = vector.broadcast %cst_4 : f32 to vector<48x1xf32>
    %14 = arith.addf %12, %13 : vector<48x1xf32>
    %15 = math.rsqrt %14 : vector<48x1xf32>
    %16 = vector.broadcast %15 : vector<48x1xf32> to vector<48x256xf32>
    %17 = arith.mulf %7, %16 : vector<48x256xf32>
    %c0_5 = arith.constant 0 : index
    %c0_6 = arith.constant 0 : index
    %18 = vector.load %arg6[%c0_5, %c0_6] : memref<1x256xf32, #tpu.memory_space<vmem>>, vector<1x256xf32>
    %19 = vector.broadcast %18 : vector<1x256xf32> to vector<48x256xf32>
    %20 = arith.mulf %17, %19 : vector<48x256xf32>
    %c0_7 = arith.constant 0 : index
    %c0_8 = arith.constant 0 : index
    %21 = vector.load %arg7[%c0_7, %c0_8] : memref<1x256xf32, #tpu.memory_space<vmem>>, vector<1x256xf32>
    %22 = vector.broadcast %21 : vector<1x256xf32> to vector<48x256xf32>
    %23 = arith.addf %20, %22 : vector<48x256xf32>
    %24 = arith.truncf %23 : vector<48x256xf32> to vector<48x256xbf16>
    %c0_i32 = arith.constant 0 : i32
    %25 = arith.cmpi eq, %arg2, %c0_i32 : i32
    %26 = arith.extui %25 : i1 to i32
    %c0_i32_9 = arith.constant 0 : i32
    %27 = arith.cmpi ne, %26, %c0_i32_9 : i32
    scf.if %27 {
      %cst_19 = arith.constant 0.000000e+00 : f32
      %36 = vector.broadcast %cst_19 : f32 to vector<48x128xf32>
      %c0_20 = arith.constant 0 : index
      %c0_21 = arith.constant 0 : index
      %37 = vector.load %arg9[%c0_20, %c0_21] : memref<48x128xf32, #tpu.memory_space<vmem>>, vector<48x128xf32>
      tpu.vector_store %arg9[%c0_20, %c0_21], %36 {strides = array<i32>} : memref<48x128xf32, #tpu.memory_space<vmem>>, vector<48x128xf32>,
    } else {
    }
    %c0_10 = arith.constant 0 : index
    %c0_11 = arith.constant 0 : index
    %28 = vector.load %arg9[%c0_10, %c0_11] : memref<48x128xf32, #tpu.memory_space<vmem>>, vector<48x128xf32>
    %c0_12 = arith.constant 0 : index
    %c0_13 = arith.constant 0 : index
    %29 = vector.load %arg4[%c0_12, %c0_13] : memref<256x128xbf16, #tpu.memory_space<vmem>>, vector<256x128xbf16>
    %cst_14 = arith.constant dense<0.000000e+00> : vector<48x128xf32>
    %30 = tpu.matmul %24, %29, %cst_14 {dimension_numbers = #tpu.dot_dimension_numbers<[1], [0], [0], [1], [0, 0, 1, 1], [], []>} : vector<48x256xbf16>, vector<256x128xbf16>, vector<48x128xf32> -> vector<48x128xf32>
    %31 = arith.addf %28, %30 : vector<48x128xf32>
    %c0_15 = arith.constant 0 : index
    %c0_16 = arith.constant 0 : index
    %32 = vector.load %arg9[%c0_15, %c0_16] : memref<48x128xf32, #tpu.memory_space<vmem>>, vector<48x128xf32>
    tpu.vector_store %arg9[%c0_15, %c0_16], %31 {strides = array<i32>} : memref<48x128xf32, #tpu.memory_space<vmem>>, vector<48x128xf32>,
    %c0_i32_17 = arith.constant 0 : i32
    %33 = arith.cmpi eq, %arg2, %c0_i32_17 : i32
    %34 = arith.extui %33 : i1 to i32
    %c0_i32_18 = arith.constant 0 : i32
    %35 = arith.cmpi ne, %34, %c0_i32_18 : i32
    scf.if %35 {
      %c0_19 = arith.constant 0 : index
      %c0_20 = arith.constant 0 : index
      %36 = vector.load %arg9[%c0_19, %c0_20] : memref<48x128xf32, #tpu.memory_space<vmem>>, vector<48x128xf32>
      %c0_21 = arith.constant 0 : index
      %c0_22 = arith.constant 0 : index
      %37 = vector.load %arg5[%c0_21, %c0_22] : memref<1x128xf32, #tpu.memory_space<vmem>>, vector<1x128xf32>
      %38 = vector.broadcast %37 : vector<1x128xf32> to vector<48x128xf32>
      %39 = arith.addf %36, %38 : vector<48x128xf32>
      %40 = arith.truncf %39 : vector<48x128xf32> to vector<48x128xbf16>
      %c0_23 = arith.constant 0 : index
      %c0_24 = arith.constant 0 : index
      %41 = vector.load %arg8[%c0_23, %c0_24] : memref<48x128xbf16, #tpu.memory_space<vmem>>, vector<48x128xbf16>
      tpu.vector_store %arg8[%c0_23, %c0_24], %40 {strides = array<i32>} : memref<48x128xbf16, #tpu.memory_space<vmem>>, vector<48x128xbf16>,
    } else {
    }
    return
  }
  func.func @transform_0(%arg0: i32, %arg1: i32, %arg2: i32) -> (i32, i32) {
    %c0_i32 = arith.constant 0 : i32
    return %arg0, %arg2 : i32, i32
  }
  func.func @transform_1(%arg0: i32, %arg1: i32, %arg2: i32) -> (i32, i32) {
    %c0_i32 = arith.constant 0 : i32
    return %arg2, %arg1 : i32, i32
  }
  func.func @transform_2(%arg0: i32, %arg1: i32, %arg2: i32) -> (i32, i32) {
    %c0_i32 = arith.constant 0 : i32
    %c0_i32_0 = arith.constant 0 : i32
    return %c0_i32, %arg1 : i32, i32
  }
  func.func @transform_3(%arg0: i32, %arg1: i32, %arg2: i32) -> (i32, i32) {
    %c0_i32 = arith.constant 0 : i32
    %c0_i32_0 = arith.constant 0 : i32
    return %c0_i32, %arg2 : i32, i32
  }
  func.func @transform_4(%arg0: i32, %arg1: i32, %arg2: i32) -> (i32, i32) {
    %c0_i32 = arith.constant 0 : i32
    %c0_i32_0 = arith.constant 0 : i32
    return %c0_i32, %arg2 : i32, i32
  }
  func.func @transform_5(%arg0: i32, %arg1: i32, %arg2: i32) -> (i32, i32) {
    %c0_i32 = arith.constant 0 : i32
    return %arg0, %arg1 : i32, i32
  }
}

module attributes {stable_mosaic.version = 11 : i64} {
  func.func @_attn_kernel(%arg0: i32, %arg1: i32, %arg2: memref<24x128xbf16, #tpu.memory_space<vmem>>, %arg3: memref<24x128xbf16, #tpu.memory_space<vmem>>, %arg4: memref<24x128xbf16, #tpu.memory_space<vmem>>, %arg5: memref<24x128xbf16, #tpu.memory_space<vmem>>) attributes {dimension_semantics = [#tpu.dimension_semantics<parallel>, #tpu.dimension_semantics<parallel>], iteration_bounds = array<i64: 2, 2>, scalar_prefetch = 0 : i64, scratch_operands = 0 : i64, tpu.core_type = #tpu.core_type<tc>, window_params = [{transform_indices = @transform_0, window_bounds = array<i64: 24, 128>}, {transform_indices = @transform_1, window_bounds = array<i64: 24, 128>}, {transform_indices = @transform_2, window_bounds = array<i64: 24, 128>}, {transform_indices = @transform_3, window_bounds = array<i64: 24, 128>}]} {
    %0 = tpu.iota {dimensions = array<i32: 1>} : vector<1x24xi32>
    %c17_i32 = arith.constant 17 : i32
    %1 = vector.broadcast %c17_i32 : i32 to vector<1x24xi32>
    %2 = arith.cmpi slt, %0, %1 : vector<1x24xi32>
    %cst = arith.constant 0.000000e+00 : f32
    %cst_0 = arith.constant -1.000000e+30 : f32
    %3 = vector.broadcast %cst : f32 to vector<1x24xf32>
    %4 = vector.broadcast %cst_0 : f32 to vector<1x24xf32>
    %5 = arith.select %2, %3, %4 : vector<1x24xi1>, vector<1x24xf32>
    %c0 = arith.constant 0 : index
    %c0_1 = arith.constant 0 : index
    %6 = vector.load %arg2[%c0, %c0_1] : memref<24x128xbf16, #tpu.memory_space<vmem>>, vector<24x32xbf16>
    %c0_2 = arith.constant 0 : index
    %c0_3 = arith.constant 0 : index
    %7 = vector.load %arg3[%c0_2, %c0_3] : memref<24x128xbf16, #tpu.memory_space<vmem>>, vector<24x32xbf16>
    %c0_4 = arith.constant 0 : index
    %c0_5 = arith.constant 0 : index
    %8 = vector.load %arg4[%c0_4, %c0_5] : memref<24x128xbf16, #tpu.memory_space<vmem>>, vector<24x32xbf16>
    %cst_6 = arith.constant dense<0.000000e+00> : vector<24x24xf32>
    %9 = tpu.matmul %6, %7, %cst_6 {dimension_numbers = #tpu.dot_dimension_numbers<[1], [1], [0], [0], [0, 0, 1, 0], [], []>} : vector<24x32xbf16>, vector<24x32xbf16>, vector<24x24xf32> -> vector<24x24xf32>
    %cst_7 = arith.constant 0.176776692 : f32
    %10 = vector.broadcast %cst_7 : f32 to vector<24x24xf32>
    %11 = arith.mulf %9, %10 : vector<24x24xf32>
    %12 = vector.broadcast %5 : vector<1x24xf32> to vector<24x24xf32>
    %13 = arith.addf %11, %12 : vector<24x24xf32>
    %cst_8 = arith.constant dense<0xFF800000> : vector<24xf32>
    %14 = vector.multi_reduction <maximumf>, %13, %cst_8 [1] : vector<24x24xf32> to vector<24xf32>
    %15 = vector.shape_cast %14 : vector<24xf32> to vector<24x1xf32>
    %16 = vector.broadcast %15 : vector<24x1xf32> to vector<24x24xf32>
    %17 = arith.subf %13, %16 : vector<24x24xf32>
    %18 = math.exp %17 : vector<24x24xf32>
    %cst_9 = arith.constant dense<0.000000e+00> : vector<24xf32>
    %19 = vector.multi_reduction <add>, %18, %cst_9 [1] : vector<24x24xf32> to vector<24xf32>
    %20 = vector.shape_cast %19 : vector<24xf32> to vector<24x1xf32>
    %21 = arith.truncf %18 : vector<24x24xf32> to vector<24x24xbf16>
    %cst_10 = arith.constant dense<0.000000e+00> : vector<24x32xf32>
    %22 = tpu.matmul %21, %8, %cst_10 {dimension_numbers = #tpu.dot_dimension_numbers<[1], [0], [0], [1], [0, 0, 1, 1], [], []>} : vector<24x24xbf16>, vector<24x32xbf16>, vector<24x32xf32> -> vector<24x32xf32>
    %23 = vector.broadcast %20 : vector<24x1xf32> to vector<24x32xf32>
    %24 = arith.divf %22, %23 : vector<24x32xf32>
    %25 = arith.truncf %24 : vector<24x32xf32> to vector<24x32xbf16>
    %c0_11 = arith.constant 0 : index
    %c0_12 = arith.constant 0 : index
    %26 = vector.load %arg5[%c0_11, %c0_12] : memref<24x128xbf16, #tpu.memory_space<vmem>>, vector<24x32xbf16>
    tpu.vector_store %arg5[%c0_11, %c0_12], %25 {strides = array<i32>} : memref<24x128xbf16, #tpu.memory_space<vmem>>, vector<24x32xbf16>,
    %c0_13 = arith.constant 0 : index
    %c32 = arith.constant 32 : index
    %27 = vector.load %arg2[%c0_13, %c32] : memref<24x128xbf16, #tpu.memory_space<vmem>>, vector<24x32xbf16>
    %c0_14 = arith.constant 0 : index
    %c32_15 = arith.constant 32 : index
    %28 = vector.load %arg3[%c0_14, %c32_15] : memref<24x128xbf16, #tpu.memory_space<vmem>>, vector<24x32xbf16>
    %c0_16 = arith.constant 0 : index
    %c32_17 = arith.constant 32 : index
    %29 = vector.load %arg4[%c0_16, %c32_17] : memref<24x128xbf16, #tpu.memory_space<vmem>>, vector<24x32xbf16>
    %cst_18 = arith.constant dense<0.000000e+00> : vector<24x24xf32>
    %30 = tpu.matmul %27, %28, %cst_18 {dimension_numbers = #tpu.dot_dimension_numbers<[1], [1], [0], [0], [0, 0, 1, 0], [], []>} : vector<24x32xbf16>, vector<24x32xbf16>, vector<24x24xf32> -> vector<24x24xf32>
    %cst_19 = arith.constant 0.176776692 : f32
    %31 = vector.broadcast %cst_19 : f32 to vector<24x24xf32>
    %32 = arith.mulf %30, %31 : vector<24x24xf32>
    %33 = vector.broadcast %5 : vector<1x24xf32> to vector<24x24xf32>
    %34 = arith.addf %32, %33 : vector<24x24xf32>
    %cst_20 = arith.constant dense<0xFF800000> : vector<24xf32>
    %35 = vector.multi_reduction <maximumf>, %34, %cst_20 [1] : vector<24x24xf32> to vector<24xf32>
    %36 = vector.shape_cast %35 : vector<24xf32> to vector<24x1xf32>
    %37 = vector.broadcast %36 : vector<24x1xf32> to vector<24x24xf32>
    %38 = arith.subf %34, %37 : vector<24x24xf32>
    %39 = math.exp %38 : vector<24x24xf32>
    %cst_21 = arith.constant dense<0.000000e+00> : vector<24xf32>
    %40 = vector.multi_reduction <add>, %39, %cst_21 [1] : vector<24x24xf32> to vector<24xf32>
    %41 = vector.shape_cast %40 : vector<24xf32> to vector<24x1xf32>
    %42 = arith.truncf %39 : vector<24x24xf32> to vector<24x24xbf16>
    %cst_22 = arith.constant dense<0.000000e+00> : vector<24x32xf32>
    %43 = tpu.matmul %42, %29, %cst_22 {dimension_numbers = #tpu.dot_dimension_numbers<[1], [0], [0], [1], [0, 0, 1, 1], [], []>} : vector<24x24xbf16>, vector<24x32xbf16>, vector<24x32xf32> -> vector<24x32xf32>
    %44 = vector.broadcast %41 : vector<24x1xf32> to vector<24x32xf32>
    %45 = arith.divf %43, %44 : vector<24x32xf32>
    %46 = arith.truncf %45 : vector<24x32xf32> to vector<24x32xbf16>
    %c0_23 = arith.constant 0 : index
    %c32_24 = arith.constant 32 : index
    %47 = vector.load %arg5[%c0_23, %c32_24] : memref<24x128xbf16, #tpu.memory_space<vmem>>, vector<24x32xbf16>
    tpu.vector_store %arg5[%c0_23, %c32_24], %46 {strides = array<i32>} : memref<24x128xbf16, #tpu.memory_space<vmem>>, vector<24x32xbf16>,
    %c0_25 = arith.constant 0 : index
    %c64 = arith.constant 64 : index
    %48 = vector.load %arg2[%c0_25, %c64] : memref<24x128xbf16, #tpu.memory_space<vmem>>, vector<24x32xbf16>
    %c0_26 = arith.constant 0 : index
    %c64_27 = arith.constant 64 : index
    %49 = vector.load %arg3[%c0_26, %c64_27] : memref<24x128xbf16, #tpu.memory_space<vmem>>, vector<24x32xbf16>
    %c0_28 = arith.constant 0 : index
    %c64_29 = arith.constant 64 : index
    %50 = vector.load %arg4[%c0_28, %c64_29] : memref<24x128xbf16, #tpu.memory_space<vmem>>, vector<24x32xbf16>
    %cst_30 = arith.constant dense<0.000000e+00> : vector<24x24xf32>
    %51 = tpu.matmul %48, %49, %cst_30 {dimension_numbers = #tpu.dot_dimension_numbers<[1], [1], [0], [0], [0, 0, 1, 0], [], []>} : vector<24x32xbf16>, vector<24x32xbf16>, vector<24x24xf32> -> vector<24x24xf32>
    %cst_31 = arith.constant 0.176776692 : f32
    %52 = vector.broadcast %cst_31 : f32 to vector<24x24xf32>
    %53 = arith.mulf %51, %52 : vector<24x24xf32>
    %54 = vector.broadcast %5 : vector<1x24xf32> to vector<24x24xf32>
    %55 = arith.addf %53, %54 : vector<24x24xf32>
    %cst_32 = arith.constant dense<0xFF800000> : vector<24xf32>
    %56 = vector.multi_reduction <maximumf>, %55, %cst_32 [1] : vector<24x24xf32> to vector<24xf32>
    %57 = vector.shape_cast %56 : vector<24xf32> to vector<24x1xf32>
    %58 = vector.broadcast %57 : vector<24x1xf32> to vector<24x24xf32>
    %59 = arith.subf %55, %58 : vector<24x24xf32>
    %60 = math.exp %59 : vector<24x24xf32>
    %cst_33 = arith.constant dense<0.000000e+00> : vector<24xf32>
    %61 = vector.multi_reduction <add>, %60, %cst_33 [1] : vector<24x24xf32> to vector<24xf32>
    %62 = vector.shape_cast %61 : vector<24xf32> to vector<24x1xf32>
    %63 = arith.truncf %60 : vector<24x24xf32> to vector<24x24xbf16>
    %cst_34 = arith.constant dense<0.000000e+00> : vector<24x32xf32>
    %64 = tpu.matmul %63, %50, %cst_34 {dimension_numbers = #tpu.dot_dimension_numbers<[1], [0], [0], [1], [0, 0, 1, 1], [], []>} : vector<24x24xbf16>, vector<24x32xbf16>, vector<24x32xf32> -> vector<24x32xf32>
    %65 = vector.broadcast %62 : vector<24x1xf32> to vector<24x32xf32>
    %66 = arith.divf %64, %65 : vector<24x32xf32>
    %67 = arith.truncf %66 : vector<24x32xf32> to vector<24x32xbf16>
    %c0_35 = arith.constant 0 : index
    %c64_36 = arith.constant 64 : index
    %68 = vector.load %arg5[%c0_35, %c64_36] : memref<24x128xbf16, #tpu.memory_space<vmem>>, vector<24x32xbf16>
    tpu.vector_store %arg5[%c0_35, %c64_36], %67 {strides = array<i32>} : memref<24x128xbf16, #tpu.memory_space<vmem>>, vector<24x32xbf16>,
    %c0_37 = arith.constant 0 : index
    %c96 = arith.constant 96 : index
    %69 = vector.load %arg2[%c0_37, %c96] : memref<24x128xbf16, #tpu.memory_space<vmem>>, vector<24x32xbf16>
    %c0_38 = arith.constant 0 : index
    %c96_39 = arith.constant 96 : index
    %70 = vector.load %arg3[%c0_38, %c96_39] : memref<24x128xbf16, #tpu.memory_space<vmem>>, vector<24x32xbf16>
    %c0_40 = arith.constant 0 : index
    %c96_41 = arith.constant 96 : index
    %71 = vector.load %arg4[%c0_40, %c96_41] : memref<24x128xbf16, #tpu.memory_space<vmem>>, vector<24x32xbf16>
    %cst_42 = arith.constant dense<0.000000e+00> : vector<24x24xf32>
    %72 = tpu.matmul %69, %70, %cst_42 {dimension_numbers = #tpu.dot_dimension_numbers<[1], [1], [0], [0], [0, 0, 1, 0], [], []>} : vector<24x32xbf16>, vector<24x32xbf16>, vector<24x24xf32> -> vector<24x24xf32>
    %cst_43 = arith.constant 0.176776692 : f32
    %73 = vector.broadcast %cst_43 : f32 to vector<24x24xf32>
    %74 = arith.mulf %72, %73 : vector<24x24xf32>
    %75 = vector.broadcast %5 : vector<1x24xf32> to vector<24x24xf32>
    %76 = arith.addf %74, %75 : vector<24x24xf32>
    %cst_44 = arith.constant dense<0xFF800000> : vector<24xf32>
    %77 = vector.multi_reduction <maximumf>, %76, %cst_44 [1] : vector<24x24xf32> to vector<24xf32>
    %78 = vector.shape_cast %77 : vector<24xf32> to vector<24x1xf32>
    %79 = vector.broadcast %78 : vector<24x1xf32> to vector<24x24xf32>
    %80 = arith.subf %76, %79 : vector<24x24xf32>
    %81 = math.exp %80 : vector<24x24xf32>
    %cst_45 = arith.constant dense<0.000000e+00> : vector<24xf32>
    %82 = vector.multi_reduction <add>, %81, %cst_45 [1] : vector<24x24xf32> to vector<24xf32>
    %83 = vector.shape_cast %82 : vector<24xf32> to vector<24x1xf32>
    %84 = arith.truncf %81 : vector<24x24xf32> to vector<24x24xbf16>
    %cst_46 = arith.constant dense<0.000000e+00> : vector<24x32xf32>
    %85 = tpu.matmul %84, %71, %cst_46 {dimension_numbers = #tpu.dot_dimension_numbers<[1], [0], [0], [1], [0, 0, 1, 1], [], []>} : vector<24x24xbf16>, vector<24x32xbf16>, vector<24x32xf32> -> vector<24x32xf32>
    %86 = vector.broadcast %83 : vector<24x1xf32> to vector<24x32xf32>
    %87 = arith.divf %85, %86 : vector<24x32xf32>
    %88 = arith.truncf %87 : vector<24x32xf32> to vector<24x32xbf16>
    %c0_47 = arith.constant 0 : index
    %c96_48 = arith.constant 96 : index
    %89 = vector.load %arg5[%c0_47, %c96_48] : memref<24x128xbf16, #tpu.memory_space<vmem>>, vector<24x32xbf16>
    tpu.vector_store %arg5[%c0_47, %c96_48], %88 {strides = array<i32>} : memref<24x128xbf16, #tpu.memory_space<vmem>>, vector<24x32xbf16>,
    return
  }
  func.func @transform_0(%arg0: i32, %arg1: i32) -> (i32, i32) {
    %c0_i32 = arith.constant 0 : i32
    return %arg0, %arg1 : i32, i32
  }
  func.func @transform_1(%arg0: i32, %arg1: i32) -> (i32, i32) {
    %c2_i32 = arith.constant 2 : i32
    %0 = arith.addi %c2_i32, %arg1 : i32
    %c0_i32 = arith.constant 0 : i32
    return %arg0, %0 : i32, i32
  }
  func.func @transform_2(%arg0: i32, %arg1: i32) -> (i32, i32) {
    %c4_i32 = arith.constant 4 : i32
    %0 = arith.addi %c4_i32, %arg1 : i32
    %c0_i32 = arith.constant 0 : i32
    return %arg0, %0 : i32, i32
  }
  func.func @transform_3(%arg0: i32, %arg1: i32) -> (i32, i32) {
    %c0_i32 = arith.constant 0 : i32
    return %arg0, %arg1 : i32, i32
  }
}

module attributes {stable_mosaic.version = 11 : i64} {
  func.func @kernel(%arg0: i32, %arg1: i32, %arg2: i32, %arg3: memref<48x256xbf16, #tpu.memory_space<vmem>>, %arg4: memref<256x256xbf16, #tpu.memory_space<vmem>>, %arg5: memref<1x256xf32, #tpu.memory_space<vmem>>, %arg6: memref<48x256xbf16, #tpu.memory_space<vmem>>, %arg7: memref<48x256xbf16, #tpu.memory_space<vmem>>, %arg8: memref<48x256xf32, #tpu.memory_space<vmem>>) attributes {dimension_semantics = [#tpu.dimension_semantics<parallel>, #tpu.dimension_semantics<parallel>, #tpu.dimension_semantics<arbitrary>], iteration_bounds = array<i64: 1, 1, 1>, scalar_prefetch = 0 : i64, scratch_operands = 1 : i64, tpu.core_type = #tpu.core_type<tc>, window_params = [{transform_indices = @transform_0, window_bounds = array<i64: 48, 256>}, {transform_indices = @transform_1, window_bounds = array<i64: 256, 256>}, {transform_indices = @transform_2, window_bounds = array<i64: 1, 256>}, {transform_indices = @transform_3, window_bounds = array<i64: 48, 256>}, {transform_indices = @transform_4, window_bounds = array<i64: 48, 256>}]} {
    %c0 = arith.constant 0 : index
    %c0_0 = arith.constant 0 : index
    %0 = vector.load %arg3[%c0, %c0_0] : memref<48x256xbf16, #tpu.memory_space<vmem>>, vector<48x256xbf16>
    %c0_i32 = arith.constant 0 : i32
    %1 = arith.cmpi eq, %arg2, %c0_i32 : i32
    %2 = arith.extui %1 : i1 to i32
    %c0_i32_1 = arith.constant 0 : i32
    %3 = arith.cmpi ne, %2, %c0_i32_1 : i32
    scf.if %3 {
      %cst_10 = arith.constant 0.000000e+00 : f32
      %12 = vector.broadcast %cst_10 : f32 to vector<48x256xf32>
      %c0_11 = arith.constant 0 : index
      %c0_12 = arith.constant 0 : index
      %13 = vector.load %arg8[%c0_11, %c0_12] : memref<48x256xf32, #tpu.memory_space<vmem>>, vector<48x256xf32>
      tpu.vector_store %arg8[%c0_11, %c0_12], %12 {strides = array<i32>} : memref<48x256xf32, #tpu.memory_space<vmem>>, vector<48x256xf32>,
    } else {
    }
    %c0_2 = arith.constant 0 : index
    %c0_3 = arith.constant 0 : index
    %4 = vector.load %arg8[%c0_2, %c0_3] : memref<48x256xf32, #tpu.memory_space<vmem>>, vector<48x256xf32>
    %c0_4 = arith.constant 0 : index
    %c0_5 = arith.constant 0 : index
    %5 = vector.load %arg4[%c0_4, %c0_5] : memref<256x256xbf16, #tpu.memory_space<vmem>>, vector<256x256xbf16>
    %cst = arith.constant dense<0.000000e+00> : vector<48x256xf32>
    %6 = tpu.matmul %0, %5, %cst {dimension_numbers = #tpu.dot_dimension_numbers<[1], [0], [0], [1], [0, 0, 1, 1], [], []>} : vector<48x256xbf16>, vector<256x256xbf16>, vector<48x256xf32> -> vector<48x256xf32>
    %7 = arith.addf %4, %6 : vector<48x256xf32>
    %c0_6 = arith.constant 0 : index
    %c0_7 = arith.constant 0 : index
    %8 = vector.load %arg8[%c0_6, %c0_7] : memref<48x256xf32, #tpu.memory_space<vmem>>, vector<48x256xf32>
    tpu.vector_store %arg8[%c0_6, %c0_7], %7 {strides = array<i32>} : memref<48x256xf32, #tpu.memory_space<vmem>>, vector<48x256xf32>,
    %c0_i32_8 = arith.constant 0 : i32
    %9 = arith.cmpi eq, %arg2, %c0_i32_8 : i32
    %10 = arith.extui %9 : i1 to i32
    %c0_i32_9 = arith.constant 0 : i32
    %11 = arith.cmpi ne, %10, %c0_i32_9 : i32
    scf.if %11 {
      %c0_10 = arith.constant 0 : index
      %c0_11 = arith.constant 0 : index
      %12 = vector.load %arg8[%c0_10, %c0_11] : memref<48x256xf32, #tpu.memory_space<vmem>>, vector<48x256xf32>
      %c0_12 = arith.constant 0 : index
      %c0_13 = arith.constant 0 : index
      %13 = vector.load %arg5[%c0_12, %c0_13] : memref<1x256xf32, #tpu.memory_space<vmem>>, vector<1x256xf32>
      %14 = vector.broadcast %13 : vector<1x256xf32> to vector<48x256xf32>
      %15 = arith.addf %12, %14 : vector<48x256xf32>
      %c0_14 = arith.constant 0 : index
      %c0_15 = arith.constant 0 : index
      %16 = vector.load %arg6[%c0_14, %c0_15] : memref<48x256xbf16, #tpu.memory_space<vmem>>, vector<48x256xbf16>
      %17 = arith.extf %16 : vector<48x256xbf16> to vector<48x256xf32>
      %18 = arith.addf %15, %17 : vector<48x256xf32>
      %19 = arith.truncf %18 : vector<48x256xf32> to vector<48x256xbf16>
      %c0_16 = arith.constant 0 : index
      %c0_17 = arith.constant 0 : index
      %20 = vector.load %arg7[%c0_16, %c0_17] : memref<48x256xbf16, #tpu.memory_space<vmem>>, vector<48x256xbf16>
      tpu.vector_store %arg7[%c0_16, %c0_17], %19 {strides = array<i32>} : memref<48x256xbf16, #tpu.memory_space<vmem>>, vector<48x256xbf16>,
    } else {
    }
    return
  }
  func.func @transform_0(%arg0: i32, %arg1: i32, %arg2: i32) -> (i32, i32) {
    %c0_i32 = arith.constant 0 : i32
    return %arg0, %arg2 : i32, i32
  }
  func.func @transform_1(%arg0: i32, %arg1: i32, %arg2: i32) -> (i32, i32) {
    %c0_i32 = arith.constant 0 : i32
    return %arg2, %arg1 : i32, i32
  }
  func.func @transform_2(%arg0: i32, %arg1: i32, %arg2: i32) -> (i32, i32) {
    %c0_i32 = arith.constant 0 : i32
    %c0_i32_0 = arith.constant 0 : i32
    return %c0_i32, %arg1 : i32, i32
  }
  func.func @transform_3(%arg0: i32, %arg1: i32, %arg2: i32) -> (i32, i32) {
    %c0_i32 = arith.constant 0 : i32
    return %arg0, %arg1 : i32, i32
  }
  func.func @transform_4(%arg0: i32, %arg1: i32, %arg2: i32) -> (i32, i32) {
    %c0_i32 = arith.constant 0 : i32
    return %arg0, %arg1 : i32, i32
  }
}

module attributes {stable_mosaic.version = 11 : i64} {
  func.func @kernel(%arg0: i32, %arg1: i32, %arg2: i32, %arg3: memref<48x256xbf16, #tpu.memory_space<vmem>>, %arg4: memref<256x256xbf16, #tpu.memory_space<vmem>>, %arg5: memref<1x256xf32, #tpu.memory_space<vmem>>, %arg6: memref<1x256xf32, #tpu.memory_space<vmem>>, %arg7: memref<1x256xf32, #tpu.memory_space<vmem>>, %arg8: memref<48x256xbf16, #tpu.memory_space<vmem>>, %arg9: memref<48x256xf32, #tpu.memory_space<vmem>>) attributes {dimension_semantics = [#tpu.dimension_semantics<parallel>, #tpu.dimension_semantics<parallel>, #tpu.dimension_semantics<arbitrary>], iteration_bounds = array<i64: 1, 4, 1>, scalar_prefetch = 0 : i64, scratch_operands = 1 : i64, tpu.core_type = #tpu.core_type<tc>, window_params = [{transform_indices = @transform_0, window_bounds = array<i64: 48, 256>}, {transform_indices = @transform_1, window_bounds = array<i64: 256, 256>}, {transform_indices = @transform_2, window_bounds = array<i64: 1, 256>}, {transform_indices = @transform_3, window_bounds = array<i64: 1, 256>}, {transform_indices = @transform_4, window_bounds = array<i64: 1, 256>}, {transform_indices = @transform_5, window_bounds = array<i64: 48, 256>}]} {
    %c0 = arith.constant 0 : index
    %c0_0 = arith.constant 0 : index
    %0 = vector.load %arg3[%c0, %c0_0] : memref<48x256xbf16, #tpu.memory_space<vmem>>, vector<48x256xbf16>
    %1 = arith.extf %0 : vector<48x256xbf16> to vector<48x256xf32>
    %cst = arith.constant dense<0.000000e+00> : vector<48xf32>
    %2 = vector.multi_reduction <add>, %1, %cst [1] : vector<48x256xf32> to vector<48xf32>
    %3 = vector.shape_cast %2 : vector<48xf32> to vector<48x1xf32>
    %cst_1 = arith.constant 2.560000e+02 : f32
    %4 = vector.broadcast %cst_1 : f32 to vector<48x1xf32>
    %5 = arith.divf %3, %4 : vector<48x1xf32>
    %6 = vector.broadcast %5 : vector<48x1xf32> to vector<48x256xf32>
    %7 = arith.subf %1, %6 : vector<48x256xf32>
    %8 = arith.mulf %7, %7 : vector<48x256xf32>
    %cst_2 = arith.constant dense<0.000000e+00> : vector<48xf32>
    %9 = vector.multi_reduction <add>, %8, %cst_2 [1] : vector<48x256xf32> to vector<48xf32>
    %10 = vector.shape_cast %9 : vector<48xf32> to vector<48x1xf32>
    %cst_3 = arith.constant 2.560000e+02 : f32
    %11 = vector.broadcast %cst_3 : f32 to vector<48x1xf32>
    %12 = arith.divf %10, %11 : vector<48x1xf32>
    %cst_4 = arith.constant 9.99999997E-7 : f32
    %13 = vector.broadcast %cst_4 : f32 to vector<48x1xf32>
    %14 = arith.addf %12, %13 : vector<48x1xf32>
    %15 = math.rsqrt %14 : vector<48x1xf32>
    %16 = vector.broadcast %15 : vector<48x1xf32> to vector<48x256xf32>
    %17 = arith.mulf %7, %16 : vector<48x256xf32>
    %c0_5 = arith.constant 0 : index
    %c0_6 = arith.constant 0 : index
    %18 = vector.load %arg6[%c0_5, %c0_6] : memref<1x256xf32, #tpu.memory_space<vmem>>, vector<1x256xf32>
    %19 = vector.broadcast %18 : vector<1x256xf32> to vector<48x256xf32>
    %20 = arith.mulf %17, %19 : vector<48x256xf32>
    %c0_7 = arith.constant 0 : index
    %c0_8 = arith.constant 0 : index
    %21 = vector.load %arg7[%c0_7, %c0_8] : memref<1x256xf32, #tpu.memory_space<vmem>>, vector<1x256xf32>
    %22 = vector.broadcast %21 : vector<1x256xf32> to vector<48x256xf32>
    %23 = arith.addf %20, %22 : vector<48x256xf32>
    %24 = arith.truncf %23 : vector<48x256xf32> to vector<48x256xbf16>
    %c0_i32 = arith.constant 0 : i32
    %25 = arith.cmpi eq, %arg2, %c0_i32 : i32
    %26 = arith.extui %25 : i1 to i32
    %c0_i32_9 = arith.constant 0 : i32
    %27 = arith.cmpi ne, %26, %c0_i32_9 : i32
    scf.if %27 {
      %cst_19 = arith.constant 0.000000e+00 : f32
      %36 = vector.broadcast %cst_19 : f32 to vector<48x256xf32>
      %c0_20 = arith.constant 0 : index
      %c0_21 = arith.constant 0 : index
      %37 = vector.load %arg9[%c0_20, %c0_21] : memref<48x256xf32, #tpu.memory_space<vmem>>, vector<48x256xf32>
      tpu.vector_store %arg9[%c0_20, %c0_21], %36 {strides = array<i32>} : memref<48x256xf32, #tpu.memory_space<vmem>>, vector<48x256xf32>,
    } else {
    }
    %c0_10 = arith.constant 0 : index
    %c0_11 = arith.constant 0 : index
    %28 = vector.load %arg9[%c0_10, %c0_11] : memref<48x256xf32, #tpu.memory_space<vmem>>, vector<48x256xf32>
    %c0_12 = arith.constant 0 : index
    %c0_13 = arith.constant 0 : index
    %29 = vector.load %arg4[%c0_12, %c0_13] : memref<256x256xbf16, #tpu.memory_space<vmem>>, vector<256x256xbf16>
    %cst_14 = arith.constant dense<0.000000e+00> : vector<48x256xf32>
    %30 = tpu.matmul %24, %29, %cst_14 {dimension_numbers = #tpu.dot_dimension_numbers<[1], [0], [0], [1], [0, 0, 1, 1], [], []>} : vector<48x256xbf16>, vector<256x256xbf16>, vector<48x256xf32> -> vector<48x256xf32>
    %31 = arith.addf %28, %30 : vector<48x256xf32>
    %c0_15 = arith.constant 0 : index
    %c0_16 = arith.constant 0 : index
    %32 = vector.load %arg9[%c0_15, %c0_16] : memref<48x256xf32, #tpu.memory_space<vmem>>, vector<48x256xf32>
    tpu.vector_store %arg9[%c0_15, %c0_16], %31 {strides = array<i32>} : memref<48x256xf32, #tpu.memory_space<vmem>>, vector<48x256xf32>,
    %c0_i32_17 = arith.constant 0 : i32
    %33 = arith.cmpi eq, %arg2, %c0_i32_17 : i32
    %34 = arith.extui %33 : i1 to i32
    %c0_i32_18 = arith.constant 0 : i32
    %35 = arith.cmpi ne, %34, %c0_i32_18 : i32
    scf.if %35 {
      %c0_19 = arith.constant 0 : index
      %c0_20 = arith.constant 0 : index
      %36 = vector.load %arg9[%c0_19, %c0_20] : memref<48x256xf32, #tpu.memory_space<vmem>>, vector<48x256xf32>
      %c0_21 = arith.constant 0 : index
      %c0_22 = arith.constant 0 : index
      %37 = vector.load %arg5[%c0_21, %c0_22] : memref<1x256xf32, #tpu.memory_space<vmem>>, vector<1x256xf32>
      %38 = vector.broadcast %37 : vector<1x256xf32> to vector<48x256xf32>
      %39 = arith.addf %36, %38 : vector<48x256xf32>
      %cst_23 = arith.constant 5.000000e-01 : f32
      %40 = vector.broadcast %cst_23 : f32 to vector<48x256xf32>
      %41 = arith.mulf %40, %39 : vector<48x256xf32>
      %cst_24 = arith.constant 4.471500e-02 : f32
      %42 = vector.broadcast %cst_24 : f32 to vector<48x256xf32>
      %43 = arith.mulf %42, %39 : vector<48x256xf32>
      %44 = arith.mulf %43, %39 : vector<48x256xf32>
      %45 = arith.mulf %44, %39 : vector<48x256xf32>
      %46 = arith.addf %39, %45 : vector<48x256xf32>
      %cst_25 = arith.constant 0.797884583 : f32
      %47 = vector.broadcast %cst_25 : f32 to vector<48x256xf32>
      %48 = arith.mulf %47, %46 : vector<48x256xf32>
      %49 = math.tanh %48 : vector<48x256xf32>
      %cst_26 = arith.constant 1.000000e+00 : f32
      %50 = vector.broadcast %cst_26 : f32 to vector<48x256xf32>
      %51 = arith.addf %50, %49 : vector<48x256xf32>
      %52 = arith.mulf %41, %51 : vector<48x256xf32>
      %53 = arith.truncf %52 : vector<48x256xf32> to vector<48x256xbf16>
      %c0_27 = arith.constant 0 : index
      %c0_28 = arith.constant 0 : index
      %54 = vector.load %arg8[%c0_27, %c0_28] : memref<48x256xbf16, #tpu.memory_space<vmem>>, vector<48x256xbf16>
      tpu.vector_store %arg8[%c0_27, %c0_28], %53 {strides = array<i32>} : memref<48x256xbf16, #tpu.memory_space<vmem>>, vector<48x256xbf16>,
    } else {
    }
    return
  }
  func.func @transform_0(%arg0: i32, %arg1: i32, %arg2: i32) -> (i32, i32) {
    %c0_i32 = arith.constant 0 : i32
    return %arg0, %arg2 : i32, i32
  }
  func.func @transform_1(%arg0: i32, %arg1: i32, %arg2: i32) -> (i32, i32) {
    %c0_i32 = arith.constant 0 : i32
    return %arg2, %arg1 : i32, i32
  }
  func.func @transform_2(%arg0: i32, %arg1: i32, %arg2: i32) -> (i32, i32) {
    %c0_i32 = arith.constant 0 : i32
    %c0_i32_0 = arith.constant 0 : i32
    return %c0_i32, %arg1 : i32, i32
  }
  func.func @transform_3(%arg0: i32, %arg1: i32, %arg2: i32) -> (i32, i32) {
    %c0_i32 = arith.constant 0 : i32
    %c0_i32_0 = arith.constant 0 : i32
    return %c0_i32, %arg2 : i32, i32
  }
  func.func @transform_4(%arg0: i32, %arg1: i32, %arg2: i32) -> (i32, i32) {
    %c0_i32 = arith.constant 0 : i32
    %c0_i32_0 = arith.constant 0 : i32
    return %c0_i32, %arg2 : i32, i32
  }
  func.func @transform_5(%arg0: i32, %arg1: i32, %arg2: i32) -> (i32, i32) {
    %c0_i32 = arith.constant 0 : i32
    return %arg0, %arg1 : i32, i32
  }
}

module attributes {stable_mosaic.version = 11 : i64} {
  func.func @kernel(%arg0: i32, %arg1: i32, %arg2: i32, %arg3: memref<48x1024xbf16, #tpu.memory_space<vmem>>, %arg4: memref<1024x256xbf16, #tpu.memory_space<vmem>>, %arg5: memref<1x256xf32, #tpu.memory_space<vmem>>, %arg6: memref<48x256xbf16, #tpu.memory_space<vmem>>, %arg7: memref<48x256xbf16, #tpu.memory_space<vmem>>, %arg8: memref<48x256xf32, #tpu.memory_space<vmem>>) attributes {dimension_semantics = [#tpu.dimension_semantics<parallel>, #tpu.dimension_semantics<parallel>, #tpu.dimension_semantics<arbitrary>], iteration_bounds = array<i64: 1, 1, 1>, scalar_prefetch = 0 : i64, scratch_operands = 1 : i64, tpu.core_type = #tpu.core_type<tc>, window_params = [{transform_indices = @transform_0, window_bounds = array<i64: 48, 1024>}, {transform_indices = @transform_1, window_bounds = array<i64: 1024, 256>}, {transform_indices = @transform_2, window_bounds = array<i64: 1, 256>}, {transform_indices = @transform_3, window_bounds = array<i64: 48, 256>}, {transform_indices = @transform_4, window_bounds = array<i64: 48, 256>}]} {
    %c0 = arith.constant 0 : index
    %c0_0 = arith.constant 0 : index
    %0 = vector.load %arg3[%c0, %c0_0] : memref<48x1024xbf16, #tpu.memory_space<vmem>>, vector<48x1024xbf16>
    %c0_i32 = arith.constant 0 : i32
    %1 = arith.cmpi eq, %arg2, %c0_i32 : i32
    %2 = arith.extui %1 : i1 to i32
    %c0_i32_1 = arith.constant 0 : i32
    %3 = arith.cmpi ne, %2, %c0_i32_1 : i32
    scf.if %3 {
      %cst_10 = arith.constant 0.000000e+00 : f32
      %12 = vector.broadcast %cst_10 : f32 to vector<48x256xf32>
      %c0_11 = arith.constant 0 : index
      %c0_12 = arith.constant 0 : index
      %13 = vector.load %arg8[%c0_11, %c0_12] : memref<48x256xf32, #tpu.memory_space<vmem>>, vector<48x256xf32>
      tpu.vector_store %arg8[%c0_11, %c0_12], %12 {strides = array<i32>} : memref<48x256xf32, #tpu.memory_space<vmem>>, vector<48x256xf32>,
    } else {
    }
    %c0_2 = arith.constant 0 : index
    %c0_3 = arith.constant 0 : index
    %4 = vector.load %arg8[%c0_2, %c0_3] : memref<48x256xf32, #tpu.memory_space<vmem>>, vector<48x256xf32>
    %c0_4 = arith.constant 0 : index
    %c0_5 = arith.constant 0 : index
    %5 = vector.load %arg4[%c0_4, %c0_5] : memref<1024x256xbf16, #tpu.memory_space<vmem>>, vector<1024x256xbf16>
    %cst = arith.constant dense<0.000000e+00> : vector<48x256xf32>
    %6 = tpu.matmul %0, %5, %cst {dimension_numbers = #tpu.dot_dimension_numbers<[1], [0], [0], [1], [0, 0, 1, 1], [], []>} : vector<48x1024xbf16>, vector<1024x256xbf16>, vector<48x256xf32> -> vector<48x256xf32>
    %7 = arith.addf %4, %6 : vector<48x256xf32>
    %c0_6 = arith.constant 0 : index
    %c0_7 = arith.constant 0 : index
    %8 = vector.load %arg8[%c0_6, %c0_7] : memref<48x256xf32, #tpu.memory_space<vmem>>, vector<48x256xf32>
    tpu.vector_store %arg8[%c0_6, %c0_7], %7 {strides = array<i32>} : memref<48x256xf32, #tpu.memory_space<vmem>>, vector<48x256xf32>,
    %c0_i32_8 = arith.constant 0 : i32
    %9 = arith.cmpi eq, %arg2, %c0_i32_8 : i32
    %10 = arith.extui %9 : i1 to i32
    %c0_i32_9 = arith.constant 0 : i32
    %11 = arith.cmpi ne, %10, %c0_i32_9 : i32
    scf.if %11 {
      %c0_10 = arith.constant 0 : index
      %c0_11 = arith.constant 0 : index
      %12 = vector.load %arg8[%c0_10, %c0_11] : memref<48x256xf32, #tpu.memory_space<vmem>>, vector<48x256xf32>
      %c0_12 = arith.constant 0 : index
      %c0_13 = arith.constant 0 : index
      %13 = vector.load %arg5[%c0_12, %c0_13] : memref<1x256xf32, #tpu.memory_space<vmem>>, vector<1x256xf32>
      %14 = vector.broadcast %13 : vector<1x256xf32> to vector<48x256xf32>
      %15 = arith.addf %12, %14 : vector<48x256xf32>
      %c0_14 = arith.constant 0 : index
      %c0_15 = arith.constant 0 : index
      %16 = vector.load %arg6[%c0_14, %c0_15] : memref<48x256xbf16, #tpu.memory_space<vmem>>, vector<48x256xbf16>
      %17 = arith.extf %16 : vector<48x256xbf16> to vector<48x256xf32>
      %18 = arith.addf %15, %17 : vector<48x256xf32>
      %19 = arith.truncf %18 : vector<48x256xf32> to vector<48x256xbf16>
      %c0_16 = arith.constant 0 : index
      %c0_17 = arith.constant 0 : index
      %20 = vector.load %arg7[%c0_16, %c0_17] : memref<48x256xbf16, #tpu.memory_space<vmem>>, vector<48x256xbf16>
      tpu.vector_store %arg7[%c0_16, %c0_17], %19 {strides = array<i32>} : memref<48x256xbf16, #tpu.memory_space<vmem>>, vector<48x256xbf16>,
    } else {
    }
    return
  }
  func.func @transform_0(%arg0: i32, %arg1: i32, %arg2: i32) -> (i32, i32) {
    %c0_i32 = arith.constant 0 : i32
    return %arg0, %arg2 : i32, i32
  }
  func.func @transform_1(%arg0: i32, %arg1: i32, %arg2: i32) -> (i32, i32) {
    %c0_i32 = arith.constant 0 : i32
    return %arg2, %arg1 : i32, i32
  }
  func.func @transform_2(%arg0: i32, %arg1: i32, %arg2: i32) -> (i32, i32) {
    %c0_i32 = arith.constant 0 : i32
    %c0_i32_0 = arith.constant 0 : i32
    return %c0_i32, %arg1 : i32, i32
  }
  func.func @transform_3(%arg0: i32, %arg1: i32, %arg2: i32) -> (i32, i32) {
    %c0_i32 = arith.constant 0 : i32
    return %arg0, %arg1 : i32, i32
  }
  func.func @transform_4(%arg0: i32, %arg1: i32, %arg2: i32) -> (i32, i32) {
    %c0_i32 = arith.constant 0 : i32
    return %arg0, %arg1 : i32, i32
  }
}

module attributes {stable_mosaic.version = 11 : i64} {
  func.func @_ln_kernel(%arg0: i32, %arg1: memref<48x256xbf16, #tpu.memory_space<vmem>>, %arg2: memref<1x256xf32, #tpu.memory_space<vmem>>, %arg3: memref<1x256xf32, #tpu.memory_space<vmem>>, %arg4: memref<48x256xf32, #tpu.memory_space<vmem>>) attributes {dimension_semantics = [#tpu.dimension_semantics<parallel>], iteration_bounds = array<i64: 1>, scalar_prefetch = 0 : i64, scratch_operands = 0 : i64, tpu.core_type = #tpu.core_type<tc>, window_params = [{transform_indices = @transform_0, window_bounds = array<i64: 48, 256>}, {pipeline_mode = #tpu.pipeline_mode<synchronous>, transform_indices = @transform_1, window_bounds = array<i64: 1, 256>}, {pipeline_mode = #tpu.pipeline_mode<synchronous>, transform_indices = @transform_2, window_bounds = array<i64: 1, 256>}, {transform_indices = @transform_3, window_bounds = array<i64: 48, 256>}]} {
    %c0 = arith.constant 0 : index
    %c0_0 = arith.constant 0 : index
    %0 = vector.load %arg1[%c0, %c0_0] : memref<48x256xbf16, #tpu.memory_space<vmem>>, vector<48x256xbf16>
    %1 = arith.extf %0 : vector<48x256xbf16> to vector<48x256xf32>
    %cst = arith.constant dense<0.000000e+00> : vector<48xf32>
    %2 = vector.multi_reduction <add>, %1, %cst [1] : vector<48x256xf32> to vector<48xf32>
    %3 = vector.shape_cast %2 : vector<48xf32> to vector<48x1xf32>
    %cst_1 = arith.constant 2.560000e+02 : f32
    %4 = vector.broadcast %cst_1 : f32 to vector<48x1xf32>
    %5 = arith.divf %3, %4 : vector<48x1xf32>
    %6 = vector.broadcast %5 : vector<48x1xf32> to vector<48x256xf32>
    %7 = arith.subf %1, %6 : vector<48x256xf32>
    %8 = arith.mulf %7, %7 : vector<48x256xf32>
    %cst_2 = arith.constant dense<0.000000e+00> : vector<48xf32>
    %9 = vector.multi_reduction <add>, %8, %cst_2 [1] : vector<48x256xf32> to vector<48xf32>
    %10 = vector.shape_cast %9 : vector<48xf32> to vector<48x1xf32>
    %cst_3 = arith.constant 2.560000e+02 : f32
    %11 = vector.broadcast %cst_3 : f32 to vector<48x1xf32>
    %12 = arith.divf %10, %11 : vector<48x1xf32>
    %cst_4 = arith.constant 9.99999997E-7 : f32
    %13 = vector.broadcast %cst_4 : f32 to vector<48x1xf32>
    %14 = arith.addf %12, %13 : vector<48x1xf32>
    %15 = math.rsqrt %14 : vector<48x1xf32>
    %16 = vector.broadcast %15 : vector<48x1xf32> to vector<48x256xf32>
    %17 = arith.mulf %7, %16 : vector<48x256xf32>
    %c0_5 = arith.constant 0 : index
    %c0_6 = arith.constant 0 : index
    %18 = vector.load %arg2[%c0_5, %c0_6] : memref<1x256xf32, #tpu.memory_space<vmem>>, vector<1x256xf32>
    %19 = vector.broadcast %18 : vector<1x256xf32> to vector<48x256xf32>
    %20 = arith.mulf %17, %19 : vector<48x256xf32>
    %c0_7 = arith.constant 0 : index
    %c0_8 = arith.constant 0 : index
    %21 = vector.load %arg3[%c0_7, %c0_8] : memref<1x256xf32, #tpu.memory_space<vmem>>, vector<1x256xf32>
    %22 = vector.broadcast %21 : vector<1x256xf32> to vector<48x256xf32>
    %23 = arith.addf %20, %22 : vector<48x256xf32>
    %c0_9 = arith.constant 0 : index
    %c0_10 = arith.constant 0 : index
    %24 = vector.load %arg4[%c0_9, %c0_10] : memref<48x256xf32, #tpu.memory_space<vmem>>, vector<48x256xf32>
    tpu.vector_store %arg4[%c0_9, %c0_10], %23 {strides = array<i32>} : memref<48x256xf32, #tpu.memory_space<vmem>>, vector<48x256xf32>,
    return
  }
  func.func @transform_0(%arg0: i32) -> (i32, i32) {
    %c0_i32 = arith.constant 0 : i32
    %c0_i32_0 = arith.constant 0 : i32
    return %arg0, %c0_i32 : i32, i32
  }
  func.func @transform_1(%arg0: i32) -> (i32, i32) {
    %c0_i32 = arith.constant 0 : i32
    %c0_i32_0 = arith.constant 0 : i32
    %c0_i32_1 = arith.constant 0 : i32
    return %c0_i32, %c0_i32_0 : i32, i32
  }
  func.func @transform_2(%arg0: i32) -> (i32, i32) {
    %c0_i32 = arith.constant 0 : i32
    %c0_i32_0 = arith.constant 0 : i32
    %c0_i32_1 = arith.constant 0 : i32
    return %c0_i32, %c0_i32_0 : i32, i32
  }
  func.func @transform_3(%arg0: i32) -> (i32, i32) {
    %c0_i32 = arith.constant 0 : i32
    %c0_i32_0 = arith.constant 0 : i32
    return %arg0, %c0_i32 : i32, i32
  }
}

</mosaic_0001>

<bundles_post_ra>
// kernel: vit_forward.23
= control target key start
LH: loop header
LB: loop body
LE: loop exit
PB: predicated region body
PF: predicated region fallthrough
CT: control target
= control target key end

     0   :  { %s1386_s18 = smov 0   ;;  %s1388_s19 = smov 0   ;;  %s1637_s0 = inlined_call_operand.vmem [shape: bf16[48,256], index: 0, kind: input, shape index: {}]   ;;  %s1638_s1 = inlined_call_operand.vmem [shape: bf16[256,768], index: 1, kind: input, shape index: {}]   ;;  %s1639_s2 = inlined_call_operand.vmem [shape: f32[1,768], index: 2, kind: input, shape index: {}]   ;;  %s1640_s3 = inlined_call_operand.vmem [shape: f32[1,256], index: 3, kind: input, shape index: {}]   ;;  %s1641_s4 = inlined_call_operand.vmem [shape: f32[1,256], index: 4, kind: input, shape index: {}]   ;;  %s1642_s5 = inlined_call_operand.vmem [shape: bf16[48,768], index: 5, kind: output, shape index: {}]  }
   0x1   :  { %s1390_s20 = smov 0   ;;  %s1392_s21 = smov 0  }
   0x2   :  { %s1394_s22 = smov 0  }
   0x3 LB: > { %s30_s23 = sadd.s32 1, %s1350_s21  ;;  %s1137_s24 = sadd.s32 4294967295, %s1354_s22   ;;  %s1354_s22 = sphi %s1394_s22, %s15_s22   ;;  %s1350_s21 = sphi %s1392_s21, %s1647_s21   ;;  %s1346_s20 = sphi %s1390_s20, %s1646_s20   ;;  %s1342_s19 = sphi %s1388_s19, %s1645_s19   ;;  %s1338_s18 = sphi %s1386_s18, %s1644_s18  }
   0x4   : > { %p32_p0 = scmp.ge.s32.totalorder %s30_s23, 6  ;;  %p78_p1 = scmp.ne.s32.totalorder %s1342_s19, %s1338_s18 }
   0x5   : > { %p79_p2 = scmp.eq.s32.totalorder %s1354_s22, 0  ;;  %p188_p4 = scmp.eq.s32.totalorder %s1137_s24, 5 }
   0x6   : > { %s1649_s23 = smov (%p32_p0, %s30_s23), 0  ;;  %s71_s26 = sadd.s32 1, %s1342_s19 }
   0x7   : > { %p80_p3 = por %p79_p2, %p78_p1  ;;  %s67_s25 = ssub.s32 %s1350_s21, %s1649_s23 }
   0x8   : > { %p69_p5 = scmp.eq.s32.totalorder %s67_s25, 0  ;;  %p1421_p6 = por %p188_p4, %p78_p1 }
   0x9   : > { %p1143_p7 = scmp.ge.s32.totalorder %s1354_s22, 6 }
   0xa   : > { %s1426_s28 = scalar_select %p69_p5, %s1342_s19, %s71_s26  }
   0xb   : > { %241 = sbr.rel (%p1143_p7) target bundleno = 43 (0x2b), region = 28 }
  0x12   : > { %244 = sbr.rel (!%p80_p3) target bundleno = 43 (0x2b), region = 32  ;;  %s246_s29 = sand.u32 (%p80_p3), 1, %s1342_s19  }
  0x13   : > { %s1145_s30 = sshll.u32 (%p80_p3), %s1350_s21, 2  ;;  %s1144_s6 = sshll.u32 (%p80_p3), %s246_s29, 7 }
  0x14   : > { %s1434_s9 = scalar_lea.vmem (%p80_p3), %s1638_s1, %s1145_s30  ;;  %s1438_s10 = scalar_lea.vmem (%p80_p3), [#allocation3], %s1144_s6 }
  0x15   : > { %v269_v0 = vld [vmem:[%s1434_s9] sm:$0xf] (%p80_p3)  ;;  %v271_v1 = vld [vmem:[%s1434_s9 + $0x18] sm:$0xf] (%p80_p3)  ;;  %v273_v2 = vld [vmem:[%s1434_s9 + $0x30] sm:$0xf] (%p80_p3) }
  0x16   : > { %270 = vst [vmem:[%s1438_s10] sm:$0xf] (%p80_p3), %v269_v0  ;;  %272 = vst [vmem:[%s1438_s10 + $0x4] sm:$0xf] (%p80_p3), %v271_v1  ;;  %v275_v3 = vld [vmem:[%s1434_s9 + $0x48] sm:$0xf] (%p80_p3) }
  0x17   : > { %v277_v4 = vld [vmem:[%s1434_s9 + $0x60] sm:$0xf] (%p80_p3)  ;;  %274 = vst [vmem:[%s1438_s10 + $0x8] sm:$0xf] (%p80_p3), %v273_v2  ;;  %276 = vst [vmem:[%s1438_s10 + $0xc] sm:$0xf] (%p80_p3), %v275_v3 }
  0x18   : > { %278 = vst [vmem:[%s1438_s10 + $0x10] sm:$0xf] (%p80_p3), %v277_v4  ;;  %v279_v5 = vld [vmem:[%s1434_s9 + $0x78] sm:$0xf] (%p80_p3)  ;;  %v281_v6 = vld [vmem:[%s1434_s9 + $0x90] sm:$0xf] (%p80_p3) }
  0x19   : > { %v283_v7 = vld [vmem:[%s1434_s9 + $0xa8] sm:$0xf]  ;;  %280 = vst [vmem:[%s1438_s10 + $0x14] sm:$0xf] %v279_v5  ;;  %282 = vst [vmem:[%s1438_s10 + $0x18] sm:$0xf] %v281_v6 }
  0x1a   : > { %284 = vst [vmem:[%s1438_s10 + $0x1c] sm:$0xf] %v283_v7  ;;  %v285_v8 = vld [vmem:[%s1434_s9 + $0xc0] sm:$0xf]  ;;  %v287_v9 = vld [vmem:[%s1434_s9 + $0xd8] sm:$0xf] }
  0x1b   : > { %v289_v10 = vld [vmem:[%s1434_s9 + $0xf0] sm:$0xf]  ;;  %286 = vst [vmem:[%s1438_s10 + $0x20] sm:$0xf] %v285_v8  ;;  %288 = vst [vmem:[%s1438_s10 + $0x24] sm:$0xf] %v287_v9 }
  0x1c   : > { %290 = vst [vmem:[%s1438_s10 + $0x28] sm:$0xf] %v289_v10  ;;  %v291_v11 = vld [vmem:[%s1434_s9 + $0x108] sm:$0xf]  ;;  %v293_v12 = vld [vmem:[%s1434_s9 + $0x120] sm:$0xf] }
  0x1d   : > { %v295_v13 = vld [vmem:[%s1434_s9 + $0x138] sm:$0xf]  ;;  %292 = vst [vmem:[%s1438_s10 + $0x2c] sm:$0xf] %v291_v11  ;;  %294 = vst [vmem:[%s1438_s10 + $0x30] sm:$0xf] %v293_v12 }
  0x1e   : > { %296 = vst [vmem:[%s1438_s10 + $0x34] sm:$0xf] %v295_v13  ;;  %v297_v14 = vld [vmem:[%s1434_s9 + $0x150] sm:$0xf]  ;;  %v299_v15 = vld [vmem:[%s1434_s9 + $0x168] sm:$0xf] }
  0x1f   : > { %v301_v16 = vld [vmem:[%s1434_s9 + $0x180] sm:$0xf]  ;;  %298 = vst [vmem:[%s1438_s10 + $0x38] sm:$0xf] %v297_v14  ;;  %300 = vst [vmem:[%s1438_s10 + $0x3c] sm:$0xf] %v299_v15 }
  0x20   : > { %302 = vst [vmem:[%s1438_s10 + $0x40] sm:$0xf] %v301_v16  ;;  %v303_v17 = vld [vmem:[%s1434_s9 + $0x198] sm:$0xf]  ;;  %v305_v18 = vld [vmem:[%s1434_s9 + $0x1b0] sm:$0xf] }
  0x21   : > { %v307_v19 = vld [vmem:[%s1434_s9 + $0x1c8] sm:$0xf]  ;;  %304 = vst [vmem:[%s1438_s10 + $0x44] sm:$0xf] %v303_v17  ;;  %306 = vst [vmem:[%s1438_s10 + $0x48] sm:$0xf] %v305_v18 }
  0x22   : > { %308 = vst [vmem:[%s1438_s10 + $0x4c] sm:$0xf] %v307_v19  ;;  %v309_v20 = vld [vmem:[%s1434_s9 + $0x1e0] sm:$0xf]  ;;  %v311_v21 = vld [vmem:[%s1434_s9 + $0x1f8] sm:$0xf] }
  0x23   : > { %v313_v22 = vld [vmem:[%s1434_s9 + $0x210] sm:$0xf]  ;;  %310 = vst [vmem:[%s1438_s10 + $0x50] sm:$0xf] %v309_v20  ;;  %312 = vst [vmem:[%s1438_s10 + $0x54] sm:$0xf] %v311_v21 }
  0x24   : > { %314 = vst [vmem:[%s1438_s10 + $0x58] sm:$0xf] %v313_v22  ;;  %v315_v23 = vld [vmem:[%s1434_s9 + $0x228] sm:$0xf]  ;;  %v317_v24 = vld [vmem:[%s1434_s9 + $0x240] sm:$0xf] }
  0x25   : > { %v319_v25 = vld [vmem:[%s1434_s9 + $0x258] sm:$0xf]  ;;  %316 = vst [vmem:[%s1438_s10 + $0x5c] sm:$0xf] %v315_v23  ;;  %318 = vst [vmem:[%s1438_s10 + $0x60] sm:$0xf] %v317_v24 }
  0x26   : > { %320 = vst [vmem:[%s1438_s10 + $0x64] sm:$0xf] %v319_v25  ;;  %v321_v26 = vld [vmem:[%s1434_s9 + $0x270] sm:$0xf]  ;;  %v323_v27 = vld [vmem:[%s1434_s9 + $0x288] sm:$0xf] }
  0x27   : > { %v325_v28 = vld [vmem:[%s1434_s9 + $0x2a0] sm:$0xf]  ;;  %322 = vst [vmem:[%s1438_s10 + $0x68] sm:$0xf] %v321_v26  ;;  %324 = vst [vmem:[%s1438_s10 + $0x6c] sm:$0xf] %v323_v27 }
  0x28   : > { %326 = vst [vmem:[%s1438_s10 + $0x70] sm:$0xf] %v325_v28  ;;  %v327_v29 = vld [vmem:[%s1434_s9 + $0x2b8] sm:$0xf]  ;;  %v329_v30 = vld [vmem:[%s1434_s9 + $0x2d0] sm:$0xf] }
  0x29   : > { %v331_v31 = vld [vmem:[%s1434_s9 + $0x2e8] sm:$0xf]  ;;  %328 = vst [vmem:[%s1438_s10 + $0x74] sm:$0xf] %v327_v29  ;;  %330 = vst [vmem:[%s1438_s10 + $0x78] sm:$0xf] %v329_v30 }
  0x2a   : > { %332 = vst [vmem:[%s1438_s10 + $0x7c] sm:$0xf] %v331_v31 }
  0x2b PF: > { %p1146_p8 = scmp.ge.s32.totalorder %s1354_s22, 1  ;;  %p424_p9 = scmp.lt.s32.totalorder %s1354_s22, 7 }
  0x2d   : > { %p425_p10 = pnand %p1146_p8, %p424_p9 }
  0x2e   : > { %v508_v32 = vld [vmem:[%s1637_s0 + $0x10] sm:$0xff] (!%p425_p10)  ;;  %v509_v33 = vld [vmem:[%s1637_s0 + $0x18] sm:$0xff] (!%p425_p10)  ;;  %v506_v34 = vld [vmem:[%s1637_s0] sm:$0xff] (!%p425_p10)  ;;  %s431_s6 = sand.u32 (!%p425_p10), 1, %s1338_s18   ;;  %p491_p11 = scmp.lt.s32.totalorder (!%p425_p10), %s1346_s20, 5 }
  0x2f   : > { %428 = sbr.rel (%p425_p10) target bundleno = 610 (0x262), region = 77  ;;  %v516_v35 = vunpack.c.l.bf16 (!%p425_p10), %v508_v32  ;;  %v517_v36 = vunpack.c.h.bf16 (!%p425_p10), %v508_v32  ;;  %v518_v37 = vunpack.c.l.bf16 (!%p425_p10), %v509_v33  ;;  %v519_v38 = vunpack.c.h.bf16 (!%p425_p10), %v509_v33  ;;  %v507_v39 = vld [vmem:[%s1637_s0 + $0x8] sm:$0xff] (!%p425_p10)  ;;  %v510_v42 = vld [vmem:[%s1637_s0 + $0x20] sm:$0xff] (!%p425_p10)  ;;  %s1147_s7 = sshll.u32 (!%p425_p10), %s431_s6, 7 }
  0x30   : > { %v512_v40 = vunpack.c.l.bf16 (!%p425_p10), %v506_v34  ;;  %v513_v41 = vunpack.c.h.bf16 (!%p425_p10), %v506_v34  ;;  %v514_v44 = vunpack.c.l.bf16 (!%p425_p10), %v507_v39  ;;  %v515_v45 = vunpack.c.h.bf16 (!%p425_p10), %v507_v39  ;;  %v511_v46 = vld [vmem:[%s1637_s0 + $0x28] sm:$0xff] (!%p425_p10)  ;;  %s1525_s8 = scalar_lea.vmem (!%p425_p10), [#allocation3], %s1147_s7  ;;  %s1247_s17 = smul.u32 (!%p425_p10), 24, %s431_s6 }
  0x31   : > { %v530_v43 = vadd.f32 (!%p425_p10), %v517_v36, %v516_v35  ;;  %v533_v48 = vadd.f32 (!%p425_p10), %v519_v38, %v518_v37  ;;  %v520_v49 = vunpack.c.l.bf16 (!%p425_p10), %v510_v42  ;;  %v521_v50 = vunpack.c.h.bf16 (!%p425_p10), %v510_v42  ;;  %v1288_v56 = vld [vmem:[%s1525_s8 + $0x40] sm:$0xff] (!%p425_p10)   ;;  %v1293_v39 = vld [vmem:[%s1525_s8 + $0x10] sm:$0xff] (!%p425_p10)  }
  0x32   : > { %v524_v47 = vadd.f32 (!%p425_p10), %v513_v41, %v512_v40  ;;  %v527_v51 = vadd.f32 (!%p425_p10), %v515_v45, %v514_v44  ;;  %v522_v52 = vunpack.c.l.bf16 (!%p425_p10), %v511_v46  ;;  %v523_v53 = vunpack.c.h.bf16 (!%p425_p10), %v511_v46  ;;  %v1289_v57 = vld [vmem:[%s1525_s8] sm:$0xff] (!%p425_p10)   ;;  %1231 = vmatprep.subr.bf16.mxu1 (!%p425_p10), %v1288_v56  ;;  %1197 = vmatprep.subr.bf16.mxu0 (!%p425_p10), %v1288_v56  ;;  %v1300_v46 = vld [vmem:[%s1525_s8 + $0x70] sm:$0xff] (!%p425_p10)   ;;  %s477_s24 = scalar_lea.vmem (!%p425_p10), [#allocation4], %s1247_s17 }
  0x33   : > { %531 = vadd.xlane.f32.xlu0 (!%p425_p10), %v530_v43  ;;  %v536_v54 = vadd.f32 (!%p425_p10), %v521_v50, %v520_v49  ;;  %1239 = vmatpush3.bf16.msra.mxu1 (!%p425_p10), %v1289_v57  ;;  %v1296_v42 = vld [vmem:[%s1525_s8 + $0x60] sm:$0xff] (!%p425_p10)  }
  0x34   : > { %525 = vadd.xlane.f32.xlu1 (!%p425_p10), %v524_v47  ;;  %v539_v55 = vadd.f32 (!%p425_p10), %v523_v53, %v522_v52  ;;  %1198 = vmatpush3.bf16.msra.mxu0 (!%p425_p10), %v1289_v57  ;;  %v1297_v43 = vld [vmem:[%s1525_s8 + $0x20] sm:$0xff] (!%p425_p10)   ;;  %v1301_v47 = vld [vmem:[%s1525_s8 + $0x30] sm:$0xff] (!%p425_p10)  }
  0x36   : > { %s492_s13 = scalar_select %p491_p11, %s1346_s20, 5 }
  0x37   : > { %534 = vadd.xlane.f32.xlu0 %v533_v48  ;;  %v1302_v48 = vld [vmem:[%s1525_s8 + $0x78] sm:$0xff]   ;;  %s1171_s18 = sshll.u32 (%p1421_p6), %s1346_s20, 2 }
  0x38   : > { %528 = vadd.xlane.f32.xlu1 %v527_v51  ;;  %s493_s16 = scalar_lea.vmem %s1639_s2, %s492_s13  ;;  %s951_s29 = scalar_lea.vmem (%p1421_p6), %s1642_s5, %s1171_s18 }
  0x3b   : > { %537 = vadd.xlane.f32.xlu0 %v536_v54 }
  0x3c   : > { %540 = vadd.xlane.f32.xlu1 %v539_v55 }
  0xc0   : > { %v532_v58 = vpop.xlane.xlu0 %531 }
  0xc1   : > { %v545_v59 = vmul.f32 0.00390625, %v532_v58  ;;  %v526_v60 = vpop.xlane.xlu1 %525 }
  0xc2   : > { %v543_v61 = vmul.f32 0.00390625, %v526_v60 }
  0xc3   : > { %v1529_v62 = vsub.f32 %v516_v35, %v545_v59  ;;  %v1531_v63 = vsub.f32 %v517_v36, %v545_v59  ;;  %v1290_v36 = vld [vmem:[%s1525_s8 + $0x48] sm:$0xff]  }
  0xc4   : > { %v535_v0 = vpop.xlane.xlu0 %534  ;;  %v1533_v1 = vsub.f32 %v512_v40, %v543_v61  ;;  %v1535_v2 = vsub.f32 %v513_v41, %v543_v61  ;;  %1232 = vmatprep.subr.bf16.mxu1 %v1290_v36  ;;  %1199 = vmatprep.subr.bf16.mxu0 %v1290_v36  ;;  %v1294_v40 = vld [vmem:[%s1525_s8 + $0x58] sm:$0xff]  }
  0xc5   : > { %v546_v3 = vmul.f32 0.00390625, %v535_v0  ;;  %v529_v4 = vpop.xlane.xlu1 %528  ;;  %v565_v5 = vmul.f32 %v1529_v62, %v1529_v62  ;;  %v566_v6 = vmul.f32 %v1531_v63, %v1531_v63  ;;  %v1295_v41 = vld [vmem:[%s1525_s8 + $0x18] sm:$0xff]  }
  0xc6   : > { %v544_v7 = vmul.f32 0.00390625, %v529_v4  ;;  %v561_v8 = vmul.f32 %v1533_v1, %v1533_v1  ;;  %v562_v9 = vmul.f32 %v1535_v2, %v1535_v2 }
  0xc7   : > { %v1545_v10 = vsub.f32 %v518_v37, %v546_v3  ;;  %v1547_v11 = vsub.f32 %v519_v38, %v546_v3  ;;  %v579_v12 = vadd.f32 %v566_v6, %v565_v5  ;;  %v1291_v37 = vld [vmem:[%s1525_s8 + $0x8] sm:$0xff]   ;;  %v1292_v38 = vld [vmem:[%s1525_s8 + $0x50] sm:$0xff]  }
  0xc8   : > { %v538_v13 = vpop.xlane.xlu0 %537  ;;  %v1549_v14 = vsub.f32 %v514_v44, %v544_v7  ;;  %v1551_v15 = vsub.f32 %v515_v45, %v544_v7  ;;  %v573_v20 = vadd.f32 %v562_v9, %v561_v8  ;;  %1240 = vmatpush3.bf16.msra.mxu1 %v1291_v37  ;;  %1200 = vmatpush3.bf16.msra.mxu0 %v1291_v37  ;;  %v1298_v44 = vld [vmem:[%s1525_s8 + $0x68] sm:$0xff]  }
  0xc9   : > { %v547_v16 = vmul.f32 0.00390625, %v538_v13  ;;  %580 = vadd.xlane.f32.xlu0 %v579_v12  ;;  %v541_v17 = vpop.xlane.xlu1 %540  ;;  %v567_v18 = vmul.f32 %v1545_v10, %v1545_v10  ;;  %v568_v19 = vmul.f32 %v1547_v11, %v1547_v11  ;;  %1233 = vmatprep.subr.bf16.mxu1 %v1292_v38  ;;  %v1299_v45 = vld [vmem:[%s1525_s8 + $0x28] sm:$0xff]   ;;  %v621_v12 = vld [vmem:[%s1640_s3] sm:$0x3] }
  0xca   : > { %v548_v21 = vmul.f32 0.00390625, %v541_v17  ;;  %v563_v22 = vmul.f32 %v1549_v14, %v1549_v14  ;;  %v564_v23 = vmul.f32 %v1551_v15, %v1551_v15  ;;  %1201 = vmatprep.subr.bf16.mxu0 %v1292_v38 }
  0xcb   : > { %v1561_v24 = vsub.f32 %v520_v49, %v547_v16  ;;  %v1563_v25 = vsub.f32 %v521_v50, %v547_v16  ;;  %v582_v26 = vadd.f32 %v568_v19, %v567_v18  ;;  %v1303_v49 = vld [vmem:[%s1525_s8 + $0x38] sm:$0xff]  }
  0xcc   : > { %v1565_v27 = vsub.f32 %v522_v52, %v548_v21  ;;  %v1567_v28 = vsub.f32 %v523_v53, %v548_v21  ;;  %v576_v31 = vadd.f32 %v564_v23, %v563_v22  ;;  %1241 = vmatpush3.bf16.msra.mxu1 %v1293_v39  ;;  %1202 = vmatpush3.bf16.msra.mxu0 %v1293_v39  ;;  %v623_v53 = vlaneseq  ;;  %v645_v21 = vld [vmem:[%s1641_s4] sm:$0x3] }
  0xcd   : > { %583 = vadd.xlane.f32.xlu1 %v582_v26  ;;  %574 = vadd.xlane.f32.xlu0 %v573_v20  ;;  %v569_v29 = vmul.f32 %v1561_v24, %v1561_v24  ;;  %v570_v30 = vmul.f32 %v1563_v25, %v1563_v25 }
  0xce   : > { %v571_v32 = vmul.f32 %v1565_v27, %v1565_v27  ;;  %v572_v33 = vmul.f32 %v1567_v28, %v1567_v28  ;;  %1234 = vmatprep.subr.bf16.mxu1 %v1294_v40  ;;  %1203 = vmatprep.subr.bf16.mxu0 %v1294_v40  ;;  %v624_v60 = vshrl.u32 %v623_v53, 7 }
  0xcf   : > { %v585_v34 = vadd.f32 %v570_v30, %v569_v29 }
  0xd0   : > { %v588_v35 = vadd.f32 %v572_v33, %v571_v32  ;;  %1242 = vmatpush3.bf16.msra.mxu1 %v1295_v41  ;;  %1204 = vmatpush3.bf16.msra.mxu0 %v1295_v41  ;;  %v625_v7 = vsub.s32 0, %v624_v60  ;;  %v629_v8 = vsub.s32 1, %v624_v60 }
  0xd1   : > { %586 = vadd.xlane.f32.xlu0 %v585_v34  ;;  %577 = vadd.xlane.f32.xlu1 %v576_v31 }
  0xd2   : > { %1235 = vmatprep.subr.bf16.mxu1 %v1296_v42  ;;  %1205 = vmatprep.subr.bf16.mxu0 %v1296_v42  ;;  %v626_v18 = vrot.slane %v621_v12, %v625_v7  ;;  %v630_v19 = vrot.slane %v621_v12, %v629_v8  ;;  %v650_v29 = vrot.slane %v645_v21, %v625_v7 }
  0xd3   : > { %v654_v30 = vrot.slane %v645_v21, %v629_v8 }
  0xd4   : > { %1243 = vmatpush3.bf16.msra.mxu1 %v1297_v43  ;;  %1206 = vmatpush3.bf16.msra.mxu0 %v1297_v43 }
  0xd5   : > { %589 = vadd.xlane.f32.xlu1 %v588_v35  ;;  %1236 = vmatprep.subr.bf16.mxu1 %v1298_v44 }
  0xd6   : > { %1207 = vmatprep.subr.bf16.mxu0 %v1298_v44 }
  0xd8   : > { %1244 = vmatpush3.bf16.msra.mxu1 %v1299_v45  ;;  %1208 = vmatpush3.bf16.msra.mxu0 %v1299_v45 }
  0xd9   : > { %1237 = vmatprep.subr.bf16.mxu1 %v1300_v46  ;;  %1209 = vmatprep.subr.bf16.mxu0 %v1300_v46 }
  0xdc   : > { %1245 = vmatpush3.bf16.msra.mxu1 %v1301_v47  ;;  %1210 = vmatpush3.bf16.msra.mxu0 %v1301_v47 }
  0xdd   : > { %1238 = vmatprep.subr.bf16.mxu1 %v1302_v48  ;;  %1211 = vmatprep.subr.bf16.mxu0 %v1302_v48 }
  0xe0   : > { %1246 = vmatpush3.bf16.msra.mxu1 %v1303_v49  ;;  %1212 = vmatpush3.bf16.msra.mxu0 %v1303_v49 }
 0x156   : > { %v581_v50 = vpop.xlane.xlu0 %580 }
 0x157   : > { %v593_v51 = vmul.f32 0.00390625, %v581_v50 }
 0x159   : > { %v599_v52 = vadd.f32 1e-06, %v593_v51 }
 0x15a   : > { %v575_v54 = vpop.xlane.xlu0 %574  ;;  %v584_v55 = vpop.xlane.xlu1 %583 }
 0x15b   : > { %1304 = vrsqrt.f32 %v599_v52  ;;  %v591_v56 = vmul.f32 0.00390625, %v575_v54  ;;  %v594_v57 = vmul.f32 0.00390625, %v584_v55 }
 0x15d   : > { %v597_v58 = vadd.f32 1e-06, %v591_v56  ;;  %v600_v59 = vadd.f32 1e-06, %v594_v57 }
 0x15e   : > { %v587_v61 = vpop.xlane.xlu0 %586  ;;  %v578_v0 = vpop.xlane.xlu1 %577 }
 0x15f   : > { %1306 = vrsqrt.f32 %v597_v58  ;;  %v595_v3 = vmul.f32 0.00390625, %v587_v61  ;;  %v592_v4 = vmul.f32 0.00390625, %v578_v0 }
 0x160   : > { %1308 = vrsqrt.f32 %v600_v59 }
 0x161   : > { %v601_v5 = vadd.f32 1e-06, %v595_v3  ;;  %v598_v6 = vadd.f32 1e-06, %v592_v4 }
 0x162   : > { %v590_v9 = vpop.xlane.xlu1 %589 }
 0x163   : > { %1310 = vrsqrt.f32 %v601_v5  ;;  %v596_v13 = vmul.f32 0.00390625, %v590_v9 }
 0x164   : > { %1312 = vrsqrt.f32 %v598_v6  ;;  %v1164_v6 = vld [vmem:[%s493_s16] ss:$0 sm:$0xff] }
 0x165   : > { %v1305_v16 = vpop.eup %1304  ;;  %v602_v17 = vadd.f32 1e-06, %v596_v13 }
 0x166   : > { %v614_v20 = vmul.f32 %v1305_v16, %v1531_v63  ;;  %v613_v22 = vmul.f32 %v1305_v16, %v1529_v62 }
 0x167   : > { %1314 = vrsqrt.f32 %v602_v17 }
 0x168   : > { %v638_v26 = vmul.f32 %v630_v19, %v614_v20  ;;  %v637_v31 = vmul.f32 %v626_v18, %v613_v22 }
 0x169   : > { %v1307_v23 = vpop.eup %1306 }
 0x16a   : > { %v1309_v32 = vpop.eup %1308  ;;  %v610_v33 = vmul.f32 %v1307_v23, %v1535_v2  ;;  %v609_v34 = vmul.f32 %v1307_v23, %v1533_v1  ;;  %v662_v38 = vadd.f32 %v654_v30, %v638_v26  ;;  %v661_v62 = vadd.f32 %v650_v29, %v637_v31 }
 0x16b   : > { %v616_v35 = vmul.f32 %v1309_v32, %v1547_v11  ;;  %v615_v63 = vmul.f32 %v1309_v32, %v1545_v10 }
 0x16c   : > { %v634_v41 = vmul.f32 %v630_v19, %v610_v33  ;;  %v633_v42 = vmul.f32 %v626_v18, %v609_v34 }
 0x16d   : > { %v1311_v36 = vpop.eup %1310  ;;  %v640_v37 = vmul.f32 %v630_v19, %v616_v35  ;;  %v639_v39 = vmul.f32 %v626_v18, %v615_v63 }
 0x16e   : > { %v1313_v40 = vpop.eup %1312  ;;  %v618_v43 = vmul.f32 %v1311_v36, %v1563_v25  ;;  %v617_v44 = vmul.f32 %v1311_v36, %v1561_v24  ;;  %v658_v25 = vadd.f32 %v654_v30, %v634_v41  ;;  %v657_v54 = vadd.f32 %v650_v29, %v633_v42 }
 0x16f   : > { %v664_v45 = vadd.f32 %v654_v30, %v640_v37  ;;  %v663_v2 = vadd.f32 %v650_v29, %v639_v39  ;;  %v612_v1 = vmul.f32 %v1313_v40, %v1551_v15  ;;  %v611_v11 = vmul.f32 %v1313_v40, %v1549_v14 }
 0x170   : > { %v642_v51 = vmul.f32 %v630_v19, %v618_v43  ;;  %v641_v53 = vmul.f32 %v626_v18, %v617_v44 }
 0x171   : > { %v1315_v46 = vpop.eup %1314  ;;  %v672_v10 = vpack.c.bf16 %v664_v45, %v662_v38  ;;  %v671_v47 = vpack.c.bf16 %v663_v2, %v661_v62  ;;  %v636_v48 = vmul.f32 %v630_v19, %v612_v1  ;;  %v635_v49 = vmul.f32 %v626_v18, %v611_v11 }
 0x172   : > { %v620_v50 = vmul.f32 %v1315_v46, %v1567_v28  ;;  %v619_v52 = vmul.f32 %v1315_v46, %v1565_v27  ;;  %v666_v58 = vadd.f32 %v654_v30, %v642_v51  ;;  %v665_v60 = vadd.f32 %v650_v29, %v641_v53 }
 0x173   : > { %859 = vmatprep.mubr.bf16.mxu1 %v672_v10  ;;  %v660_v24 = vadd.f32 %v654_v30, %v636_v48  ;;  %v659_v55 = vadd.f32 %v650_v29, %v635_v49 }
 0x174   : > { %860 = vmatmul.mubr.bf16.vlgmr.msra.gmra.mrb[0].mxu1 %v671_v47  ;;  %v644_v14 = vmul.f32 %v630_v19, %v620_v50  ;;  %v643_v15 = vmul.f32 %v626_v18, %v619_v52 }
 0x175   : > { %v670_v56 = vpack.c.bf16 %v660_v24, %v658_v25  ;;  %v669_v57 = vpack.c.bf16 %v659_v55, %v657_v54 }
 0x176   : > { %v668_v59 = vadd.f32 %v654_v30, %v644_v14  ;;  %v667_v28 = vadd.f32 %v650_v29, %v643_v15 }
 0x177   : > { %851 = vmatprep.mubr.bf16.mxu0 %v670_v56 }
 0x178   : > { %852 = vmatmul.mubr.bf16.vlgmr.msra.gmra.mrb[0].mxu0 %v669_v57  ;;  %v674_v27 = vpack.c.bf16 %v668_v59, %v666_v58  ;;  %v673_v61 = vpack.c.bf16 %v667_v28, %v665_v60 }
 0x17a   : > { %867 = vmatprep.mubr.bf16.mxu1 %v674_v27 }
 0x17c   : > { %868 = vmatmul.mubr.bf16.gmra.mrb[4].mxu1 %v673_v61 }
 0x247   : > { %v1219_v0 = vpop.f32.mrb[0].mxu1 }
 0x248   : > { %v1220_v3 = vpop.f32.mrb[1].mxu1 }
 0x249   : > { %v1221_v4 = vadd.f32 %v1220_v3, %v1219_v0  ;;  %v1222_v5 = vpop.f32.mrb[2].mxu1 }
 0x24a   : > { %v1223_v7 = vpop.f32.mrb[3].mxu1 }
 0x24b   : > { %v1224_v8 = vadd.f32 %v1223_v7, %v1222_v5  ;;  %v1213_v9 = vpop.f32.mrb[0].mxu0  ;;  %v906_v13 = vadd.f32 %v1221_v4, %v1164_v6 }
 0x24c   : > { %v1214_v12 = vpop.f32.mrb[1].mxu0 }
 0x24d   : > { %v907_v16 = vadd.f32 %v1224_v8, %v1164_v6  ;;  %v1215_v17 = vadd.f32 %v1214_v12, %v1213_v9  ;;  %v1216_v18 = vpop.f32.mrb[2].mxu0 }
 0x24e   : > { %v1217_v19 = vpop.f32.mrb[3].mxu0 }
 0x24f   : > { %v1188_v20 = vpack.c.bf16 %v907_v16, %v906_v13  ;;  %v1218_v21 = vadd.f32 %v1217_v19, %v1216_v18  ;;  %v1225_v22 = vpop.f32.mrb[4].mxu1  ;;  %v904_v26 = vadd.f32 %v1215_v17, %v1164_v6 }
 0x250   : > { %v1226_v23 = vpop.f32.mrb[5].mxu1 }
 0x251   : > { %1195 = vst [vmem:[%s477_s24 + $0x8] sm:$0xff] %v1188_v20   ;;  %v905_v29 = vadd.f32 %v1218_v21, %v1164_v6  ;;  %v1227_v30 = vadd.f32 %v1226_v23, %v1225_v22  ;;  %v1228_v31 = vpop.f32.mrb[6].mxu1 }
 0x252   : > { %v1229_v32 = vpop.f32.mrb[7].mxu1 }
 0x253   : > { %v1183_v33 = vpack.c.bf16 %v905_v29, %v904_v26  ;;  %v1230_v34 = vadd.f32 %v1229_v32, %v1228_v31  ;;  %v908_v35 = vadd.f32 %v1227_v30, %v1164_v6  ;;  %946 = sbr.rel (!%p1421_p6) target bundleno = 610 (0x262), region = 93 }
 0x255   : > { %1184 = vst [vmem:[%s477_s24] sm:$0xff] %v1183_v33   ;;  %v909_v63 = vadd.f32 %v1230_v34, %v1164_v6 }
 0x257   : > { %v1193_v36 = vpack.c.bf16 %v909_v63, %v908_v35 }
 0x258   : > { %v971_v39 = vld [vmem:[%s477_s24 + $0x8] sm:$0xf] (%p1421_p6)  ;;  %v973_v62 = vld [vmem:[%s477_s24 + $0xc] sm:$0xf] (%p1421_p6) }
 0x259   : > { %1196 = vst [vmem:[%s477_s24 + $0x10] sm:$0xff] %v1193_v36   ;;  %972 = vst [vmem:[%s951_s29 + $0x30] sm:$0xf] (%p1421_p6), %v971_v39 }
 0x25a   : > { %974 = vst [vmem:[%s951_s29 + $0x48] sm:$0xf] %v973_v62 }
 0x25c   : > { %v967_v37 = vld [vmem:[%s477_s24] sm:$0xf]  ;;  %v969_v38 = vld [vmem:[%s477_s24 + $0x4] sm:$0xf] }
 0x25d   : > { %968 = vst [vmem:[%s951_s29] sm:$0xf] %v967_v37  ;;  %970 = vst [vmem:[%s951_s29 + $0x18] sm:$0xf] %v969_v38 }
 0x260   : > { %v975_v40 = vld [vmem:[%s477_s24 + $0x10] sm:$0xf]  ;;  %v977_v41 = vld [vmem:[%s477_s24 + $0x14] sm:$0xf] }
 0x261   : > { %976 = vst [vmem:[%s951_s29 + $0x60] sm:$0xf] %v975_v40  ;;  %978 = vst [vmem:[%s951_s29 + $0x78] sm:$0xf] %v977_v41 }
 0x262 PF: > { %s15_s22 = sadd.s32 1, %s1354_s22   ;;  %s1644_s18 = smov %s1342_s19 }
 0x263   : > { %p12_p12 = scmp.ge.s32.totalorder %s15_s22, 8   ;;  %s1645_s19 = smov %s1426_s28 }
 0x264   : > { %s1646_s20 = smov %s1350_s21  ;;  %s1647_s21 = smov %s1649_s23 }
 0x265   :  { %14 = sbr.rel (!%p12_p12) target bundleno = 3 (0x3), region = 177 }

// kernel: vit_forward.22
= control target key start
LH: loop header
LB: loop body
LE: loop exit
PB: predicated region body
PF: predicated region fallthrough
CT: control target
= control target key end

     0   :  { %s1605_s1 = inlined_call_operand.vmem [shape: bf16[768,256], index: 1, kind: input, shape index: {}]   ;;  %s1606_s0 = inlined_call_operand.vmem [shape: bf16[32,768], index: 0, kind: input, shape index: {}]   ;;  %s1607_s2 = inlined_call_operand.vmem [shape: f32[1,256], index: 2, kind: input, shape index: {}]   ;;  %s1608_s3 = inlined_call_operand.vmem [shape: bf16[32,256], index: 3, kind: output, shape index: {}]  }
   0x1   :  { %v1084_v0 = vld [vmem:[%s1605_s1 + $0x4] ss:$8 sps:$4 sm:$0xff]   ;;  %v1088_v2 = vld [vmem:[%s1605_s1] ss:$8 sps:$4 sm:$0xff]   ;;  %v1090_v4 = vld [vmem:[%s1605_s1 + $0x14] ss:$8 sps:$4 sm:$0xff]  }
   0x2   :  { %v1086_v1 = vld [vmem:[%s1605_s1 + $0x104] ss:$8 sps:$4 sm:$0xff]   ;;  %682 = vmatprep.subr.bf16.mxu1 %v1084_v0  ;;  %v1089_v3 = vld [vmem:[%s1605_s1 + $0x100] ss:$8 sps:$4 sm:$0xff]   ;;  %v1092_v5 = vld [vmem:[%s1605_s1 + $0x114] ss:$8 sps:$4 sm:$0xff]  }
   0x3   :  { %735 = vmatprep.subr.bf16.mxu0 %v1086_v1  ;;  %683 = vmatpush1.bf16.msra.mxu1 %v1088_v2  ;;  %v1094_v6 = vld [vmem:[%s1605_s1 + $0x10] ss:$8 sps:$4 sm:$0xff]   ;;  %v1096_v8 = vld [vmem:[%s1605_s1 + $0x24] ss:$8 sps:$4 sm:$0xff]   ;;  %v1100_v10 = vld [vmem:[%s1605_s1 + $0x20] ss:$8 sps:$4 sm:$0xff]  }
   0x4   :  { %736 = vmatpush1.bf16.msra.mxu0 %v1089_v3  ;;  %684 = vmatprep.subr.bf16.mxu1 %v1090_v4  ;;  %v1095_v7 = vld [vmem:[%s1605_s1 + $0x110] ss:$8 sps:$4 sm:$0xff]   ;;  %v1098_v9 = vld [vmem:[%s1605_s1 + $0x124] ss:$8 sps:$4 sm:$0xff]   ;;  %v1101_v11 = vld [vmem:[%s1605_s1 + $0x120] ss:$8 sps:$4 sm:$0xff]  }
   0x5   :  { %737 = vmatprep.subr.bf16.mxu0 %v1092_v5  ;;  %v1102_v12 = vld [vmem:[%s1605_s1 + $0x34] ss:$8 sps:$4 sm:$0xff]   ;;  %v1106_v14 = vld [vmem:[%s1605_s1 + $0x30] ss:$8 sps:$4 sm:$0xff]   ;;  %v1108_v16 = vld [vmem:[%s1605_s1 + $0x44] ss:$8 sps:$4 sm:$0xff]  }
   0x6   :  { %v1104_v13 = vld [vmem:[%s1605_s1 + $0x134] ss:$8 sps:$4 sm:$0xff]   ;;  %v1107_v15 = vld [vmem:[%s1605_s1 + $0x130] ss:$8 sps:$4 sm:$0xff]   ;;  %v1110_v17 = vld [vmem:[%s1605_s1 + $0x144] ss:$8 sps:$4 sm:$0xff]  }
   0x7   :  { %685 = vmatpush1.bf16.msra.mxu1 %v1094_v6  ;;  %v1112_v18 = vld [vmem:[%s1605_s1 + $0x40] ss:$8 sps:$4 sm:$0xff]   ;;  %v1114_v20 = vld [vmem:[%s1605_s1 + $0x54] ss:$8 sps:$4 sm:$0xff]   ;;  %v1118_v22 = vld [vmem:[%s1605_s1 + $0x50] ss:$8 sps:$4 sm:$0xff]  }
   0x8   :  { %738 = vmatpush1.bf16.msra.mxu0 %v1095_v7  ;;  %686 = vmatprep.subr.bf16.mxu1 %v1096_v8  ;;  %v1113_v19 = vld [vmem:[%s1605_s1 + $0x140] ss:$8 sps:$4 sm:$0xff]   ;;  %v1116_v21 = vld [vmem:[%s1605_s1 + $0x154] ss:$8 sps:$4 sm:$0xff]   ;;  %v1119_v23 = vld [vmem:[%s1605_s1 + $0x150] ss:$8 sps:$4 sm:$0xff]  }
   0x9   :  { %739 = vmatprep.subr.bf16.mxu0 %v1098_v9  ;;  %v1120_v24 = vld [vmem:[%s1605_s1 + $0x64] ss:$8 sps:$4 sm:$0xff]   ;;  %v1124_v26 = vld [vmem:[%s1605_s1 + $0x60] ss:$8 sps:$4 sm:$0xff]   ;;  %v1126_v28 = vld [vmem:[%s1605_s1 + $0x74] ss:$8 sps:$4 sm:$0xff]  }
   0xa   :  { %v1122_v25 = vld [vmem:[%s1605_s1 + $0x164] ss:$8 sps:$4 sm:$0xff]   ;;  %v1125_v27 = vld [vmem:[%s1605_s1 + $0x160] ss:$8 sps:$4 sm:$0xff]   ;;  %v1128_v29 = vld [vmem:[%s1605_s1 + $0x174] ss:$8 sps:$4 sm:$0xff]  }
   0xb   :  { %687 = vmatpush1.bf16.msra.mxu1 %v1100_v10  ;;  %v1130_v30 = vld [vmem:[%s1605_s1 + $0x70] ss:$8 sps:$4 sm:$0xff]   ;;  %v1132_v32 = vld [vmem:[%s1605_s1 + $0x84] ss:$8 sps:$4 sm:$0xff]   ;;  %v1136_v34 = vld [vmem:[%s1605_s1 + $0x80] ss:$8 sps:$4 sm:$0xff]  }
   0xc   :  { %740 = vmatpush1.bf16.msra.mxu0 %v1101_v11  ;;  %688 = vmatprep.subr.bf16.mxu1 %v1102_v12  ;;  %v1131_v31 = vld [vmem:[%s1605_s1 + $0x170] ss:$8 sps:$4 sm:$0xff]   ;;  %v1134_v33 = vld [vmem:[%s1605_s1 + $0x184] ss:$8 sps:$4 sm:$0xff]   ;;  %v1137_v35 = vld [vmem:[%s1605_s1 + $0x180] ss:$8 sps:$4 sm:$0xff]  }
   0xd   :  { %741 = vmatprep.subr.bf16.mxu0 %v1104_v13  ;;  %v1138_v36 = vld [vmem:[%s1605_s1 + $0x94] ss:$8 sps:$4 sm:$0xff]   ;;  %v1142_v38 = vld [vmem:[%s1605_s1 + $0x90] ss:$8 sps:$4 sm:$0xff]   ;;  %v1144_v40 = vld [vmem:[%s1605_s1 + $0xa4] ss:$8 sps:$4 sm:$0xff]  }
   0xe   :  { %v1140_v37 = vld [vmem:[%s1605_s1 + $0x194] ss:$8 sps:$4 sm:$0xff]   ;;  %v1143_v39 = vld [vmem:[%s1605_s1 + $0x190] ss:$8 sps:$4 sm:$0xff]   ;;  %v1146_v41 = vld [vmem:[%s1605_s1 + $0x1a4] ss:$8 sps:$4 sm:$0xff]  }
   0xf   :  { %689 = vmatpush1.bf16.msra.mxu1 %v1106_v14  ;;  %v1148_v42 = vld [vmem:[%s1605_s1 + $0xa0] ss:$8 sps:$4 sm:$0xff]   ;;  %v1150_v44 = vld [vmem:[%s1605_s1 + $0xb4] ss:$8 sps:$4 sm:$0xff]   ;;  %v1154_v46 = vld [vmem:[%s1605_s1 + $0xb0] ss:$8 sps:$4 sm:$0xff]  }
  0x10   :  { %742 = vmatpush1.bf16.msra.mxu0 %v1107_v15  ;;  %690 = vmatprep.subr.bf16.mxu1 %v1108_v16  ;;  %v1149_v43 = vld [vmem:[%s1605_s1 + $0x1a0] ss:$8 sps:$4 sm:$0xff]   ;;  %v1152_v45 = vld [vmem:[%s1605_s1 + $0x1b4] ss:$8 sps:$4 sm:$0xff]   ;;  %v1155_v47 = vld [vmem:[%s1605_s1 + $0x1b0] ss:$8 sps:$4 sm:$0xff]  }
  0x11   :  { %743 = vmatprep.subr.bf16.mxu0 %v1110_v17  ;;  %v1156_v48 = vld [vmem:[%s1605_s1 + $0xc4] ss:$8 sps:$4 sm:$0xff]   ;;  %v1160_v52 = vld [vmem:[%s1605_s1 + $0xc0] ss:$8 sps:$4 sm:$0xff]   ;;  %v1162_v54 = vld [vmem:[%s1605_s1 + $0xd4] ss:$8 sps:$4 sm:$0xff]  }
  0x12   :  { %v1182_v49 = vld [vmem:[%s1606_s0 + $0x4] ss:$24 sps:$4 sm:$0xff]   ;;  %v1161_v53 = vld [vmem:[%s1605_s1 + $0x1c0] ss:$8 sps:$4 sm:$0xff]   ;;  %v1166_v56 = vld [vmem:[%s1605_s1 + $0xd0] ss:$8 sps:$4 sm:$0xff]  }
  0x13   :  { %691 = vmatpush1.bf16.msra.mxu1 %v1112_v18  ;;  %v1158_v50 = vld [vmem:[%s1605_s1 + $0x1c4] ss:$8 sps:$4 sm:$0xff]   ;;  %714 = vmatprep.mubr.bf16.mxu1 %v1182_v49  ;;  %v1164_v55 = vld [vmem:[%s1605_s1 + $0x1d4] ss:$8 sps:$4 sm:$0xff]   ;;  %v1167_v57 = vld [vmem:[%s1605_s1 + $0x1d0] ss:$8 sps:$4 sm:$0xff]  }
  0x14   :  { %744 = vmatpush1.bf16.msra.mxu0 %v1113_v19  ;;  %692 = vmatprep.subr.bf16.mxu1 %v1114_v20  ;;  %v1185_v51 = vld [vmem:[%s1606_s0 + $0xc] ss:$24 sps:$4 sm:$0xff]   ;;  %v1172_v60 = vld [vmem:[%s1605_s1 + $0xe0] ss:$8 sps:$4 sm:$0xff]   ;;  %v1174_v62 = vld [vmem:[%s1605_s1 + $0xf4] ss:$8 sps:$4 sm:$0xff]  }
  0x15   :  { %745 = vmatprep.subr.bf16.mxu0 %v1116_v21  ;;  %767 = vmatprep.mubr.bf16.mxu0 %v1185_v51  ;;  %v1168_v58 = vld [vmem:[%s1605_s1 + $0xe4] ss:$8 sps:$4 sm:$0xff]   ;;  %v1173_v61 = vld [vmem:[%s1605_s1 + $0x1e0] ss:$8 sps:$4 sm:$0xff]   ;;  %v1176_v63 = vld [vmem:[%s1605_s1 + $0x1f4] ss:$8 sps:$4 sm:$0xff]  }
  0x16   :  { %v1170_v59 = vld [vmem:[%s1605_s1 + $0x1e4] ss:$8 sps:$4 sm:$0xff]   ;;  %v1178_v0 = vld [vmem:[%s1605_s1 + $0xf0] ss:$8 sps:$4 sm:$0xff]   ;;  %v1183_v4 = vld [vmem:[%s1606_s0 + $0x8] ss:$24 sps:$4 sm:$0xff]  }
  0x17   :  { %693 = vmatpush1.bf16.msra.mxu1 %v1118_v22  ;;  %v1179_v1 = vld [vmem:[%s1605_s1 + $0x1f0] ss:$8 sps:$4 sm:$0xff]   ;;  %v1188_v2 = vld [vmem:[%s1605_s1 + $0x204] ss:$8 sps:$4 sm:$0xff]   ;;  %v1186_v5 = vld [vmem:[%s1605_s1 + $0x200] ss:$8 sps:$4 sm:$0xff]  }
  0x18   :  { %746 = vmatpush1.bf16.msra.mxu0 %v1119_v23  ;;  %694 = vmatprep.subr.bf16.mxu1 %v1120_v24  ;;  %v1180_v3 = vld [vmem:[%s1606_s0] ss:$24 sps:$4 sm:$0xff]   ;;  %v1191_v6 = vld [vmem:[%s1605_s1 + $0x214] ss:$8 sps:$4 sm:$0xff]   ;;  %v1194_v10 = vld [vmem:[%s1605_s1 + $0x224] ss:$8 sps:$4 sm:$0xff]  }
  0x19   :  { %747 = vmatprep.subr.bf16.mxu0 %v1122_v25  ;;  %v1225_v7 = vld [vmem:[%s1606_s0 + $0x34] ss:$24 sps:$4 sm:$0xff]   ;;  %v1189_v9 = vld [vmem:[%s1605_s1 + $0x210] ss:$8 sps:$4 sm:$0xff]   ;;  %v1192_v13 = vld [vmem:[%s1605_s1 + $0x220] ss:$8 sps:$4 sm:$0xff]  }
  0x1a   :  { %v1227_v8 = vld [vmem:[%s1606_s0 + $0x3c] ss:$24 sps:$4 sm:$0xff]   ;;  %v1232_v11 = vld [vmem:[%s1606_s0 + $0x30] ss:$24 sps:$4 sm:$0xff]   ;;  %v1200_v18 = vld [vmem:[%s1605_s1 + $0x244] ss:$8 sps:$4 sm:$0xff]  }
  0x1b   :  { %695 = vmatpush1.bf16.msra.mxu1 %v1124_v26  ;;  %v1233_v12 = vld [vmem:[%s1606_s0 + $0x38] ss:$24 sps:$4 sm:$0xff]   ;;  %v1197_v14 = vld [vmem:[%s1605_s1 + $0x234] ss:$8 sps:$4 sm:$0xff]   ;;  %v1198_v19 = vld [vmem:[%s1605_s1 + $0x240] ss:$8 sps:$4 sm:$0xff]  }
  0x1c   :  { %748 = vmatpush1.bf16.msra.mxu0 %v1125_v27  ;;  %696 = vmatprep.subr.bf16.mxu1 %v1126_v28  ;;  %v1242_v15 = vld [vmem:[%s1606_s0 + $0x14] ss:$24 sps:$4 sm:$0xff]   ;;  %v1245_v16 = vld [vmem:[%s1606_s0 + $0x44] ss:$24 sps:$4 sm:$0xff]   ;;  %v1195_v17 = vld [vmem:[%s1605_s1 + $0x230] ss:$8 sps:$4 sm:$0xff]  }
  0x1d   :  { %749 = vmatprep.subr.bf16.mxu0 %v1128_v29  ;;  %v1203_v20 = vld [vmem:[%s1605_s1 + $0x254] ss:$8 sps:$4 sm:$0xff]   ;;  %v1201_v21 = vld [vmem:[%s1605_s1 + $0x250] ss:$8 sps:$4 sm:$0xff]   ;;  %v1206_v22 = vld [vmem:[%s1605_s1 + $0x264] ss:$8 sps:$4 sm:$0xff]  }
  0x1e   :  { %v1204_v23 = vld [vmem:[%s1605_s1 + $0x260] ss:$8 sps:$4 sm:$0xff]   ;;  %v1209_v24 = vld [vmem:[%s1605_s1 + $0x274] ss:$8 sps:$4 sm:$0xff]   ;;  %v1207_v25 = vld [vmem:[%s1605_s1 + $0x270] ss:$8 sps:$4 sm:$0xff]  }
  0x1f   :  { %697 = vmatpush1.bf16.msra.mxu1 %v1130_v30  ;;  %v1212_v26 = vld [vmem:[%s1605_s1 + $0x284] ss:$8 sps:$4 sm:$0xff]   ;;  %v1210_v27 = vld [vmem:[%s1605_s1 + $0x280] ss:$8 sps:$4 sm:$0xff]   ;;  %v1215_v28 = vld [vmem:[%s1605_s1 + $0x294] ss:$8 sps:$4 sm:$0xff]  }
  0x20   :  { %750 = vmatpush1.bf16.msra.mxu0 %v1131_v31  ;;  %698 = vmatprep.subr.bf16.mxu1 %v1132_v32  ;;  %v1213_v29 = vld [vmem:[%s1605_s1 + $0x290] ss:$8 sps:$4 sm:$0xff]   ;;  %v1218_v30 = vld [vmem:[%s1605_s1 + $0x2a4] ss:$8 sps:$4 sm:$0xff]   ;;  %v1216_v31 = vld [vmem:[%s1605_s1 + $0x2a0] ss:$8 sps:$4 sm:$0xff]  }
  0x21   :  { %751 = vmatprep.subr.bf16.mxu0 %v1134_v33  ;;  %v1221_v32 = vld [vmem:[%s1605_s1 + $0x2b4] ss:$8 sps:$4 sm:$0xff]   ;;  %v1219_v33 = vld [vmem:[%s1605_s1 + $0x2b0] ss:$8 sps:$4 sm:$0xff]  }
  0x23   :  { %699 = vmatpush1.bf16.msra.mxu1 %v1136_v34  ;;  %v1224_v34 = vld [vmem:[%s1605_s1 + $0x2c4] ss:$8 sps:$4 sm:$0xff]  }
  0x24   :  { %752 = vmatpush1.bf16.msra.mxu0 %v1137_v35  ;;  %700 = vmatprep.subr.bf16.mxu1 %v1138_v36  ;;  %v1222_v35 = vld [vmem:[%s1605_s1 + $0x2c0] ss:$8 sps:$4 sm:$0xff]   ;;  %v1231_v36 = vld [vmem:[%s1605_s1 + $0x2d4] ss:$8 sps:$4 sm:$0xff]  }
  0x25   :  { %753 = vmatprep.subr.bf16.mxu0 %v1140_v37  ;;  %v1229_v37 = vld [vmem:[%s1605_s1 + $0x2d0] ss:$8 sps:$4 sm:$0xff]  }
  0x27   :  { %701 = vmatpush1.bf16.msra.mxu1 %v1142_v38  ;;  %v1236_v38 = vld [vmem:[%s1605_s1 + $0x2e4] ss:$8 sps:$4 sm:$0xff]  }
  0x28   :  { %754 = vmatpush1.bf16.msra.mxu0 %v1143_v39  ;;  %702 = vmatprep.subr.bf16.mxu1 %v1144_v40  ;;  %v1234_v39 = vld [vmem:[%s1605_s1 + $0x2e0] ss:$8 sps:$4 sm:$0xff]   ;;  %v1239_v40 = vld [vmem:[%s1605_s1 + $0x2f4] ss:$8 sps:$4 sm:$0xff]  }
  0x29   :  { %755 = vmatprep.subr.bf16.mxu0 %v1146_v41  ;;  %v1237_v41 = vld [vmem:[%s1605_s1 + $0x2f0] ss:$8 sps:$4 sm:$0xff]  }
  0x2b   :  { %703 = vmatpush1.bf16.msra.mxu1 %v1148_v42  ;;  %v1240_v42 = vld [vmem:[%s1606_s0 + $0x10] ss:$24 sps:$4 sm:$0xff]  }
  0x2c   :  { %756 = vmatpush1.bf16.msra.mxu0 %v1149_v43  ;;  %704 = vmatprep.subr.bf16.mxu1 %v1150_v44  ;;  %v1243_v43 = vld [vmem:[%s1606_s0 + $0x40] ss:$24 sps:$4 sm:$0xff]  }
  0x2d   :  { %757 = vmatprep.subr.bf16.mxu0 %v1152_v45 }
  0x2f   :  { %705 = vmatpush1.bf16.msra.mxu1 %v1154_v46 }
  0x30   :  { %758 = vmatpush1.bf16.msra.mxu0 %v1155_v47  ;;  %706 = vmatprep.subr.bf16.mxu1 %v1156_v48 }
  0x31   :  { %759 = vmatprep.subr.bf16.mxu0 %v1158_v50 }
  0x33   :  { %707 = vmatpush1.bf16.msra.mxu1 %v1160_v52 }
  0x34   :  { %760 = vmatpush1.bf16.msra.mxu0 %v1161_v53  ;;  %708 = vmatprep.subr.bf16.mxu1 %v1162_v54 }
  0x35   :  { %761 = vmatprep.subr.bf16.mxu0 %v1164_v55 }
  0x37   :  { %709 = vmatpush1.bf16.msra.mxu1 %v1166_v56 }
  0x38   :  { %762 = vmatpush1.bf16.msra.mxu0 %v1167_v57  ;;  %710 = vmatprep.subr.bf16.mxu1 %v1168_v58 }
  0x39   :  { %763 = vmatprep.subr.bf16.mxu0 %v1170_v59 }
  0x3b   :  { %711 = vmatpush1.bf16.msra.mxu1 %v1172_v60  ;;  %v870_v60 = vlaneseq }
  0x3c   :  { %764 = vmatpush1.bf16.msra.mxu0 %v1173_v61  ;;  %712 = vmatprep.subr.bf16.mxu1 %v1174_v62 }
  0x3d   :  { %765 = vmatprep.subr.bf16.mxu0 %v1176_v63  ;;  %v871_v61 = vshrl.u32 %v870_v60, 7  ;;  %v868_v63 = vld [vmem:[%s1607_s2] sm:$0x3] }
  0x3f   :  { %713 = vmatpush1.bf16.msra.mxu1 %v1178_v0  ;;  %v872_v62 = vsub.s32 0, %v871_v61  ;;  %v876_v0 = vsub.s32 1, %v871_v61 }
  0x40   :  { %766 = vmatpush1.bf16.msra.mxu0 %v1179_v1  ;;  %1036 = vmatprep.subr.bf16.mxu1 %v1188_v2 }
  0x41   :  { %788 = vmatprep.subr.bf16.mxu0 %v1188_v2  ;;  %v873_v1 = vrot.slane %v868_v63, %v872_v62 }
  0x42   :  { %715 = vmatmul.mubr.bf16.vlgmr.msra.gmra.mrb[0].mxu1 %v1180_v3 }
  0x43   :  { %768 = vmatmul.mubr.bf16.vlgmr.msra.gmra.mrb[0].mxu0 %v1183_v4  ;;  %1052 = vmatpush1.bf16.msra.mxu1 %v1186_v5  ;;  %v877_v4 = vrot.slane %v868_v63, %v876_v0 }
  0x44   :  { %789 = vmatpush1.bf16.msra.mxu0 %v1186_v5  ;;  %1037 = vmatprep.subr.bf16.mxu1 %v1191_v6 }
  0x45   :  { %790 = vmatprep.subr.bf16.mxu0 %v1191_v6  ;;  %724 = vmatprep.mubr.bf16.mxu1 %v1225_v7 }
  0x46   :  { %777 = vmatprep.mubr.bf16.mxu0 %v1227_v8 }
  0x47   :  { %1053 = vmatpush1.bf16.msra.mxu1 %v1189_v9 }
  0x48   :  { %791 = vmatpush1.bf16.msra.mxu0 %v1189_v9  ;;  %1038 = vmatprep.subr.bf16.mxu1 %v1194_v10 }
  0x49   :  { %792 = vmatprep.subr.bf16.mxu0 %v1194_v10 }
  0x4a   :  { %725 = vmatmul.mubr.bf16.gmra.mrb[4].mxu1 %v1232_v11 }
  0x4b   :  { %778 = vmatmul.mubr.bf16.gmra.mrb[4].mxu0 %v1233_v12  ;;  %1054 = vmatpush1.bf16.msra.mxu1 %v1192_v13 }
  0x4c   :  { %793 = vmatpush1.bf16.msra.mxu0 %v1192_v13  ;;  %1039 = vmatprep.subr.bf16.mxu1 %v1197_v14 }
  0x4d   :  { %794 = vmatprep.subr.bf16.mxu0 %v1197_v14  ;;  %820 = vmatprep.mubr.bf16.mxu0 %v1242_v15 }
  0x4e   :  { %830 = vmatprep.mubr.bf16.mxu1 %v1245_v16 }
  0x4f   :  { %1055 = vmatpush1.bf16.msra.mxu1 %v1195_v17 }
  0x50   :  { %795 = vmatpush1.bf16.msra.mxu0 %v1195_v17  ;;  %1040 = vmatprep.subr.bf16.mxu1 %v1200_v18 }
  0x51   :  { %796 = vmatprep.subr.bf16.mxu0 %v1200_v18 }
  0x53   :  { %1056 = vmatpush1.bf16.msra.mxu1 %v1198_v19 }
  0x54   :  { %797 = vmatpush1.bf16.msra.mxu0 %v1198_v19  ;;  %1041 = vmatprep.subr.bf16.mxu1 %v1203_v20 }
  0x55   :  { %798 = vmatprep.subr.bf16.mxu0 %v1203_v20 }
  0x57   :  { %1057 = vmatpush1.bf16.msra.mxu1 %v1201_v21 }
  0x58   :  { %799 = vmatpush1.bf16.msra.mxu0 %v1201_v21  ;;  %1042 = vmatprep.subr.bf16.mxu1 %v1206_v22 }
  0x59   :  { %800 = vmatprep.subr.bf16.mxu0 %v1206_v22 }
  0x5b   :  { %1058 = vmatpush1.bf16.msra.mxu1 %v1204_v23 }
  0x5c   :  { %801 = vmatpush1.bf16.msra.mxu0 %v1204_v23  ;;  %1043 = vmatprep.subr.bf16.mxu1 %v1209_v24 }
  0x5d   :  { %802 = vmatprep.subr.bf16.mxu0 %v1209_v24 }
  0x5f   :  { %1059 = vmatpush1.bf16.msra.mxu1 %v1207_v25 }
  0x60   :  { %803 = vmatpush1.bf16.msra.mxu0 %v1207_v25  ;;  %1044 = vmatprep.subr.bf16.mxu1 %v1212_v26 }
  0x61   :  { %804 = vmatprep.subr.bf16.mxu0 %v1212_v26 }
  0x63   :  { %1060 = vmatpush1.bf16.msra.mxu1 %v1210_v27 }
  0x64   :  { %805 = vmatpush1.bf16.msra.mxu0 %v1210_v27  ;;  %1045 = vmatprep.subr.bf16.mxu1 %v1215_v28 }
  0x65   :  { %806 = vmatprep.subr.bf16.mxu0 %v1215_v28 }
  0x67   :  { %1061 = vmatpush1.bf16.msra.mxu1 %v1213_v29 }
  0x68   :  { %807 = vmatpush1.bf16.msra.mxu0 %v1213_v29  ;;  %1046 = vmatprep.subr.bf16.mxu1 %v1218_v30 }
  0x69   :  { %808 = vmatprep.subr.bf16.mxu0 %v1218_v30 }
  0x6b   :  { %1062 = vmatpush1.bf16.msra.mxu1 %v1216_v31 }
  0x6c   :  { %809 = vmatpush1.bf16.msra.mxu0 %v1216_v31  ;;  %1047 = vmatprep.subr.bf16.mxu1 %v1221_v32 }
  0x6d   :  { %810 = vmatprep.subr.bf16.mxu0 %v1221_v32 }
  0x6f   :  { %1063 = vmatpush1.bf16.msra.mxu1 %v1219_v33 }
  0x70   :  { %811 = vmatpush1.bf16.msra.mxu0 %v1219_v33  ;;  %1048 = vmatprep.subr.bf16.mxu1 %v1224_v34 }
  0x71   :  { %812 = vmatprep.subr.bf16.mxu0 %v1224_v34 }
  0x73   :  { %1064 = vmatpush1.bf16.msra.mxu1 %v1222_v35 }
  0x74   :  { %813 = vmatpush1.bf16.msra.mxu0 %v1222_v35  ;;  %1049 = vmatprep.subr.bf16.mxu1 %v1231_v36 }
  0x75   :  { %814 = vmatprep.subr.bf16.mxu0 %v1231_v36 }
  0x77   :  { %1065 = vmatpush1.bf16.msra.mxu1 %v1229_v37 }
  0x78   :  { %815 = vmatpush1.bf16.msra.mxu0 %v1229_v37  ;;  %1050 = vmatprep.subr.bf16.mxu1 %v1236_v38 }
  0x79   :  { %816 = vmatprep.subr.bf16.mxu0 %v1236_v38 }
  0x7b   :  { %1066 = vmatpush1.bf16.msra.mxu1 %v1234_v39 }
  0x7c   :  { %817 = vmatpush1.bf16.msra.mxu0 %v1234_v39  ;;  %1051 = vmatprep.subr.bf16.mxu1 %v1239_v40 }
  0x7d   :  { %818 = vmatprep.subr.bf16.mxu0 %v1239_v40 }
  0x7f   :  { %1067 = vmatpush1.bf16.msra.mxu1 %v1237_v41 }
  0x80   :  { %819 = vmatpush1.bf16.msra.mxu0 %v1237_v41 }
  0x82   :  { %831 = vmatmul.mubr.bf16.vlgmr.msra.gmra.mrb[8].mxu1 %v1243_v43 }
  0x83   :  { %821 = vmatmul.mubr.bf16.vlgmr.msra.gmra.mrb[0].mxu0 %v1240_v42 }
 0x115   :  { %v716_v44 = vpop.f32.mrb[0].mxu1 }
 0x116   :  { %v718_v45 = vpop.f32.mrb[1].mxu1 }
 0x117   :  { %v720_v46 = vpop.f32.mrb[2].mxu1 }
 0x118   :  { %v722_v47 = vpop.f32.mrb[3].mxu1 }
 0x11d   :  { %v726_v48 = vpop.f32.mrb[4].mxu1 }
 0x11e   :  { %v779_v49 = vpop.f32.mrb[4].mxu0  ;;  %v728_v51 = vpop.f32.mrb[5].mxu1 }
 0x11f   :  { %v780_v50 = vadd.f32 %v779_v49, %v726_v48  ;;  %v781_v52 = vpop.f32.mrb[5].mxu0  ;;  %v730_v54 = vpop.f32.mrb[6].mxu1 }
 0x120   :  { %v782_v53 = vadd.f32 %v781_v52, %v728_v51  ;;  %v783_v55 = vpop.f32.mrb[6].mxu0  ;;  %v732_v57 = vpop.f32.mrb[7].mxu1 }
 0x121   :  { %v784_v56 = vadd.f32 %v783_v55, %v730_v54  ;;  %v785_v58 = vpop.f32.mrb[7].mxu0 }
 0x122   :  { %v786_v59 = vadd.f32 %v785_v58, %v732_v57 }
 0x155   :  { %v832_v3 = vpop.f32.mrb[8].mxu1 }
 0x156   :  { %v822_v2 = vpop.f32.mrb[0].mxu0  ;;  %v833_v6 = vadd.f32 %v832_v3, %v780_v50  ;;  %v834_v8 = vpop.f32.mrb[9].mxu1 }
 0x157   :  { %v1068_v5 = vadd.f32 %v822_v2, %v716_v44  ;;  %v824_v7 = vpop.f32.mrb[1].mxu0  ;;  %v835_v10 = vadd.f32 %v834_v8, %v782_v53  ;;  %v836_v12 = vpop.f32.mrb[10].mxu1 }
 0x158   :  { %v1069_v9 = vadd.f32 %v824_v7, %v718_v45  ;;  %v826_v11 = vpop.f32.mrb[2].mxu0  ;;  %v884_v14 = vadd.f32 %v873_v1, %v833_v6  ;;  %v837_v16 = vadd.f32 %v836_v12, %v784_v56  ;;  %v838_v18 = vpop.f32.mrb[11].mxu1 }
 0x159   :  { %v880_v13 = vadd.f32 %v1068_v5, %v873_v1  ;;  %v1070_v15 = vadd.f32 %v826_v11, %v720_v46  ;;  %v828_v17 = vpop.f32.mrb[3].mxu0  ;;  %v885_v20 = vadd.f32 %v877_v4, %v835_v10  ;;  %v839_v22 = vadd.f32 %v838_v18, %v786_v59 }
 0x15a   :  { %v881_v19 = vadd.f32 %v1069_v9, %v877_v4  ;;  %v1071_v21 = vadd.f32 %v828_v17, %v722_v47  ;;  %v886_v24 = vadd.f32 %v873_v1, %v837_v16 }
 0x15b   :  { %v882_v23 = vadd.f32 %v1070_v15, %v873_v1  ;;  %v1034_v26 = vpack.c.bf16 %v885_v20, %v884_v14  ;;  %v887_v28 = vadd.f32 %v877_v4, %v839_v22 }
 0x15c   :  { %v1032_v25 = vpack.c.bf16 %v881_v19, %v880_v13  ;;  %v883_v27 = vadd.f32 %v1071_v21, %v877_v4 }
 0x15d   :  { %914 = vst [vmem:[%s1608_s3 + $0x10] sm:$0xff] %v1034_v26  ;;  %v1035_v30 = vpack.c.bf16 %v887_v28, %v886_v24 }
 0x15e   :  { %912 = vst [vmem:[%s1608_s3] sm:$0xff] %v1032_v25  ;;  %v1033_v29 = vpack.c.bf16 %v883_v27, %v882_v23 }
 0x15f   :  { %915 = vst [vmem:[%s1608_s3 + $0x18] sm:$0xff] %v1035_v30 }
 0x160   :  { %913 = vst [vmem:[%s1608_s3 + $0x8] sm:$0xff] %v1033_v29 }

// kernel: vit_forward.24
= control target key start
LH: loop header
LB: loop body
LE: loop exit
PB: predicated region body
PF: predicated region fallthrough
CT: control target
= control target key end

     0   :  { %s2338_s0 = inlined_call_operand.vmem [shape: bf16[48,768], index: 0, kind: input, shape index: {}, may-alias: {0,1,2}]   ;;  %s2339_s1 = inlined_call_operand.vmem [shape: bf16[48,768], index: 1, kind: input, shape index: {}, may-alias: {0,1,2}]   ;;  %s2340_s2 = inlined_call_operand.vmem [shape: bf16[48,768], index: 2, kind: input, shape index: {}, may-alias: {0,1,2}]   ;;  %s2341_s3 = inlined_call_operand.vmem [shape: bf16[48,256], index: 3, kind: output, shape index: {}]  }
   0x1   :  { %2343 = sst [smem:[#allocation7_spill]] %s2341_s3 }
   0x2   :  { %s1939_s12 = smov 0   ;;  %s1941_s13 = smov 0  }
   0x3   :  { %s1943_s14 = smov 0   ;;  %s1945_s15 = smov 0  }
   0x4   :  { %s1947_s16 = smov 0   ;;  %s1949_s17 = smov 0  }
   0x5   :  { %s1951_s18 = smov 0   ;;  %s1953_s19 = smov 0  }
   0x6   :  { %s1955_s20 = smov 0   ;;  %s1957_s21 = smov 0  }
   0x7   :  { %s1959_s22 = smov 0  }
   0x8 LB: > { %s22_s24 = sadd.s32 1, %s1905_s20  ;;  %s25_s25 = sadd.s32 1, %s1909_s21  ;;  %s1913_s22 = sphi %s1959_s22, %s13_s22   ;;  %s1909_s21 = sphi %s1957_s21, %s2361_s21   ;;  %s1905_s20 = sphi %s1955_s20, %s2360_s20   ;;  %s1901_s19 = sphi %s1953_s19, %s2359_s19   ;;  %s1897_s18 = sphi %s1951_s18, %s2358_s18   ;;  %s1893_s17 = sphi %s1949_s17, %s2357_s17   ;;  %s1889_s16 = sphi %s1947_s16, %s2356_s16   ;;  %s1885_s15 = sphi %s1945_s15, %s2355_s15   ;;  %s1881_s14 = sphi %s1943_s14, %s2354_s14   ;;  %s1877_s13 = sphi %s1941_s13, %s2353_s13   ;;  %s1873_s12 = sphi %s1939_s12, %s2352_s12  }
   0x9   : > { %p23_p0 = scmp.ge.s32.totalorder %s22_s24, 2  ;;  %s34_s26 = sadd.s32 1, %s1893_s17 }
   0xa   : > { %p41_p1 = scmp.ne.s32.totalorder %s1893_s17, %s1889_s16  ;;  %p42_p2 = scmp.eq.s32.totalorder %s1913_s22, 0 }
   0xb   : > { %s2363_s24 = smov (%p23_p0, %s22_s24), 0  ;;  %s2365_s25 = smov (!%p23_p0, %s25_s25), %s1909_s21 }
   0xc   : > { %s30_s27 = ssub.s32 %s1905_s20, %s2363_s24  ;;  %p27_p3 = scmp.ge.s32.totalorder %s2365_s25, 2 }
   0xd   : > { %s57_s28 = sadd.s32 2, %s1905_s20  ;;  %p2012_p4 = por %p42_p2, %p41_p1 }
   0xe   : > { %s58_s30 = sadd.s32 2, %s2363_s24  ;;  %s2367_s25 = smov (%p27_p3, %s2365_s25), 0 }
   0xf   : > { %2345 = sst [smem:[#allocation6_spill]] %s2367_s25  ;;  %s60_s4 = ssub.s32 %s57_s28, %s58_s30 }
  0x10   : > { %s64_s5 = sadd.s32 1, %s1885_s15  ;;  %s29_s6 = ssub.s32 %s1909_s21, %s2367_s25 }
  0x11   : > { %p71_p5 = scmp.ne.s32.totalorder %s1885_s15, %s1881_s14  ;;  %s31_s7 = sor.u32 %s30_s27, %s29_s6 }
  0x12   : > { %s61_s8 = sor.u32 %s60_s4, %s29_s6  ;;  %p32_p6 = scmp.eq.s32.totalorder %s31_s7, 0 }
  0x13   : > { %p62_p7 = scmp.eq.s32.totalorder %s61_s8, 0  ;;  %p2026_p8 = por %p71_p5, %p42_p2 }
  0x14   : > { %s87_s10 = sadd.s32 4, %s1905_s20  ;;  %s88_s30 = sadd.s32 4, %s2363_s24 }
  0x15   : > { %s2032_s11 = scalar_select %p32_p6, %s1893_s17, %s34_s26  }
  0x16   : > { %s2035_s28 = scalar_select %p62_p7, %s1885_s15, %s64_s5  }
  0x17   : > { %s94_s23 = sadd.s32 1, %s1877_s13  ;;  %s90_s25 = ssub.s32 %s87_s10, %s88_s30 }
  0x18   : > { %p101_p9 = scmp.ne.s32.totalorder %s1877_s13, %s1873_s12  ;;  %s91_s27 = sor.u32 %s90_s25, %s29_s6 }
  0x19   : > { %s2347_s3 = sadd.s32 4294967295, %s1913_s22   ;;  %p92_p11 = scmp.eq.s32.totalorder %s91_s27, 0 }
  0x1a   : > { %p133_p10 = scmp.eq.s32.totalorder %s2347_s3, 3  ;;  %p2045_p12 = por %p101_p9, %p42_p2 }
  0x1b   : > { %s2057_s26 = scalar_select %p92_p11, %s1877_s13, %s94_s23  }
  0x1c   : > { %p2052_p13 = por %p133_p10, %p41_p1  ;;  %p1467_p0 = scmp.ge.s32.totalorder %s1913_s22, 4 }
  0x1e   : > { %155 = sbr.rel (%p1467_p0) target bundleno = 65 (0x41), region = 16 }
  0x25   : > { %158 = sbr.rel (!%p2012_p4) target bundleno = 47 (0x2f), region = 20  ;;  %s160_s3 = sand.u32 (%p2012_p4), 1, %s1893_s17  }
  0x26   : > { %s1655_s25 = smul.u32 (%p2012_p4), 12, %s160_s3 }
  0x27   : > { %s1662_s5 = smul.u32 (%p2012_p4), 18, %s1909_s21 }
  0x28   : > { %s162_s23 = scalar_lea.vmem (%p2012_p4), [#allocation2], %s1655_s25 }
  0x29   : > { %s165_s6 = sadd.s32 (%p2012_p4), %s1905_s20, %s1662_s5 }
  0x2a   : > { %s1468_s8 = sshll.u32 (%p2012_p4), %s165_s6, 2 }
  0x2b   : > { %s167_s27 = scalar_lea.vmem (%p2012_p4), %s2338_s0, %s1468_s8 }
  0x2c   : > { %v183_v0 = vld [vmem:[%s167_s27] sm:$0xf]  ;;  %v185_v1 = vld [vmem:[%s167_s27 + $0x18] sm:$0xf]  ;;  %v187_v2 = vld [vmem:[%s167_s27 + $0x30] sm:$0xf] }
  0x2d   : > { %184 = vst [vmem:[%s162_s23] sm:$0xf] %v183_v0  ;;  %186 = vst [vmem:[%s162_s23 + $0x4] sm:$0xf] %v185_v1 }
  0x2e   : > { %188 = vst [vmem:[%s162_s23 + $0x8] sm:$0xf] %v187_v2 }
  0x2f PF: > { %217 = sbr.rel (!%p2026_p8) target bundleno = 56 (0x38), region = 61  ;;  %s219_s29 = sand.u32 (%p2026_p8), 1, %s1885_s15  }
  0x30   : > { %s1370_s3 = smul.u32 (%p2026_p8), 18, %s1909_s21 }
  0x31   : > { %s1657_s5 = smul.u32 (%p2026_p8), 12, %s219_s29 }
  0x32   : > { %s1371_s6 = sadd.s32 (%p2026_p8), %s1905_s20, %s1370_s3 }
  0x33   : > { %s1469_s10 = sshll.u32 (%p2026_p8), %s1371_s6, 2  ;;  %s221_s25 = scalar_lea.vmem (%p2026_p8), [#allocation3], %s1657_s5 }
  0x34   : > { %s1373_s27 = scalar_lea.vmem (%p2026_p8), %s2339_s1, %s1469_s10 }
  0x35   : > { %v1470_v3 = vld [vmem:[%s1373_s27 + $0x8] sm:$0xf] (%p2026_p8)  ;;  %v1471_v4 = vld [vmem:[%s1373_s27 + $0x20] sm:$0xf] (%p2026_p8)  ;;  %v1472_v5 = vld [vmem:[%s1373_s27 + $0x38] sm:$0xf] (%p2026_p8) }
  0x36   : > { %244 = vst [vmem:[%s221_s25] sm:$0xf] %v1470_v3  ;;  %246 = vst [vmem:[%s221_s25 + $0x4] sm:$0xf] %v1471_v4 }
  0x37   : > { %248 = vst [vmem:[%s221_s25 + $0x8] sm:$0xf] %v1472_v5 }
  0x38 PF: > { %277 = sbr.rel (!%p2045_p12) target bundleno = 65 (0x41), region = 102  ;;  %s279_s9 = sand.u32 (%p2045_p12), 1, %s1877_s13  }
  0x39   : > { %s1377_s23 = smul.u32 (%p2045_p12), 18, %s1909_s21 }
  0x3a   : > { %s1658_s29 = smul.u32 (%p2045_p12), 12, %s279_s9 }
  0x3b   : > { %s1378_s3 = sadd.s32 (%p2045_p12), %s1905_s20, %s1377_s23 }
  0x3c   : > { %s1473_s6 = sshll.u32 (%p2045_p12), %s1378_s3, 2  ;;  %s281_s5 = scalar_lea.vmem (%p2045_p12), [#allocation4], %s1658_s29 }
  0x3d   : > { %s1380_s30 = scalar_lea.vmem (%p2045_p12), %s2340_s2, %s1473_s6 }
  0x3e   : > { %v1474_v6 = vld [vmem:[%s1380_s30 + $0x10] sm:$0xf] (%p2045_p12)  ;;  %v1475_v7 = vld [vmem:[%s1380_s30 + $0x28] sm:$0xf] (%p2045_p12)  ;;  %v1476_v8 = vld [vmem:[%s1380_s30 + $0x40] sm:$0xf] (%p2045_p12) }
  0x3f   : > { %304 = vst [vmem:[%s281_s5] sm:$0xf] %v1474_v6  ;;  %306 = vst [vmem:[%s281_s5 + $0x4] sm:$0xf] %v1475_v7 }
  0x40   : > { %308 = vst [vmem:[%s281_s5 + $0x8] sm:$0xf] %v1476_v8 }
  0x41 PF: > { %p1477_p1 = scmp.ge.s32.totalorder %s1913_s22, 1  ;;  %p336_p2 = scmp.lt.s32.totalorder %s1913_s22, 5 }
  0x43   : > { %p337_p3 = pnand %p1477_p1, %p336_p2 }
  0x44   : > { %s350_s4 = sand.u32 (!%p337_p3), 1, %s1881_s14   ;;  %s343_s27 = sand.u32 (!%p337_p3), 1, %s1889_s16   ;;  %vm423_vm0 = vcmask (!%p337_p3), 261120   ;;  %v394_v15 = vlaneseq (!%p337_p3)  ;;  %v1915_v18 = vmov (!%p337_p3), -1e+30   ;;  %vm490_vm2 = vcmask (!%p337_p3), 195584  }
  0x45   : > { %340 = sbr.rel (%p337_p3) target bundleno = 2008 (0x7d8), region = 143  ;;  %s1916_s14 = smov (!%p337_p3), 96   ;;  %vm535_vm3 = vcmask (!%p337_p3), 1043456   ;;  %vm606_vm4 = vcmask (!%p337_p3), 257024   ;;  %vm833_vm5 = vcmask (!%p337_p3), 519424   ;;  %vm1060_vm6 = vcmask (!%p337_p3), 781824  }
  0x46   : > { %s1660_s25 = smul.u32 (!%p337_p3), 12, %s350_s4  ;;  %v395_v16 = vand.u32 (!%p337_p3), 127, %v394_v15  ;;  %s357_s16 = sand.u32 (!%p337_p3), 1, %s1873_s12   ;;  %vm1287_vm7 = vcmask (!%p337_p3), 1044224  }
  0x47   : > { %s2088_s9 = smul.u32 (!%p337_p3), 12, %s343_s27  ;;  %s1917_s12 = smov (!%p337_p3), 64  }
  0x48   : > { %s2090_s23 = scalar_lea.vmem (!%p337_p3), [#allocation3], %s1660_s25  ;;  %vm396_vm1 = vcmp.lt.s32.totalorder (!%p337_p3), %v395_v16, 17  ;;  %s1661_s3 = smul.u32 (!%p337_p3), 12, %s357_s16 }
  0x49   : > { %v1755_v9 = vld [vmem:[%s2090_s23] sm:$0xff] (!%p337_p3)   ;;  %v1756_v10 = vld [vmem:[%s2090_s23 + $0x8] ss:$0 sps:$4 sm:$0xff] (!%p337_p3)   ;;  %s2095_s29 = scalar_lea.vmem (!%p337_p3), [#allocation2], %s2088_s9  ;;  %v2105_v19 = vsel (!%p337_p3), %vm396_vm1, 0.0, %v1915_v18  ;;  %s1918_s10 = smov (!%p337_p3), 32  }
  0x4a   : > { %1643 = vmatprep.subr.msk.bf16.mxu0 (!%p337_p3), %vm423_vm0, %v1755_v9  ;;  %v431_v11 = vsel (!%p337_p3), %vm423_vm0, %v1755_v9, 0  ;;  %v1757_v12 = vld [vmem:[%s2095_s29] sm:$0xff] (!%p337_p3)   ;;  %v434_v13 = vsel (!%p337_p3), %vm423_vm0, %v1756_v10, 0  ;;  %v1758_v14 = vld [vmem:[%s2095_s29 + $0x8] ss:$0 sps:$4 sm:$0xff] (!%p337_p3)   ;;  %v1759_v32 = vld [vmem:[%s2090_s23] sm:$0xff] (!%p337_p3)  }
  0x4b   : > { %1580 = vmatpush3.bf16.xpose.msra.mxu0 (!%p337_p3), %v431_v11  ;;  %1583 = vmatprep.mubr.msk.bf16.mxu0 (!%p337_p3), %vm423_vm0, %v1757_v12  ;;  %v1761_v33 = vld [vmem:[%s2095_s29] sm:$0xff] (!%p337_p3)   ;;  %v1762_v34 = vld [vmem:[%s2095_s29 + $0x8] ss:$0 sps:$4 sm:$0xff] (!%p337_p3)   ;;  %s2120_s6 = scalar_lea.vmem (!%p337_p3), [#allocation4], %s1661_s3  ;;  %s2278_s8 = scalar_lea.vmem (!%p337_p3), [#allocation5], %s2088_s9 }
  0x4c   : > { %1644 = vmatprep.subr.msk.bf16.mxu0 %vm423_vm0, %v1756_v10  ;;  %v1760_v35 = vld [vmem:[%s2090_s23 + $0x8] ss:$0 sps:$4 sm:$0xff]   ;;  %v1763_v36 = vld [vmem:[%s2120_s6] sm:$0xff]   ;;  %v1764_v37 = vld [vmem:[%s2120_s6 + $0x8] ss:$0 sps:$4 sm:$0xff]   ;;  %s1546_s30 = smul.u32 (%p2052_p13), 6, %s1901_s19 }
  0x4d   : > { %1587 = vmatprep.subr.bf16.mxu1 %v1763_v36  ;;  %v537_v38 = vsel %vm535_vm3, %v1764_v37, 0  ;;  %v1766_v12 = vld [vmem:[%s2120_s6 + $0x8] ss:$0 sps:$4 sm:$0xff]   ;;  %v1768_v15 = vld [vmem:[%s2090_s23 + $0x8] ss:$0 sps:$4 sm:$0xff]   ;;  %s2350_s9 = sld [smem:[#allocation7_spill]] (%p2052_p13) }
  0x4e   : > { %1588 = vmatpush3.bf16.msra.mxu1 %v1763_v36  ;;  %v1769_v16 = vld [vmem:[%s2095_s29] sm:$0xff]   ;;  %v1771_v18 = vld [vmem:[%s2120_s6 + $0x8] ss:$0 sps:$4 sm:$0xff]   ;;  %s1300_s5 = sadd.s32 (%p2052_p13), %s1897_s18, %s1546_s30 }
  0x4f   : > { %1645 = vmatprep.subr.msk.bf16.mxu1 %vm535_vm3, %v1764_v37  ;;  %s1531_s4 = sshll.u32 (%p2052_p13), %s1300_s5, 2 }
  0x52   : > { %1590 = vmatpush3.bf16.msra.mxu1 %v537_v38 }
  0x53   : > { %1582 = vmatpush3.bf16.xpose.msra.mxu0 %v434_v13  ;;  %v1767_v13 = vld [vmem:[%s2090_s23] sm:$0xff]  }
  0x5a   : > { %1584 = vmatmul.mubr.msk.bf16.vlgmr.msra.gmra.mrb[0].mxu0 %vm423_vm0, %v1758_v14  ;;  %v1765_v14 = vld [vmem:[%s2120_s6] sm:$0xff]  }
 0x12d   : > { %v1585_v17 = vpop.f32.mrb[0].mxu0 }
 0x12e   : > { %v486_v20 = vmul.f32 0.17677669, %v1585_v17  ;;  %v470_v21 = vpop.f32.mrb[1].mxu0  ;;  %v1770_v17 = vld [vmem:[%s2095_s29 + $0x8] ss:$0 sps:$4 sm:$0xff]  }
 0x12f   : > { %v484_v22 = vmul.f32 0.17677669, %v470_v21  ;;  %v1586_v23 = vpop.f32.mrb[2].mxu0 }
 0x130   : > { %v473_v24 = vpop.f32.mrb[3].mxu0  ;;  %v489_v25 = vadd.f32 %v486_v20, %v2105_v19 }
 0x131   : > { %v485_v26 = vmul.f32 0.17677669, %v473_v24  ;;  %v487_v27 = vadd.f32 %v484_v22, %v2105_v19 }
 0x132   : > { %v497_v28 = vsel %vm490_vm2, %v489_v25, -inf }
 0x133   : > { %498 = vmax.xlane.f32.xlu1 %v497_v28  ;;  %v491_v29 = vsel %vm490_vm2, %v487_v27, -inf  ;;  %v488_v30 = vadd.f32 %v485_v26, %v2105_v19 }
 0x134   : > { %492 = vmax.xlane.f32.xlu0 %v491_v29 }
 0x135   : > { %v494_v31 = vsel %vm490_vm2, %v488_v30, -inf }
 0x138   : > { %495 = vmax.xlane.f32.xlu0 %v494_v31 }
 0x144   : > { %639 = vrot.lane.b32.xlu1 %v1759_v32, %s1916_s14 }
 0x148   : > { %627 = vrot.lane.b32.xlu1 %v1761_v33, %s1916_s14 }
 0x14c   : > { %629 = vrot.lane.b32.xlu1 %v1762_v34, %s1916_s14 }
 0x14e   : > { %641 = vrot.lane.b32.xlu0 %v1760_v35, %s1916_s14 }
 0x1c0   : > { %v499_v39 = vpop.xlane.xlu1 %498 }
 0x1c1   : > { %v502_v40 = vsub.f32 %v489_v25, %v499_v39  ;;  %v493_v41 = vpop.xlane.xlu0 %492 }
 0x1c2   : > { %v500_v42 = vsub.f32 %v487_v27, %v493_v41 }
 0x1c3   : > { %v507_v43 = vmul.f32 1.442695, %v502_v40 }
 0x1c4   : > { %v640_v44 = vpop.permute.xlu1 %639  ;;  %v503_v45 = vmul.f32 1.442695, %v500_v42 }
 0x1c5   : > { %v496_v46 = vpop.xlane.xlu0 %495  ;;  %1646 = vmatprep.subr.msk.bf16.mxu1 %vm423_vm0, %v640_v44  ;;  %1779 = vpow2.f32 %v507_v43  ;;  %v650_v53 = vsel %vm423_vm0, %v640_v44, 0 }
 0x1c6   : > { %v501_v47 = vsub.f32 %v488_v30, %v496_v46  ;;  %1781 = vpow2.f32 %v503_v45 }
 0x1c8   : > { %v505_v48 = vmul.f32 1.442695, %v501_v47  ;;  %v628_v55 = vpop.permute.xlu1 %627 }
 0x1c9   : > { %v642_v56 = vpop.permute.xlu0 %641 }
 0x1ca   : > { %1783 = vpow2.f32 %v505_v48  ;;  %v653_v57 = vsel %vm423_vm0, %v642_v56, 0 }
 0x1cc   : > { %v630_v58 = vpop.permute.xlu1 %629 }
 0x1cf   : > { %v2129_v49 = vpop.eup %1779 }
 0x1d0   : > { %v2131_v50 = vpop.eup %1781  ;;  %v519_v54 = vpack.c.bf16 %v2129_v49, %v2129_v49 }
 0x1d4   : > { %v2133_v51 = vpop.eup %1783 }
 0x1d5   : > { %v518_v52 = vpack.c.bf16 %v2133_v51, %v2131_v50 }
 0x1d7   : > { %1591 = vmatprep.mubr.msk.bf16.mxu1 %vm490_vm2, %v518_v52 }
 0x1d8   : > { %1592 = vmatmul.mubr.msk.bf16.vlgmr.msra.gmra.mrb[0].mxu1 %vm490_vm2, %v519_v54 }
 0x1d9   : > { %1596 = vmatpush3.bf16.xpose.msra.mxu1 %v650_v53  ;;  %1599 = vmatprep.mubr.msk.bf16.mxu1 %vm423_vm0, %v628_v55 }
 0x1da   : > { %1647 = vmatprep.subr.msk.bf16.mxu1 %vm423_vm0, %v642_v56 }
 0x1e1   : > { %1598 = vmatpush3.bf16.xpose.msra.mxu1 %v653_v57 }
 0x1e8   : > { %1600 = vmatmul.mubr.msk.bf16.vlgmr.msra.gmra.mrb[4].mxu1 %vm423_vm0, %v630_v58 }
 0x2ab   : > { %v2146_v59 = vpop.f32.mrb[0].mxu1 }
 0x2ac   : > { %v2148_v60 = vpop.f32.mrb[1].mxu1 }
 0x2ad   : > { %v1594_v61 = vpop.f32.mrb[2].mxu1 }
 0x2ae   : > { %v2150_v62 = vpop.f32.mrb[3].mxu1 }
 0x2bb   : > { %v1601_v63 = vpop.f32.mrb[4].mxu1 }
 0x2bc   : > { %v705_v0 = vmul.f32 0.17677669, %v1601_v63  ;;  %v689_v1 = vpop.f32.mrb[5].mxu1 }
 0x2bd   : > { %v703_v2 = vmul.f32 0.17677669, %v689_v1  ;;  %v1602_v3 = vpop.f32.mrb[6].mxu1 }
 0x2be   : > { %v692_v4 = vpop.f32.mrb[7].mxu1  ;;  %v708_v5 = vadd.f32 %v705_v0, %v2105_v19  ;;  %v1775_v3 = vld [vmem:[%s2095_s29] sm:$0xff]  }
 0x2bf   : > { %v704_v6 = vmul.f32 0.17677669, %v692_v4  ;;  %v706_v7 = vadd.f32 %v703_v2, %v2105_v19  ;;  %v1773_v2 = vld [vmem:[%s2090_s23] sm:$0xff]   ;;  %v1772_v4 = vld [vmem:[%s2120_s6] sm:$0xff]  }
 0x2c0   : > { %v715_v8 = vsel %vm490_vm2, %v708_v5, -inf }
 0x2c1   : > { %716 = vmax.xlane.f32.xlu0 %v715_v8  ;;  %v709_v9 = vsel %vm490_vm2, %v706_v7, -inf  ;;  %v707_v10 = vadd.f32 %v704_v6, %v2105_v19  ;;  %v1776_v6 = vld [vmem:[%s2095_s29 + $0x8] ss:$0 sps:$4 sm:$0xff]  }
 0x2c2   : > { %710 = vmax.xlane.f32.xlu1 %v709_v9 }
 0x2c3   : > { %v712_v11 = vsel %vm490_vm2, %v707_v10, -inf }
 0x2c5   : > { %713 = vmax.xlane.f32.xlu0 %v712_v11 }
 0x2d3   : > { %748 = vrot.lane.b32.xlu1 %v1766_v12, %s1916_s14 }
 0x2d7   : > { %866 = vrot.lane.b32.xlu1 %v1767_v13, %s1917_s12 }
 0x2db   : > { %746 = vrot.lane.b32.xlu0 %v1765_v14, %s1916_s14  ;;  %868 = vrot.lane.b32.xlu1 %v1768_v15, %s1917_s12 }
 0x2df   : > { %854 = vrot.lane.b32.xlu0 %v1769_v16, %s1917_s12  ;;  %856 = vrot.lane.b32.xlu1 %v1770_v17, %s1917_s12 }
 0x2e3   : > { %975 = vrot.lane.b32.xlu1 %v1771_v18, %s1917_s12 }
 0x34e   : > { %v717_v20 = vpop.xlane.xlu0 %716 }
 0x34f   : > { %v720_v21 = vsub.f32 %v708_v5, %v717_v20  ;;  %v711_v22 = vpop.xlane.xlu1 %710  ;;  %v1774_v5 = vld [vmem:[%s2090_s23 + $0x8] ss:$0 sps:$4 sm:$0xff]   ;;  %s1302_s23 = scalar_lea.vmem (%p2052_p13), %s2350_s9, %s1531_s4 }
 0x350   : > { %v718_v23 = vsub.f32 %v706_v7, %v711_v22 }
 0x351   : > { %v725_v24 = vmul.f32 1.442695, %v720_v21 }
 0x352   : > { %v721_v25 = vmul.f32 1.442695, %v718_v23  ;;  %v714_v26 = vpop.xlane.xlu0 %713 }
 0x353   : > { %v719_v27 = vsub.f32 %v707_v10, %v714_v26  ;;  %1785 = vpow2.f32 %v725_v24  ;;  %v749_v30 = vpop.permute.xlu1 %748 }
 0x354   : > { %1787 = vpow2.f32 %v721_v25  ;;  %v758_v31 = vsel %vm535_vm3, %v749_v30, 0 }
 0x355   : > { %v723_v28 = vmul.f32 1.442695, %v719_v27 }
 0x356   : > { %v747_v29 = vpop.permute.xlu0 %746 }
 0x357   : > { %1789 = vpow2.f32 %v723_v28  ;;  %1603 = vmatprep.subr.bf16.mxu0 %v747_v29  ;;  %v867_v32 = vpop.permute.xlu1 %866 }
 0x358   : > { %1604 = vmatpush3.bf16.msra.mxu0 %v747_v29  ;;  %v877_v37 = vsel %vm423_vm0, %v867_v32, 0 }
 0x359   : > { %1648 = vmatprep.subr.msk.bf16.mxu0 %vm535_vm3, %v749_v30 }
 0x35a   : > { %v855_v39 = vpop.permute.xlu0 %854 }
 0x35b   : > { %v869_v40 = vpop.permute.xlu1 %868 }
 0x35c   : > { %1606 = vmatpush3.bf16.msra.mxu0 %v758_v31  ;;  %v880_v41 = vsel %vm423_vm0, %v869_v40, 0 }
 0x35d   : > { %1649 = vmatprep.subr.msk.bf16.mxu0 %vm423_vm0, %v867_v32  ;;  %v2175_v33 = vpop.eup %1785 }
 0x35e   : > { %v2177_v34 = vpop.eup %1787  ;;  %v737_v38 = vpack.c.bf16 %v2175_v33, %v2175_v33 }
 0x35f   : > { %v857_v42 = vpop.permute.xlu1 %856 }
 0x361   : > { %v2179_v35 = vpop.eup %1789 }
 0x362   : > { %v736_v36 = vpack.c.bf16 %v2179_v35, %v2177_v34 }
 0x363   : > { %v976_v7 = vpop.permute.xlu1 %975 }
 0x364   : > { %1607 = vmatprep.mubr.msk.bf16.mxu0 %vm490_vm2, %v736_v36  ;;  %v985_v20 = vsel %vm535_vm3, %v976_v7, 0 }
 0x365   : > { %1608 = vmatmul.mubr.msk.bf16.vlgmr.msra.gmra.mrb[4].mxu0 %vm490_vm2, %v737_v38 }
 0x366   : > { %1612 = vmatpush3.bf16.xpose.msra.mxu0 %v877_v37  ;;  %1615 = vmatprep.mubr.msk.bf16.mxu0 %vm423_vm0, %v855_v39 }
 0x367   : > { %1650 = vmatprep.subr.msk.bf16.mxu0 %vm423_vm0, %v869_v40 }
 0x36e   : > { %1614 = vmatpush3.bf16.xpose.msra.mxu0 %v880_v41 }
 0x375   : > { %1616 = vmatmul.mubr.msk.bf16.vlgmr.msra.gmra.mrb[8].mxu0 %vm423_vm0, %v857_v42 }
 0x438   : > { %v2192_v43 = vpop.f32.mrb[4].mxu0 }
 0x439   : > { %v2194_v44 = vpop.f32.mrb[5].mxu0 }
 0x43a   : > { %v1610_v45 = vpop.f32.mrb[6].mxu0 }
 0x43b   : > { %v2196_v46 = vpop.f32.mrb[7].mxu0 }
 0x448   : > { %v1617_v47 = vpop.f32.mrb[8].mxu0 }
 0x449   : > { %v932_v48 = vmul.f32 0.17677669, %v1617_v47  ;;  %v916_v52 = vpop.f32.mrb[9].mxu0 }
 0x44a   : > { %v930_v53 = vmul.f32 0.17677669, %v916_v52  ;;  %v1618_v54 = vpop.f32.mrb[10].mxu0 }
 0x44b   : > { %v919_v55 = vpop.f32.mrb[11].mxu0  ;;  %v935_v56 = vadd.f32 %v932_v48, %v2105_v19 }
 0x44c   : > { %v931_v57 = vmul.f32 0.17677669, %v919_v55  ;;  %v933_v61 = vadd.f32 %v930_v53, %v2105_v19 }
 0x44d   : > { %v942_v58 = vsel %vm490_vm2, %v935_v56, -inf }
 0x44e   : > { %943 = vmax.xlane.f32.xlu0 %v942_v58  ;;  %v934_v63 = vadd.f32 %v931_v57, %v2105_v19  ;;  %v936_v1 = vsel %vm490_vm2, %v933_v61, -inf  ;;  %v1777_v57 = vld [vmem:[%s2120_s6 + $0x8] ss:$0 sps:$4 sm:$0xff]   ;;  %v1778_v58 = vld [vmem:[%s2120_s6] sm:$0xff]  }
 0x450   : > { %v939_v0 = vsel %vm490_vm2, %v934_v63, -inf }
 0x451   : > { %940 = vmax.xlane.f32.xlu1 %v939_v0  ;;  %v733_v0 = vsel %vm490_vm2, %v2175_v33, 0.0 }
 0x452   : > { %937 = vmax.xlane.f32.xlu0 %v936_v1 }
 0x462   : > { %1093 = vrot.lane.b32.xlu1 %v1773_v2, %s1918_s10 }
 0x466   : > { %1081 = vrot.lane.b32.xlu1 %v1775_v3, %s1918_s10 }
 0x468   : > { %973 = vrot.lane.b32.xlu0 %v1772_v4, %s1917_s12 }
 0x46c   : > { %1095 = vrot.lane.b32.xlu0 %v1774_v5, %s1918_s10 }
 0x470   : > { %1083 = vrot.lane.b32.xlu0 %v1776_v6, %s1918_s10 }
 0x4db   : > { %v944_v8 = vpop.xlane.xlu0 %943 }
 0x4dc   : > { %v947_v9 = vsub.f32 %v935_v56, %v944_v8 }
 0x4de   : > { %v952_v10 = vmul.f32 1.442695, %v947_v9  ;;  %v941_v11 = vpop.xlane.xlu1 %940 }
 0x4df   : > { %v946_v12 = vsub.f32 %v934_v63, %v941_v11  ;;  %v938_v13 = vpop.xlane.xlu0 %937 }
 0x4e0   : > { %v945_v14 = vsub.f32 %v933_v61, %v938_v13  ;;  %1791 = vpow2.f32 %v952_v10  ;;  %v727_v61 = vsel %vm490_vm2, %v2177_v34, 0.0 }
 0x4e1   : > { %v950_v15 = vmul.f32 1.442695, %v946_v12 }
 0x4e2   : > { %v948_v16 = vmul.f32 1.442695, %v945_v14  ;;  %v1094_v18 = vpop.permute.xlu1 %1093 }
 0x4e3   : > { %1793 = vpow2.f32 %v950_v15  ;;  %v974_v17 = vpop.permute.xlu0 %973  ;;  %v1104_v25 = vsel %vm423_vm0, %v1094_v18, 0 }
 0x4e4   : > { %1795 = vpow2.f32 %v948_v16  ;;  %1619 = vmatprep.subr.bf16.mxu1 %v974_v17 }
 0x4e5   : > { %1620 = vmatpush3.bf16.msra.mxu1 %v974_v17 }
 0x4e6   : > { %1651 = vmatprep.subr.msk.bf16.mxu1 %vm535_vm3, %v976_v7  ;;  %v1082_v27 = vpop.permute.xlu1 %1081 }
 0x4e7   : > { %v1096_v28 = vpop.permute.xlu0 %1095 }
 0x4e8   : > { %v1107_v29 = vsel %vm423_vm0, %v1096_v28, 0 }
 0x4e9   : > { %1622 = vmatpush3.bf16.msra.mxu1 %v985_v20 }
 0x4ea   : > { %1652 = vmatprep.subr.msk.bf16.mxu1 %vm423_vm0, %v1094_v18  ;;  %v1792_v21 = vpop.eup %1791 }
 0x4eb   : > { %v964_v26 = vpack.c.bf16 %v1792_v21, %v1792_v21  ;;  %v1084_v30 = vpop.permute.xlu0 %1083  ;;  %v960_v1 = vsel %vm490_vm2, %v1792_v21, 0.0  ;;  %v509_v21 = vsel %vm490_vm2, %v2131_v50, 0.0 }
 0x4ed   : > { %v1794_v22 = vpop.eup %1793 }
 0x4ee   : > { %v1796_v23 = vpop.eup %1795  ;;  %v957_v2 = vsel %vm490_vm2, %v1794_v22, 0.0 }
 0x4ef   : > { %v963_v24 = vpack.c.bf16 %v1794_v22, %v1796_v23  ;;  %v954_v63 = vsel %vm490_vm2, %v1796_v23, 0.0  ;;  %v512_v22 = vsel %vm490_vm2, %v2133_v51, 0.0  ;;  %v515_v23 = vsel %vm490_vm2, %v2129_v49, 0.0 }
 0x4f1   : > { %1623 = vmatprep.mubr.msk.bf16.mxu1 %vm490_vm2, %v963_v24 }
 0x4f2   : > { %1624 = vmatmul.mubr.msk.bf16.vlgmr.msra.gmra.mrb[8].mxu1 %vm490_vm2, %v964_v26 }
 0x4f3   : > { %1628 = vmatpush3.bf16.xpose.msra.mxu1 %v1104_v25  ;;  %1631 = vmatprep.mubr.msk.bf16.mxu1 %vm423_vm0, %v1082_v27 }
 0x4f4   : > { %1653 = vmatprep.subr.msk.bf16.mxu1 %vm423_vm0, %v1096_v28 }
 0x4fb   : > { %1630 = vmatpush3.bf16.xpose.msra.mxu1 %v1107_v29 }
 0x502   : > { %1632 = vmatmul.mubr.msk.bf16.vlgmr.msra.gmra.mrb[12].mxu1 %vm423_vm0, %v1084_v30 }
 0x5c5   : > { %v2224_v31 = vpop.f32.mrb[8].mxu1 }
 0x5c6   : > { %v2226_v32 = vpop.f32.mrb[9].mxu1 }
 0x5c7   : > { %v1626_v36 = vpop.f32.mrb[10].mxu1 }
 0x5c8   : > { %v2228_v37 = vpop.f32.mrb[11].mxu1 }
 0x5d5   : > { %v1633_v38 = vpop.f32.mrb[12].mxu1 }
 0x5d6   : > { %v1159_v39 = vmul.f32 0.17677669, %v1633_v38  ;;  %v1143_v40 = vpop.f32.mrb[13].mxu1 }
 0x5d7   : > { %v1157_v41 = vmul.f32 0.17677669, %v1143_v40  ;;  %v1634_v42 = vpop.f32.mrb[14].mxu1 }
 0x5d8   : > { %v1146_v45 = vpop.f32.mrb[15].mxu1  ;;  %v1162_v47 = vadd.f32 %v1159_v39, %v2105_v19 }
 0x5d9   : > { %v1158_v48 = vmul.f32 0.17677669, %v1146_v45  ;;  %v1160_v52 = vadd.f32 %v1157_v41, %v2105_v19 }
 0x5da   : > { %v1169_v53 = vsel %vm490_vm2, %v1162_v47, -inf }
 0x5db   : > { %v1161_v54 = vadd.f32 %v1158_v48, %v2105_v19  ;;  %1170 = vmax.xlane.f32.xlu0 %v1169_v53  ;;  %v1163_v55 = vsel %vm490_vm2, %v1160_v52, -inf  ;;  %v730_v19 = vsel %vm490_vm2, %v2179_v35, 0.0 }
 0x5dc   : > { %1164 = vmax.xlane.f32.xlu1 %v1163_v55 }
 0x5dd   : > { %v1166_v56 = vsel %vm490_vm2, %v1161_v54, -inf }
 0x5df   : > { %1167 = vmax.xlane.f32.xlu0 %v1166_v56 }
 0x5ed   : > { %1202 = vrot.lane.b32.xlu1 %v1777_v57, %s1918_s10 }
 0x5f5   : > { %1200 = vrot.lane.b32.xlu0 %v1778_v58, %s1918_s10 }
 0x611   : > { %728 = vadd.xlane.f32.xlu1 %v727_v61 }
 0x614   : > { %731 = vadd.xlane.f32.xlu0 %v730_v19 }
 0x615   : > { %955 = vadd.xlane.f32.xlu1 %v954_v63 }
 0x618   : > { %734 = vadd.xlane.f32.xlu0 %v733_v0 }
 0x619   : > { %961 = vadd.xlane.f32.xlu1 %v960_v1 }
 0x61c   : > { %958 = vadd.xlane.f32.xlu0 %v957_v2 }
 0x668   : > { %v1171_v3 = vpop.xlane.xlu0 %1170 }
 0x669   : > { %v1174_v34 = vsub.f32 %v1162_v47, %v1171_v3  ;;  %v1165_v4 = vpop.xlane.xlu1 %1164 }
 0x66a   : > { %v1172_v5 = vsub.f32 %v1160_v52, %v1165_v4 }
 0x66b   : > { %v1179_v6 = vmul.f32 1.442695, %v1174_v34 }
 0x66c   : > { %v1175_v35 = vmul.f32 1.442695, %v1172_v5  ;;  %v1168_v7 = vpop.xlane.xlu0 %1167 }
 0x66d   : > { %v1173_v8 = vsub.f32 %v1161_v54, %v1168_v7  ;;  %v1203_v33 = vpop.permute.xlu1 %1202 }
 0x66e   : > { %1797 = vpow2.f32 %v1175_v35  ;;  %v1212_v11 = vsel %vm535_vm3, %v1203_v33, 0 }
 0x66f   : > { %v1177_v9 = vmul.f32 1.442695, %v1173_v8  ;;  %1799 = vpow2.f32 %v1179_v6 }
 0x670   : > { %v1201_v10 = vpop.permute.xlu0 %1200 }
 0x671   : > { %1801 = vpow2.f32 %v1177_v9  ;;  %1635 = vmatprep.subr.bf16.mxu0 %v1201_v10 }
 0x672   : > { %1636 = vmatpush3.bf16.msra.mxu0 %v1201_v10 }
 0x673   : > { %1654 = vmatprep.subr.msk.bf16.mxu0 %vm535_vm3, %v1203_v33 }
 0x676   : > { %1638 = vmatpush3.bf16.msra.mxu0 %v1212_v11 }
 0x678   : > { %v1798_v12 = vpop.eup %1797 }
 0x679   : > { %v1181_v13 = vsel %vm490_vm2, %v1798_v12, 0.0  ;;  %v1800_v14 = vpop.eup %1799 }
 0x67a   : > { %1182 = vadd.xlane.f32.xlu0 %v1181_v13  ;;  %v1187_v18 = vsel %vm490_vm2, %v1800_v14, 0.0  ;;  %v1191_v20 = vpack.c.bf16 %v1800_v14, %v1800_v14 }
 0x67b   : > { %v1802_v15 = vpop.eup %1801 }
 0x67c   : > { %v1184_v16 = vsel %vm490_vm2, %v1802_v15, 0.0  ;;  %v1190_v17 = vpack.c.bf16 %v1802_v15, %v1798_v12 }
 0x67d   : > { %1185 = vadd.xlane.f32.xlu1 %v1184_v16 }
 0x67e   : > { %1188 = vadd.xlane.f32.xlu0 %v1187_v18  ;;  %1639 = vmatprep.mubr.msk.bf16.mxu0 %vm490_vm2, %v1190_v17 }
 0x67f   : > { %1640 = vmatmul.mubr.msk.bf16.vlgmr.msra.gmra.mrb[12].mxu0 %vm490_vm2, %v1191_v20 }
 0x681   : > { %510 = vadd.xlane.f32.xlu1 %v509_v21 }
 0x682   : > { %513 = vadd.xlane.f32.xlu0 %v512_v22 }
 0x685   : > { %516 = vadd.xlane.f32.xlu1 %v515_v23 }
 0x69e   : > { %v729_v24 = vpop.xlane.xlu1 %728 }
 0x69f   : > { %1803 = vrcp.f32 %v729_v24 }
 0x6a1   : > { %v732_v25 = vpop.xlane.xlu0 %731 }
 0x6a2   : > { %1805 = vrcp.f32 %v732_v25  ;;  %v956_v26 = vpop.xlane.xlu1 %955 }
 0x6a3   : > { %1807 = vrcp.f32 %v956_v26 }
 0x6a5   : > { %v735_v27 = vpop.xlane.xlu0 %734 }
 0x6a6   : > { %1809 = vrcp.f32 %v735_v27  ;;  %v962_v28 = vpop.xlane.xlu1 %961 }
 0x6a7   : > { %1811 = vrcp.f32 %v962_v28 }
 0x6a9   : > { %v1804_v29 = vpop.eup %1803  ;;  %v959_v50 = vpop.xlane.xlu0 %958 }
 0x6aa   : > { %1813 = vrcp.f32 %v959_v50  ;;  %v809_v51 = vmul.f32 %v1804_v29, %v2194_v44 }
 0x6ac   : > { %v1806_v30 = vpop.eup %1805  ;;  %v1537_v36 = vpack.c.bf16 %v809_v51, %v809_v51 }
 0x6ad   : > { %v811_v49 = vmul.f32 %v1806_v30, %v2196_v46  ;;  %v1808_v38 = vpop.eup %1807 }
 0x6ae   : > { %824 = vrot.lane.b32.xlu0 %v1537_v36, %s1918_s10  ;;  %v1036_v47 = vmul.f32 %v1808_v38, %v2226_v32 }
 0x6af   : > { %v1538_v39 = vpack.c.bf16 %v811_v49, %v811_v49 }
 0x6b0   : > { %v1810_v40 = vpop.eup %1809  ;;  %v1540_v52 = vpack.c.bf16 %v1036_v47, %v1036_v47 }
 0x6b1   : > { %826 = vrot.lane.b32.xlu1 %v1538_v39, %s1918_s10  ;;  %v813_v41 = vmul.f32 %v1810_v40, %v2192_v43  ;;  %v1812_v42 = vpop.eup %1811 }
 0x6b2   : > { %v1040_v53 = vmul.f32 %v1812_v42, %v2224_v31 }
 0x6b3   : > { %v1539_v45 = vpack.c.bf16 %v813_v41, %v813_v41 }
 0x6b4   : > { %v1814_v48 = vpop.eup %1813  ;;  %v1542_v54 = vpack.c.bf16 %v1040_v53, %v1040_v53 }
 0x6b5   : > { %828 = vrot.lane.b32.xlu1 %v1539_v45, %s1918_s10  ;;  %v1038_v44 = vmul.f32 %v1814_v48, %v2228_v37 }
 0x6b7   : > { %v1541_v46 = vpack.c.bf16 %v1038_v44, %v1038_v44 }
 0x6b9   : > { %1051 = vrot.lane.b32.xlu1 %v1540_v52, %s1917_s12  ;;  %1053 = vrot.lane.b32.xlu0 %v1541_v46, %s1917_s12 }
 0x6bd   : > { %1055 = vrot.lane.b32.xlu1 %v1542_v54, %s1917_s12 }
 0x707   : > { %v1183_v43 = vpop.xlane.xlu0 %1182 }
 0x70a   : > { %v1186_v55 = vpop.xlane.xlu1 %1185 }
 0x70b   : > { %v1189_v56 = vpop.xlane.xlu0 %1188 }
 0x70e   : > { %v511_v32 = vpop.xlane.xlu1 %510 }
 0x70f   : > { %1815 = vrcp.f32 %v511_v32  ;;  %v514_v57 = vpop.xlane.xlu0 %513 }
 0x710   : > { %1817 = vrcp.f32 %v514_v57 }
 0x712   : > { %v517_v37 = vpop.xlane.xlu1 %516 }
 0x713   : > { %1819 = vrcp.f32 %v517_v37 }
 0x714   : > { %1821 = vrcp.f32 %v1189_v56 }
 0x715   : > { %1823 = vrcp.f32 %v1183_v43 }
 0x716   : > { %1825 = vrcp.f32 %v1186_v55 }
 0x719   : > { %v1816_v58 = vpop.eup %1815 }
 0x71a   : > { %v1818_v61 = vpop.eup %1817  ;;  %v588_v31 = vmul.f32 %v1816_v58, %v2148_v60 }
 0x71b   : > { %v590_v19 = vmul.f32 %v1818_v61, %v2150_v62 }
 0x71c   : > { %v1534_v63 = vpack.c.bf16 %v588_v31, %v588_v31 }
 0x71d   : > { %v1820_v0 = vpop.eup %1819  ;;  %v1535_v1 = vpack.c.bf16 %v590_v19, %v590_v19 }
 0x71e   : > { %v592_v2 = vmul.f32 %v1820_v0, %v2146_v59  ;;  %607 = vst.msk [vmem:[%s2278_s8] sm:$0xf] %vm606_vm4, %v1534_v63  ;;  %v1822_v6 = vpop.eup %1821 }
 0x71f   : > { %608 = vst.msk [vmem:[%s2278_s8 + $0x4] sm:$0xf] %vm606_vm4, %v1535_v1  ;;  %v1824_v7 = vpop.eup %1823 }
 0x720   : > { %v825_v60 = vpop.permute.xlu0 %824  ;;  %v1536_v62 = vpack.c.bf16 %v592_v2, %v592_v2  ;;  %v1826_v11 = vpop.eup %1825 }
 0x721   : > { %834 = vst.msk [vmem:[%s2278_s8] sm:$0xf] %vm833_vm5, %v825_v60 }
 0x722   : > { %609 = vst.msk [vmem:[%s2278_s8 + $0x8] sm:$0xf] %vm606_vm4, %v1536_v62 }
 0x723   : > { %v827_v3 = vpop.permute.xlu1 %826 }
 0x724   : > { %835 = vst.msk [vmem:[%s2278_s8 + $0x4] sm:$0xf] %vm833_vm5, %v827_v3 }
 0x727   : > { %v829_v59 = vpop.permute.xlu1 %828 }
 0x728   : > { %836 = vst.msk [vmem:[%s2278_s8 + $0x8] sm:$0xf] %vm833_vm5, %v829_v59 }
 0x72b   : > { %v1052_v34 = vpop.permute.xlu1 %1051  ;;  %v1054_v4 = vpop.permute.xlu0 %1053 }
 0x72c   : > { %1061 = vst.msk [vmem:[%s2278_s8] sm:$0xf] %vm1060_vm6, %v1052_v34  ;;  %1062 = vst.msk [vmem:[%s2278_s8 + $0x4] sm:$0xf] %vm1060_vm6, %v1054_v4 }
 0x72f   : > { %v1056_v5 = vpop.permute.xlu1 %1055 }
 0x730   : > { %1063 = vst.msk [vmem:[%s2278_s8 + $0x8] sm:$0xf] %vm1060_vm6, %v1056_v5 }
 0x752   : > { %v1641_v35 = vpop.f32.mrb[12].mxu0 }
 0x753   : > { %v1267_v8 = vmul.f32 %v1822_v6, %v1641_v35  ;;  %v1248_v9 = vpop.f32.mrb[13].mxu0 }
 0x754   : > { %v1263_v10 = vmul.f32 %v1824_v7, %v1248_v9  ;;  %v1642_v33 = vpop.f32.mrb[14].mxu0 }
 0x755   : > { %v1251_v12 = vpop.f32.mrb[15].mxu0  ;;  %v1545_v16 = vpack.c.bf16 %v1267_v8, %v1267_v8 }
 0x756   : > { %v1543_v13 = vpack.c.bf16 %v1263_v10, %v1263_v10  ;;  %v1265_v14 = vmul.f32 %v1826_v11, %v1251_v12 }
 0x758   : > { %v1544_v15 = vpack.c.bf16 %v1265_v14, %v1265_v14  ;;  %1278 = vrot.lane.b32.xlu0 %v1543_v13, %s1916_s14 }
 0x75a   : > { %1280 = vrot.lane.b32.xlu1 %v1544_v15, %s1916_s14 }
 0x75c   : > { %1282 = vrot.lane.b32.xlu0 %v1545_v16, %s1916_s14 }
 0x7c9   : > { %1297 = sbr.rel (!%p2052_p13) target bundleno = 2008 (0x7d8), region = 159 }
 0x7ca   : > { %v1279_v17 = vpop.permute.xlu0 %1278 }
 0x7cb   : > { %1288 = vst.msk [vmem:[%s2278_s8] sm:$0xf] %vm1287_vm7, %v1279_v17 }
 0x7cc   : > { %v1281_v18 = vpop.permute.xlu1 %1280 }
 0x7cd   : > { %1289 = vst.msk [vmem:[%s2278_s8 + $0x4] sm:$0xf] %vm1287_vm7, %v1281_v18 }
 0x7ce   : > { %v1283_v20 = vpop.permute.xlu0 %1282 }
 0x7cf   : > { %1290 = vst.msk [vmem:[%s2278_s8 + $0x8] sm:$0xf] %vm1287_vm7, %v1283_v20 }
 0x7d2   : > { %v1318_v21 = vld [vmem:[%s2278_s8] sm:$0xf] }
 0x7d3   : > { %1319 = vst [vmem:[%s1302_s23] sm:$0xf] %v1318_v21 }
 0x7d4   : > { %v1320_v22 = vld [vmem:[%s2278_s8 + $0x4] sm:$0xf] }
 0x7d5   : > { %1321 = vst [vmem:[%s1302_s23 + $0x8] sm:$0xf] %v1320_v22 }
 0x7d6   : > { %v1322_v23 = vld [vmem:[%s2278_s8 + $0x8] sm:$0xf] }
 0x7d7   : > { %1323 = vst [vmem:[%s1302_s23 + $0x10] sm:$0xf] %v1322_v23 }
 0x7d8 PF: > { %s13_s22 = sadd.s32 1, %s1913_s22   ;;  %s2351_s7 = sld [smem:[#allocation6_spill]] }
 0x7d9   : > { %p10_p4 = scmp.ge.s32.totalorder %s13_s22, 6   ;;  %s2352_s12 = smov %s1877_s13 }
 0x7da   : > { %s2353_s13 = smov %s2057_s26  ;;  %s2354_s14 = smov %s1885_s15 }
 0x7db   : > { %s2355_s15 = smov %s2035_s28  ;;  %s2356_s16 = smov %s1893_s17 }
 0x7dc   : > { %s2357_s17 = smov %s2032_s11  ;;  %s2358_s18 = smov %s1905_s20 }
 0x7dd   : > { %s2359_s19 = smov %s1909_s21  ;;  %s2360_s20 = smov %s2363_s24 }
 0x7de   : > { %s2361_s21 = smov %s2351_s7  ;;  %12 = sbr.rel (!%p10_p4) target bundleno = 8 (0x8), region = 247 }

// kernel: vit_forward.25
= control target key start
LH: loop header
LB: loop body
LE: loop exit
PB: predicated region body
PF: predicated region fallthrough
CT: control target
= control target key end

     0   :  { %v377_v38 = vlaneseq  ;;  %s792_s1 = inlined_call_operand.vmem [shape: bf16[256,256], index: 1, kind: input, shape index: {}]   ;;  %s793_s0 = inlined_call_operand.vmem [shape: bf16[48,256], index: 0, kind: input, shape index: {}]   ;;  %s794_s2 = inlined_call_operand.vmem [shape: f32[1,256], index: 2, kind: input, shape index: {}]   ;;  %s795_s3 = inlined_call_operand.vmem [shape: bf16[48,256], index: 3, kind: input, shape index: {}]   ;;  %s796_s4 = inlined_call_operand.vmem [shape: bf16[48,256], index: 4, kind: output, shape index: {}]  }
   0x1   :  { %v557_v0 = vld [vmem:[%s792_s1 + $0x4] ss:$8 sps:$4 sm:$0xff]   ;;  %v559_v1 = vld [vmem:[%s792_s1] ss:$8 sps:$4 sm:$0xff]   ;;  %v560_v2 = vld [vmem:[%s792_s1 + $0x14] ss:$8 sps:$4 sm:$0xff]  }
   0x2   :  { %525 = vmatprep.subr.bf16.mxu1 %v557_v0  ;;  %273 = vmatprep.subr.bf16.mxu0 %v557_v0  ;;  %v562_v3 = vld [vmem:[%s792_s1 + $0x10] ss:$8 sps:$4 sm:$0xff]   ;;  %v563_v4 = vld [vmem:[%s792_s1 + $0x24] ss:$8 sps:$4 sm:$0xff]   ;;  %v565_v5 = vld [vmem:[%s792_s1 + $0x20] ss:$8 sps:$4 sm:$0xff]  }
   0x3   :  { %541 = vmatpush1.bf16.msra.mxu1 %v559_v1  ;;  %274 = vmatpush1.bf16.msra.mxu0 %v559_v1  ;;  %v566_v6 = vld [vmem:[%s792_s1 + $0x34] ss:$8 sps:$4 sm:$0xff]   ;;  %v568_v7 = vld [vmem:[%s792_s1 + $0x30] ss:$8 sps:$4 sm:$0xff]   ;;  %v569_v8 = vld [vmem:[%s792_s1 + $0x44] ss:$8 sps:$4 sm:$0xff]  }
   0x4   :  { %526 = vmatprep.subr.bf16.mxu1 %v560_v2  ;;  %275 = vmatprep.subr.bf16.mxu0 %v560_v2  ;;  %v571_v9 = vld [vmem:[%s792_s1 + $0x40] ss:$8 sps:$4 sm:$0xff]   ;;  %v572_v10 = vld [vmem:[%s792_s1 + $0x54] ss:$8 sps:$4 sm:$0xff]   ;;  %v574_v11 = vld [vmem:[%s792_s1 + $0x50] ss:$8 sps:$4 sm:$0xff]  }
   0x5   :  { %v575_v12 = vld [vmem:[%s792_s1 + $0x64] ss:$8 sps:$4 sm:$0xff]   ;;  %v607_v13 = vld [vmem:[%s793_s0 + $0x14] ss:$8 sps:$4 sm:$0xff]   ;;  %v577_v14 = vld [vmem:[%s792_s1 + $0x60] ss:$8 sps:$4 sm:$0xff]  }
   0x6   :  { %v610_v15 = vld [vmem:[%s793_s0 + $0x4] ss:$8 sps:$4 sm:$0xff]   ;;  %v578_v16 = vld [vmem:[%s792_s1 + $0x74] ss:$8 sps:$4 sm:$0xff]   ;;  %315 = vmatprep.mubr.bf16.mxu1 %v607_v13  ;;  %v580_v17 = vld [vmem:[%s792_s1 + $0x70] ss:$8 sps:$4 sm:$0xff]  }
   0x7   :  { %542 = vmatpush1.bf16.msra.mxu1 %v562_v3  ;;  %276 = vmatpush1.bf16.msra.mxu0 %v562_v3  ;;  %v581_v18 = vld [vmem:[%s792_s1 + $0x84] ss:$8 sps:$4 sm:$0xff]   ;;  %v583_v19 = vld [vmem:[%s792_s1 + $0x80] ss:$8 sps:$4 sm:$0xff]   ;;  %v584_v20 = vld [vmem:[%s792_s1 + $0x94] ss:$8 sps:$4 sm:$0xff]  }
   0x8   :  { %527 = vmatprep.subr.bf16.mxu1 %v563_v4  ;;  %277 = vmatprep.subr.bf16.mxu0 %v563_v4  ;;  %v586_v21 = vld [vmem:[%s792_s1 + $0x90] ss:$8 sps:$4 sm:$0xff]   ;;  %v587_v22 = vld [vmem:[%s792_s1 + $0xa4] ss:$8 sps:$4 sm:$0xff]   ;;  %v589_v23 = vld [vmem:[%s792_s1 + $0xa0] ss:$8 sps:$4 sm:$0xff]  }
   0x9   :  { %305 = vmatprep.mubr.bf16.mxu0 %v610_v15  ;;  %v590_v24 = vld [vmem:[%s792_s1 + $0xb4] ss:$8 sps:$4 sm:$0xff]   ;;  %v592_v25 = vld [vmem:[%s792_s1 + $0xb0] ss:$8 sps:$4 sm:$0xff]   ;;  %v593_v26 = vld [vmem:[%s792_s1 + $0xc4] ss:$8 sps:$4 sm:$0xff]  }
   0xa   :  { %v595_v27 = vld [vmem:[%s792_s1 + $0xc0] ss:$8 sps:$4 sm:$0xff]   ;;  %v596_v28 = vld [vmem:[%s792_s1 + $0xd4] ss:$8 sps:$4 sm:$0xff]   ;;  %v598_v29 = vld [vmem:[%s792_s1 + $0xd0] ss:$8 sps:$4 sm:$0xff]  }
   0xb   :  { %543 = vmatpush1.bf16.msra.mxu1 %v565_v5  ;;  %278 = vmatpush1.bf16.msra.mxu0 %v565_v5  ;;  %v599_v30 = vld [vmem:[%s792_s1 + $0xe4] ss:$8 sps:$4 sm:$0xff]   ;;  %v601_v31 = vld [vmem:[%s792_s1 + $0xe0] ss:$8 sps:$4 sm:$0xff]   ;;  %v602_v32 = vld [vmem:[%s792_s1 + $0xf4] ss:$8 sps:$4 sm:$0xff]  }
   0xc   :  { %528 = vmatprep.subr.bf16.mxu1 %v566_v6  ;;  %279 = vmatprep.subr.bf16.mxu0 %v566_v6  ;;  %v604_v33 = vld [vmem:[%s792_s1 + $0xf0] ss:$8 sps:$4 sm:$0xff]   ;;  %v608_v35 = vld [vmem:[%s793_s0] ss:$8 sps:$4 sm:$0xff]   ;;  %v611_v36 = vld [vmem:[%s793_s0 + $0x24] ss:$8 sps:$4 sm:$0xff]  }
   0xd   :  { %v605_v34 = vld [vmem:[%s793_s0 + $0x10] ss:$8 sps:$4 sm:$0xff]   ;;  %v613_v37 = vld [vmem:[%s793_s0 + $0x20] ss:$8 sps:$4 sm:$0xff]   ;;  %v378_v39 = vshrl.u32 %v377_v38, 7 }
   0xe   :  { %v375_v41 = vld [vmem:[%s794_s2] sm:$0x3]  ;;  %v401_v43 = vld [vmem:[%s795_s3 + $0x10] sm:$0xff]  ;;  %v402_v47 = vld [vmem:[%s795_s3 + $0x18] sm:$0xff] }
   0xf   :  { %544 = vmatpush1.bf16.msra.mxu1 %v568_v7  ;;  %280 = vmatpush1.bf16.msra.mxu0 %v568_v7  ;;  %v379_v40 = vsub.s32 0, %v378_v39  ;;  %v383_v42 = vsub.s32 1, %v378_v39  ;;  %v399_v44 = vld [vmem:[%s795_s3] sm:$0xff]  ;;  %v400_v48 = vld [vmem:[%s795_s3 + $0x8] sm:$0xff]  ;;  %v409_v49 = vunpack.c.l.bf16 %v401_v43  ;;  %v410_v52 = vunpack.c.h.bf16 %v401_v43 }
  0x10   :  { %529 = vmatprep.subr.bf16.mxu1 %v569_v8  ;;  %281 = vmatprep.subr.bf16.mxu0 %v569_v8  ;;  %v405_v50 = vunpack.c.l.bf16 %v399_v44  ;;  %v406_v54 = vunpack.c.h.bf16 %v399_v44  ;;  %v411_v57 = vunpack.c.l.bf16 %v402_v47  ;;  %v407_v60 = vunpack.c.l.bf16 %v400_v48  ;;  %v403_v13 = vld [vmem:[%s795_s3 + $0x20] sm:$0xff] }
  0x11   :  { %v380_v45 = vrot.slane %v375_v41, %v379_v40  ;;  %v384_v46 = vrot.slane %v375_v41, %v383_v42  ;;  %v412_v63 = vunpack.c.h.bf16 %v402_v47  ;;  %v408_v2 = vunpack.c.h.bf16 %v400_v48 }
  0x13   :  { %545 = vmatpush1.bf16.msra.mxu1 %v571_v9  ;;  %282 = vmatpush1.bf16.msra.mxu0 %v571_v9 }
  0x14   :  { %530 = vmatprep.subr.bf16.mxu1 %v572_v10  ;;  %283 = vmatprep.subr.bf16.mxu0 %v572_v10 }
  0x17   :  { %546 = vmatpush1.bf16.msra.mxu1 %v574_v11  ;;  %284 = vmatpush1.bf16.msra.mxu0 %v574_v11 }
  0x18   :  { %531 = vmatprep.subr.bf16.mxu1 %v575_v12  ;;  %285 = vmatprep.subr.bf16.mxu0 %v575_v12 }
  0x1b   :  { %547 = vmatpush1.bf16.msra.mxu1 %v577_v14  ;;  %286 = vmatpush1.bf16.msra.mxu0 %v577_v14 }
  0x1c   :  { %532 = vmatprep.subr.bf16.mxu1 %v578_v16  ;;  %287 = vmatprep.subr.bf16.mxu0 %v578_v16 }
  0x1f   :  { %548 = vmatpush1.bf16.msra.mxu1 %v580_v17  ;;  %288 = vmatpush1.bf16.msra.mxu0 %v580_v17 }
  0x20   :  { %533 = vmatprep.subr.bf16.mxu1 %v581_v18  ;;  %289 = vmatprep.subr.bf16.mxu0 %v581_v18 }
  0x23   :  { %549 = vmatpush1.bf16.msra.mxu1 %v583_v19  ;;  %290 = vmatpush1.bf16.msra.mxu0 %v583_v19 }
  0x24   :  { %534 = vmatprep.subr.bf16.mxu1 %v584_v20  ;;  %291 = vmatprep.subr.bf16.mxu0 %v584_v20  ;;  %v404_v20 = vld [vmem:[%s795_s3 + $0x28] sm:$0xff] }
  0x27   :  { %550 = vmatpush1.bf16.msra.mxu1 %v586_v21  ;;  %292 = vmatpush1.bf16.msra.mxu0 %v586_v21  ;;  %v413_v21 = vunpack.c.l.bf16 %v403_v13 }
  0x28   :  { %535 = vmatprep.subr.bf16.mxu1 %v587_v22  ;;  %293 = vmatprep.subr.bf16.mxu0 %v587_v22 }
  0x2b   :  { %551 = vmatpush1.bf16.msra.mxu1 %v589_v23  ;;  %294 = vmatpush1.bf16.msra.mxu0 %v589_v23 }
  0x2c   :  { %536 = vmatprep.subr.bf16.mxu1 %v590_v24  ;;  %295 = vmatprep.subr.bf16.mxu0 %v590_v24 }
  0x2f   :  { %552 = vmatpush1.bf16.msra.mxu1 %v592_v25  ;;  %296 = vmatpush1.bf16.msra.mxu0 %v592_v25  ;;  %v414_v25 = vunpack.c.h.bf16 %v403_v13 }
  0x30   :  { %537 = vmatprep.subr.bf16.mxu1 %v593_v26  ;;  %297 = vmatprep.subr.bf16.mxu0 %v593_v26 }
  0x33   :  { %553 = vmatpush1.bf16.msra.mxu1 %v595_v27  ;;  %298 = vmatpush1.bf16.msra.mxu0 %v595_v27 }
  0x34   :  { %538 = vmatprep.subr.bf16.mxu1 %v596_v28  ;;  %299 = vmatprep.subr.bf16.mxu0 %v596_v28  ;;  %v415_v28 = vunpack.c.l.bf16 %v404_v20 }
  0x37   :  { %554 = vmatpush1.bf16.msra.mxu1 %v598_v29  ;;  %300 = vmatpush1.bf16.msra.mxu0 %v598_v29 }
  0x38   :  { %539 = vmatprep.subr.bf16.mxu1 %v599_v30  ;;  %301 = vmatprep.subr.bf16.mxu0 %v599_v30 }
  0x3b   :  { %555 = vmatpush1.bf16.msra.mxu1 %v601_v31  ;;  %302 = vmatpush1.bf16.msra.mxu0 %v601_v31  ;;  %v416_v31 = vunpack.c.h.bf16 %v404_v20 }
  0x3c   :  { %540 = vmatprep.subr.bf16.mxu1 %v602_v32  ;;  %303 = vmatprep.subr.bf16.mxu0 %v602_v32 }
  0x3f   :  { %556 = vmatpush1.bf16.msra.mxu1 %v604_v33  ;;  %304 = vmatpush1.bf16.msra.mxu0 %v604_v33 }
  0x42   :  { %316 = vmatmul.mubr.bf16.vlgmr.msra.gmra.mrb[0].mxu1 %v605_v34  ;;  %306 = vmatmul.mubr.bf16.vlgmr.msra.gmra.mrb[0].mxu0 %v608_v35 }
  0x43   :  { %325 = vmatprep.mubr.bf16.mxu1 %v611_v36 }
  0x4a   :  { %326 = vmatmul.mubr.bf16.gmra.mrb[4].mxu1 %v613_v37 }
 0x115   :  { %v317_v51 = vpop.f32.mrb[0].mxu1  ;;  %v307_v53 = vpop.f32.mrb[0].mxu0 }
 0x116   :  { %v391_v55 = vadd.f32 %v380_v45, %v317_v51  ;;  %v319_v56 = vpop.f32.mrb[1].mxu1  ;;  %v387_v58 = vadd.f32 %v380_v45, %v307_v53  ;;  %v309_v59 = vpop.f32.mrb[1].mxu0 }
 0x117   :  { %v392_v61 = vadd.f32 %v384_v46, %v319_v56  ;;  %v321_v62 = vpop.f32.mrb[2].mxu1  ;;  %v388_v0 = vadd.f32 %v384_v46, %v309_v59  ;;  %v311_v1 = vpop.f32.mrb[2].mxu0 }
 0x118   :  { %v421_v3 = vadd.f32 %v409_v49, %v391_v55  ;;  %v393_v4 = vadd.f32 %v380_v45, %v321_v62  ;;  %v323_v5 = vpop.f32.mrb[3].mxu1  ;;  %v417_v6 = vadd.f32 %v405_v50, %v387_v58  ;;  %v389_v7 = vadd.f32 %v380_v45, %v311_v1  ;;  %v313_v8 = vpop.f32.mrb[3].mxu0 }
 0x119   :  { %v422_v9 = vadd.f32 %v410_v52, %v392_v61  ;;  %v394_v10 = vadd.f32 %v384_v46, %v323_v5  ;;  %v418_v11 = vadd.f32 %v406_v54, %v388_v0  ;;  %v390_v12 = vadd.f32 %v384_v46, %v313_v8 }
 0x11a   :  { %v423_v14 = vadd.f32 %v411_v57, %v393_v4  ;;  %v419_v15 = vadd.f32 %v407_v60, %v389_v7 }
 0x11b   :  { %v521_v16 = vpack.c.bf16 %v422_v9, %v421_v3  ;;  %v424_v17 = vadd.f32 %v412_v63, %v394_v10  ;;  %v519_v18 = vpack.c.bf16 %v418_v11, %v417_v6  ;;  %v420_v19 = vadd.f32 %v408_v2, %v390_v12 }
 0x11d   :  { %467 = vst [vmem:[%s796_s4 + $0x10] sm:$0xff] %v521_v16  ;;  %v522_v22 = vpack.c.bf16 %v424_v17, %v423_v14  ;;  %465 = vst [vmem:[%s796_s4] sm:$0xff] %v519_v18  ;;  %v520_v23 = vpack.c.bf16 %v420_v19, %v419_v15  ;;  %v327_v24 = vpop.f32.mrb[4].mxu1 }
 0x11e   :  { %v395_v26 = vadd.f32 %v380_v45, %v327_v24  ;;  %v329_v27 = vpop.f32.mrb[5].mxu1 }
 0x11f   :  { %468 = vst [vmem:[%s796_s4 + $0x18] sm:$0xff] %v522_v22  ;;  %466 = vst [vmem:[%s796_s4 + $0x8] sm:$0xff] %v520_v23  ;;  %v396_v29 = vadd.f32 %v384_v46, %v329_v27  ;;  %v331_v30 = vpop.f32.mrb[6].mxu1 }
 0x120   :  { %v425_v32 = vadd.f32 %v413_v21, %v395_v26  ;;  %v397_v33 = vadd.f32 %v380_v45, %v331_v30  ;;  %v333_v34 = vpop.f32.mrb[7].mxu1 }
 0x121   :  { %v426_v35 = vadd.f32 %v414_v25, %v396_v29  ;;  %v398_v36 = vadd.f32 %v384_v46, %v333_v34 }
 0x122   :  { %v427_v37 = vadd.f32 %v415_v28, %v397_v33 }
 0x123   :  { %v523_v38 = vpack.c.bf16 %v426_v35, %v425_v32  ;;  %v428_v39 = vadd.f32 %v416_v31, %v398_v36 }
 0x125   :  { %469 = vst [vmem:[%s796_s4 + $0x20] sm:$0xff] %v523_v38  ;;  %v524_v40 = vpack.c.bf16 %v428_v39, %v427_v37 }
 0x127   :  { %470 = vst [vmem:[%s796_s4 + $0x28] sm:$0xff] %v524_v40 }

// kernel: vit_forward.26
= control target key start
LH: loop header
LB: loop body
LE: loop exit
PB: predicated region body
PF: predicated region fallthrough
CT: control target
= control target key end

     0   :  { %s1654_s18 = smov 0   ;;  %s1656_s19 = smov 0   ;;  %s2116_s0 = inlined_call_operand.vmem [shape: bf16[48,256], index: 0, kind: input, shape index: {}]   ;;  %s2117_s1 = inlined_call_operand.vmem [shape: bf16[256,1024], index: 1, kind: input, shape index: {}]   ;;  %s2118_s2 = inlined_call_operand.vmem [shape: f32[1,1024], index: 2, kind: input, shape index: {}]   ;;  %s2119_s3 = inlined_call_operand.vmem [shape: f32[1,256], index: 3, kind: input, shape index: {}]   ;;  %s2120_s4 = inlined_call_operand.vmem [shape: f32[1,256], index: 4, kind: input, shape index: {}]   ;;  %s2121_s5 = inlined_call_operand.vmem [shape: bf16[48,1024], index: 5, kind: output, shape index: {}]  }
   0x1   :  { %s1658_s20 = smov 0   ;;  %s1660_s21 = smov 0  }
   0x2   :  { %s1662_s22 = smov 0  }
   0x3 LB: > { %s30_s23 = sadd.s32 1, %s1618_s21  ;;  %s1364_s24 = sadd.s32 4294967295, %s1622_s22   ;;  %s1622_s22 = sphi %s1662_s22, %s15_s22   ;;  %s1618_s21 = sphi %s1660_s21, %s2126_s21   ;;  %s1614_s20 = sphi %s1658_s20, %s2125_s20   ;;  %s1610_s19 = sphi %s1656_s19, %s2124_s19   ;;  %s1606_s18 = sphi %s1654_s18, %s2123_s18  }
   0x4   : > { %p32_p0 = scmp.ge.s32.totalorder %s30_s23, 4  ;;  %p78_p1 = scmp.ne.s32.totalorder %s1610_s19, %s1606_s18 }
   0x5   : > { %p79_p2 = scmp.eq.s32.totalorder %s1622_s22, 0  ;;  %p188_p4 = scmp.eq.s32.totalorder %s1364_s24, 3 }
   0x6   : > { %s2128_s23 = smov (%p32_p0, %s30_s23), 0  ;;  %s71_s26 = sadd.s32 1, %s1610_s19 }
   0x7   : > { %p80_p3 = por %p79_p2, %p78_p1  ;;  %s67_s25 = ssub.s32 %s1618_s21, %s2128_s23 }
   0x8   : > { %p69_p5 = scmp.eq.s32.totalorder %s67_s25, 0  ;;  %p1689_p6 = por %p188_p4, %p78_p1 }
   0x9   : > { %p1370_p7 = scmp.ge.s32.totalorder %s1622_s22, 4 }
   0xa   : > { %s1694_s28 = scalar_select %p69_p5, %s1610_s19, %s71_s26  }
   0xb   : > { %241 = sbr.rel (%p1370_p7) target bundleno = 54 (0x36), region = 28 }
  0x12   : > { %244 = sbr.rel (!%p80_p3) target bundleno = 54 (0x36), region = 32  ;;  %s246_s29 = sand.u32 (%p80_p3), 1, %s1610_s19  }
  0x13   : > { %s1419_s30 = sshll.u32 (%p80_p3), %s1618_s21, 3  ;;  %s1371_s6 = sshll.u32 (%p80_p3), %s246_s29, 8 }
  0x14   : > { %s1702_s9 = scalar_lea.vmem (%p80_p3), %s2117_s1, %s1419_s30  ;;  %s1707_s10 = scalar_lea.vmem (%p80_p3), [#allocation3], %s1371_s6 }
  0x15   : > { %v344_v0 = vld [vmem:[%s1702_s9] sm:$0xff] (%p80_p3) }
  0x16   : > { %v346_v1 = vld [vmem:[%s1702_s9 + $0x20] sm:$0xff] (%p80_p3)  ;;  %345 = vst [vmem:[%s1707_s10] sm:$0xff] (%p80_p3), %v344_v0 }
  0x17   : > { %v348_v2 = vld [vmem:[%s1702_s9 + $0x40] sm:$0xff] (%p80_p3)  ;;  %347 = vst [vmem:[%s1707_s10 + $0x8] sm:$0xff] (%p80_p3), %v346_v1 }
  0x18   : > { %349 = vst [vmem:[%s1707_s10 + $0x10] sm:$0xff] (%p80_p3), %v348_v2  ;;  %v350_v3 = vld [vmem:[%s1702_s9 + $0x60] sm:$0xff] (%p80_p3) }
  0x19   : > { %v352_v4 = vld [vmem:[%s1702_s9 + $0x80] sm:$0xff]  ;;  %351 = vst [vmem:[%s1707_s10 + $0x18] sm:$0xff] %v350_v3 }
  0x1a   : > { %v354_v5 = vld [vmem:[%s1702_s9 + $0xa0] sm:$0xff]  ;;  %353 = vst [vmem:[%s1707_s10 + $0x20] sm:$0xff] %v352_v4 }
  0x1b   : > { %355 = vst [vmem:[%s1707_s10 + $0x28] sm:$0xff] %v354_v5  ;;  %v356_v6 = vld [vmem:[%s1702_s9 + $0xc0] sm:$0xff] }
  0x1c   : > { %v358_v7 = vld [vmem:[%s1702_s9 + $0xe0] sm:$0xff]  ;;  %357 = vst [vmem:[%s1707_s10 + $0x30] sm:$0xff] %v356_v6 }
  0x1d   : > { %v360_v8 = vld [vmem:[%s1702_s9 + $0x100] sm:$0xff]  ;;  %359 = vst [vmem:[%s1707_s10 + $0x38] sm:$0xff] %v358_v7 }
  0x1e   : > { %361 = vst [vmem:[%s1707_s10 + $0x40] sm:$0xff] %v360_v8  ;;  %v362_v9 = vld [vmem:[%s1702_s9 + $0x120] sm:$0xff] }
  0x1f   : > { %v364_v10 = vld [vmem:[%s1702_s9 + $0x140] sm:$0xff]  ;;  %363 = vst [vmem:[%s1707_s10 + $0x48] sm:$0xff] %v362_v9 }
  0x20   : > { %v366_v11 = vld [vmem:[%s1702_s9 + $0x160] sm:$0xff]  ;;  %365 = vst [vmem:[%s1707_s10 + $0x50] sm:$0xff] %v364_v10 }
  0x21   : > { %367 = vst [vmem:[%s1707_s10 + $0x58] sm:$0xff] %v366_v11  ;;  %v368_v12 = vld [vmem:[%s1702_s9 + $0x180] sm:$0xff] }
  0x22   : > { %v370_v13 = vld [vmem:[%s1702_s9 + $0x1a0] sm:$0xff]  ;;  %369 = vst [vmem:[%s1707_s10 + $0x60] sm:$0xff] %v368_v12 }
  0x23   : > { %v372_v14 = vld [vmem:[%s1702_s9 + $0x1c0] sm:$0xff]  ;;  %371 = vst [vmem:[%s1707_s10 + $0x68] sm:$0xff] %v370_v13 }
  0x24   : > { %373 = vst [vmem:[%s1707_s10 + $0x70] sm:$0xff] %v372_v14  ;;  %v374_v15 = vld [vmem:[%s1702_s9 + $0x1e0] sm:$0xff] }
  0x25   : > { %v376_v16 = vld [vmem:[%s1702_s9 + $0x200] sm:$0xff]  ;;  %375 = vst [vmem:[%s1707_s10 + $0x78] sm:$0xff] %v374_v15 }
  0x26   : > { %v378_v17 = vld [vmem:[%s1702_s9 + $0x220] sm:$0xff]  ;;  %377 = vst [vmem:[%s1707_s10 + $0x80] sm:$0xff] %v376_v16 }
  0x27   : > { %379 = vst [vmem:[%s1707_s10 + $0x88] sm:$0xff] %v378_v17  ;;  %v380_v18 = vld [vmem:[%s1702_s9 + $0x240] sm:$0xff] }
  0x28   : > { %v382_v19 = vld [vmem:[%s1702_s9 + $0x260] sm:$0xff]  ;;  %381 = vst [vmem:[%s1707_s10 + $0x90] sm:$0xff] %v380_v18 }
  0x29   : > { %v384_v20 = vld [vmem:[%s1702_s9 + $0x280] sm:$0xff]  ;;  %383 = vst [vmem:[%s1707_s10 + $0x98] sm:$0xff] %v382_v19 }
  0x2a   : > { %385 = vst [vmem:[%s1707_s10 + $0xa0] sm:$0xff] %v384_v20  ;;  %v386_v21 = vld [vmem:[%s1702_s9 + $0x2a0] sm:$0xff] }
  0x2b   : > { %v388_v22 = vld [vmem:[%s1702_s9 + $0x2c0] sm:$0xff]  ;;  %387 = vst [vmem:[%s1707_s10 + $0xa8] sm:$0xff] %v386_v21 }
  0x2c   : > { %v390_v23 = vld [vmem:[%s1702_s9 + $0x2e0] sm:$0xff]  ;;  %389 = vst [vmem:[%s1707_s10 + $0xb0] sm:$0xff] %v388_v22 }
  0x2d   : > { %391 = vst [vmem:[%s1707_s10 + $0xb8] sm:$0xff] %v390_v23  ;;  %v392_v24 = vld [vmem:[%s1702_s9 + $0x300] sm:$0xff] }
  0x2e   : > { %v394_v25 = vld [vmem:[%s1702_s9 + $0x320] sm:$0xff]  ;;  %393 = vst [vmem:[%s1707_s10 + $0xc0] sm:$0xff] %v392_v24 }
  0x2f   : > { %v396_v26 = vld [vmem:[%s1702_s9 + $0x340] sm:$0xff]  ;;  %395 = vst [vmem:[%s1707_s10 + $0xc8] sm:$0xff] %v394_v25 }
  0x30   : > { %397 = vst [vmem:[%s1707_s10 + $0xd0] sm:$0xff] %v396_v26  ;;  %v398_v27 = vld [vmem:[%s1702_s9 + $0x360] sm:$0xff] }
  0x31   : > { %v400_v28 = vld [vmem:[%s1702_s9 + $0x380] sm:$0xff]  ;;  %399 = vst [vmem:[%s1707_s10 + $0xd8] sm:$0xff] %v398_v27 }
  0x32   : > { %v402_v29 = vld [vmem:[%s1702_s9 + $0x3a0] sm:$0xff]  ;;  %401 = vst [vmem:[%s1707_s10 + $0xe0] sm:$0xff] %v400_v28 }
  0x33   : > { %403 = vst [vmem:[%s1707_s10 + $0xe8] sm:$0xff] %v402_v29  ;;  %v404_v30 = vld [vmem:[%s1702_s9 + $0x3c0] sm:$0xff] }
  0x34   : > { %v406_v31 = vld [vmem:[%s1702_s9 + $0x3e0] sm:$0xff]  ;;  %405 = vst [vmem:[%s1707_s10 + $0xf0] sm:$0xff] %v404_v30 }
  0x35   : > { %407 = vst [vmem:[%s1707_s10 + $0xf8] sm:$0xff] %v406_v31 }
  0x36 PF: > { %p1374_p8 = scmp.ge.s32.totalorder %s1622_s22, 1  ;;  %p420_p9 = scmp.lt.s32.totalorder %s1622_s22, 5 }
  0x38   : > { %p421_p10 = pnand %p1374_p8, %p420_p9 }
  0x39   : > { %v1775_v32 = vld [vmem:[%s2116_s0 + $0x10] sm:$0xff] (!%p421_p10)  ;;  %v1780_v33 = vld [vmem:[%s2116_s0 + $0x18] sm:$0xff] (!%p421_p10)  ;;  %v1785_v34 = vld [vmem:[%s2116_s0] sm:$0xff] (!%p421_p10)  ;;  %s427_s6 = sand.u32 (!%p421_p10), 1, %s1606_s18   ;;  %s1376_s13 = sshll.u32 (!%p421_p10), %s1614_s20, 1 }
  0x3a   : > { %424 = sbr.rel (%p421_p10) target bundleno = 650 (0x28a), region = 74  ;;  %v516_v35 = vunpack.c.l.bf16 (!%p421_p10), %v1775_v32  ;;  %v517_v36 = vunpack.c.h.bf16 (!%p421_p10), %v1775_v32  ;;  %v518_v37 = vunpack.c.l.bf16 (!%p421_p10), %v1780_v33  ;;  %v519_v38 = vunpack.c.h.bf16 (!%p421_p10), %v1780_v33  ;;  %v1794_v39 = vld [vmem:[%s2116_s0 + $0x8] sm:$0xff] (!%p421_p10)  ;;  %v1801_v42 = vld [vmem:[%s2116_s0 + $0x20] sm:$0xff] (!%p421_p10)  ;;  %s1375_s7 = sshll.u32 (!%p421_p10), %s427_s6, 8 }
  0x3b   : > { %v512_v40 = vunpack.c.l.bf16 (!%p421_p10), %v1785_v34  ;;  %v513_v41 = vunpack.c.h.bf16 (!%p421_p10), %v1785_v34  ;;  %v514_v44 = vunpack.c.l.bf16 (!%p421_p10), %v1794_v39  ;;  %v515_v45 = vunpack.c.h.bf16 (!%p421_p10), %v1794_v39  ;;  %v1812_v46 = vld [vmem:[%s2116_s0 + $0x28] sm:$0xff] (!%p421_p10)  ;;  %s1841_s8 = scalar_lea.vmem (!%p421_p10), [#allocation3], %s1375_s7  ;;  %p490_p11 = scmp.lt.s32.totalorder (!%p421_p10), %s1376_s13, 7 }
  0x3c   : > { %v530_v43 = vadd.f32 (!%p421_p10), %v517_v36, %v516_v35  ;;  %v533_v48 = vadd.f32 (!%p421_p10), %v519_v38, %v518_v37  ;;  %v520_v49 = vunpack.c.l.bf16 (!%p421_p10), %v1801_v42  ;;  %v521_v50 = vunpack.c.h.bf16 (!%p421_p10), %v1801_v42  ;;  %v1500_v56 = vld [vmem:[%s1841_s8 + $0x4] ss:$8 sps:$4 sm:$0xff] (!%p421_p10)   ;;  %v1502_v57 = vld [vmem:[%s1841_s8] ss:$8 sps:$4 sm:$0xff] (!%p421_p10)   ;;  %v1503_v58 = vld [vmem:[%s1841_s8 + $0x14] ss:$8 sps:$4 sm:$0xff] (!%p421_p10)  }
  0x3d   : > { %v524_v47 = vadd.f32 (!%p421_p10), %v513_v41, %v512_v40  ;;  %v527_v51 = vadd.f32 (!%p421_p10), %v515_v45, %v514_v44  ;;  %v522_v52 = vunpack.c.l.bf16 (!%p421_p10), %v1812_v46  ;;  %v523_v53 = vunpack.c.h.bf16 (!%p421_p10), %v1812_v46  ;;  %1427 = vmatprep.subr.bf16.mxu1 (!%p421_p10), %v1500_v56  ;;  %895 = vmatprep.subr.bf16.mxu0 (!%p421_p10), %v1500_v56  ;;  %v1505_v59 = vld [vmem:[%s1841_s8 + $0x10] ss:$8 sps:$4 sm:$0xff] (!%p421_p10)   ;;  %v1506_v60 = vld [vmem:[%s1841_s8 + $0x24] ss:$8 sps:$4 sm:$0xff] (!%p421_p10)   ;;  %v1508_v61 = vld [vmem:[%s1841_s8 + $0x20] ss:$8 sps:$4 sm:$0xff] (!%p421_p10)  }
  0x3e   : > { %531 = vadd.xlane.f32.xlu0 (!%p421_p10), %v530_v43  ;;  %v536_v54 = vadd.f32 (!%p421_p10), %v521_v50, %v520_v49  ;;  %1443 = vmatpush1.bf16.msra.mxu1 (!%p421_p10), %v1502_v57  ;;  %v1509_v62 = vld [vmem:[%s1841_s8 + $0x34] ss:$8 sps:$4 sm:$0xff] (!%p421_p10)   ;;  %v1511_v63 = vld [vmem:[%s1841_s8 + $0x30] ss:$8 sps:$4 sm:$0xff] (!%p421_p10)   ;;  %v1512_v0 = vld [vmem:[%s1841_s8 + $0x44] ss:$8 sps:$4 sm:$0xff] (!%p421_p10)  }
  0x3f   : > { %525 = vadd.xlane.f32.xlu1 (!%p421_p10), %v524_v47  ;;  %v539_v55 = vadd.f32 (!%p421_p10), %v523_v53, %v522_v52  ;;  %896 = vmatpush1.bf16.msra.mxu0 (!%p421_p10), %v1502_v57  ;;  %v1514_v1 = vld [vmem:[%s1841_s8 + $0x40] ss:$8 sps:$4 sm:$0xff] (!%p421_p10)   ;;  %v1515_v2 = vld [vmem:[%s1841_s8 + $0x54] ss:$8 sps:$4 sm:$0xff] (!%p421_p10)   ;;  %v1517_v3 = vld [vmem:[%s1841_s8 + $0x50] ss:$8 sps:$4 sm:$0xff] (!%p421_p10)  }
  0x40   : > { %1428 = vmatprep.subr.bf16.mxu1 (!%p421_p10), %v1503_v58  ;;  %897 = vmatprep.subr.bf16.mxu0 (!%p421_p10), %v1503_v58  ;;  %v1518_v4 = vld [vmem:[%s1841_s8 + $0x64] ss:$8 sps:$4 sm:$0xff] (!%p421_p10)   ;;  %v1520_v5 = vld [vmem:[%s1841_s8 + $0x60] ss:$8 sps:$4 sm:$0xff] (!%p421_p10)   ;;  %v1521_v6 = vld [vmem:[%s1841_s8 + $0x74] ss:$8 sps:$4 sm:$0xff] (!%p421_p10)  }
  0x41   : > { %v1523_v7 = vld [vmem:[%s1841_s8 + $0x70] ss:$8 sps:$4 sm:$0xff]   ;;  %v1524_v8 = vld [vmem:[%s1841_s8 + $0x84] ss:$8 sps:$4 sm:$0xff]   ;;  %v1526_v9 = vld [vmem:[%s1841_s8 + $0x80] ss:$8 sps:$4 sm:$0xff]  }
  0x42   : > { %534 = vadd.xlane.f32.xlu0 %v533_v48  ;;  %1444 = vmatpush1.bf16.msra.mxu1 %v1505_v59  ;;  %v1533_v56 = vld [vmem:[%s1841_s8 + $0xb4] ss:$8 sps:$4 sm:$0xff]   ;;  %v1535_v57 = vld [vmem:[%s1841_s8 + $0xb0] ss:$8 sps:$4 sm:$0xff]   ;;  %v1536_v58 = vld [vmem:[%s1841_s8 + $0xc4] ss:$8 sps:$4 sm:$0xff]  }
  0x43   : > { %528 = vadd.xlane.f32.xlu1 %v527_v51  ;;  %898 = vmatpush1.bf16.msra.mxu0 %v1505_v59  ;;  %v1538_v59 = vld [vmem:[%s1841_s8 + $0xc0] ss:$8 sps:$4 sm:$0xff]   ;;  %s2130_s13 = smov (!%p490_p11, %s1376_s13), 7  ;;  %s1459_s17 = smul.u32 48, %s427_s6 }
  0x44   : > { %1429 = vmatprep.subr.bf16.mxu1 %v1506_v60  ;;  %899 = vmatprep.subr.bf16.mxu0 %v1506_v60  ;;  %v1539_v60 = vld [vmem:[%s1841_s8 + $0xd4] ss:$8 sps:$4 sm:$0xff]   ;;  %s492_s16 = scalar_lea.vmem %s2118_s2, %s2130_s13  ;;  %s1426_s24 = sshll.u32 (%p1689_p6), %s1614_s20, 3 }
  0x45   : > { %s2075_s18 = scalar_lea.vmem [#allocation4], %s1459_s17  ;;  %s1183_s29 = scalar_lea.vmem (%p1689_p6), %s2121_s5, %s1426_s24 }
  0x46   : > { %537 = vadd.xlane.f32.xlu0 %v536_v54  ;;  %1445 = vmatpush1.bf16.msra.mxu1 %v1508_v61  ;;  %v1530_v54 = vld [vmem:[%s1841_s8 + $0xa4] ss:$8 sps:$4 sm:$0xff]  }
  0x47   : > { %540 = vadd.xlane.f32.xlu1 %v539_v55  ;;  %900 = vmatpush1.bf16.msra.mxu0 %v1508_v61  ;;  %v1532_v55 = vld [vmem:[%s1841_s8 + $0xa0] ss:$8 sps:$4 sm:$0xff]   ;;  %v1541_v61 = vld [vmem:[%s1841_s8 + $0xd0] ss:$8 sps:$4 sm:$0xff]  }
  0x48   : > { %1430 = vmatprep.subr.bf16.mxu1 %v1509_v62  ;;  %901 = vmatprep.subr.bf16.mxu0 %v1509_v62  ;;  %v1542_v62 = vld [vmem:[%s1841_s8 + $0xe4] ss:$8 sps:$4 sm:$0xff]  }
  0x4a   : > { %1446 = vmatpush1.bf16.msra.mxu1 %v1511_v63 }
  0x4b   : > { %902 = vmatpush1.bf16.msra.mxu0 %v1511_v63  ;;  %1431 = vmatprep.subr.bf16.mxu1 %v1512_v0  ;;  %v1544_v63 = vld [vmem:[%s1841_s8 + $0xe0] ss:$8 sps:$4 sm:$0xff]  }
  0x4c   : > { %903 = vmatprep.subr.bf16.mxu0 %v1512_v0  ;;  %v1545_v0 = vld [vmem:[%s1841_s8 + $0xf4] ss:$8 sps:$4 sm:$0xff]  }
  0x4e   : > { %1447 = vmatpush1.bf16.msra.mxu1 %v1514_v1 }
  0x4f   : > { %904 = vmatpush1.bf16.msra.mxu0 %v1514_v1  ;;  %1432 = vmatprep.subr.bf16.mxu1 %v1515_v2  ;;  %v1547_v1 = vld [vmem:[%s1841_s8 + $0xf0] ss:$8 sps:$4 sm:$0xff]  }
  0x50   : > { %905 = vmatprep.subr.bf16.mxu0 %v1515_v2 }
  0x52   : > { %1448 = vmatpush1.bf16.msra.mxu1 %v1517_v3 }
  0x53   : > { %906 = vmatpush1.bf16.msra.mxu0 %v1517_v3  ;;  %1433 = vmatprep.subr.bf16.mxu1 %v1518_v4 }
  0x54   : > { %907 = vmatprep.subr.bf16.mxu0 %v1518_v4 }
  0x56   : > { %1449 = vmatpush1.bf16.msra.mxu1 %v1520_v5 }
  0x57   : > { %908 = vmatpush1.bf16.msra.mxu0 %v1520_v5  ;;  %1434 = vmatprep.subr.bf16.mxu1 %v1521_v6  ;;  %v623_v5 = vlaneseq }
  0x58   : > { %909 = vmatprep.subr.bf16.mxu0 %v1521_v6 }
  0x5a   : > { %1450 = vmatpush1.bf16.msra.mxu1 %v1523_v7 }
  0x5b   : > { %910 = vmatpush1.bf16.msra.mxu0 %v1523_v7  ;;  %1435 = vmatprep.subr.bf16.mxu1 %v1524_v8 }
  0x5c   : > { %911 = vmatprep.subr.bf16.mxu0 %v1524_v8 }
  0x5e   : > { %1451 = vmatpush1.bf16.msra.mxu1 %v1526_v9 }
  0x5f   : > { %912 = vmatpush1.bf16.msra.mxu0 %v1526_v9 }
  0xcb   : > { %v532_v10 = vpop.xlane.xlu0 %531 }
  0xcc   : > { %v545_v11 = vmul.f32 0.00390625, %v532_v10  ;;  %v526_v12 = vpop.xlane.xlu1 %525 }
  0xcd   : > { %v543_v13 = vmul.f32 0.00390625, %v526_v12  ;;  %v624_v12 = vshrl.u32 %v623_v5, 7 }
  0xce   : > { %v1863_v14 = vsub.f32 %v516_v35, %v545_v11  ;;  %v1867_v15 = vsub.f32 %v517_v36, %v545_v11 }
  0xcf   : > { %v535_v16 = vpop.xlane.xlu0 %534  ;;  %v1871_v17 = vsub.f32 %v512_v40, %v543_v13  ;;  %v1875_v18 = vsub.f32 %v513_v41, %v543_v13 }
  0xd0   : > { %v546_v19 = vmul.f32 0.00390625, %v535_v16  ;;  %v529_v20 = vpop.xlane.xlu1 %528  ;;  %v565_v21 = vmul.f32 %v1863_v14, %v1863_v14  ;;  %v566_v22 = vmul.f32 %v1867_v15, %v1867_v15 }
  0xd1   : > { %v544_v23 = vmul.f32 0.00390625, %v529_v20  ;;  %v561_v24 = vmul.f32 %v1871_v17, %v1871_v17  ;;  %v562_v25 = vmul.f32 %v1875_v18, %v1875_v18 }
  0xd2   : > { %v1887_v26 = vsub.f32 %v518_v37, %v546_v19  ;;  %v1891_v27 = vsub.f32 %v519_v38, %v546_v19  ;;  %v579_v28 = vadd.f32 %v566_v22, %v565_v21 }
  0xd3   : > { %v538_v29 = vpop.xlane.xlu0 %537  ;;  %v1895_v30 = vsub.f32 %v514_v44, %v544_v23  ;;  %v1899_v31 = vsub.f32 %v515_v45, %v544_v23  ;;  %v573_v36 = vadd.f32 %v562_v25, %v561_v24  ;;  %v1947_v23 = vsub.s32 0, %v624_v12 }
  0xd4   : > { %v547_v32 = vmul.f32 0.00390625, %v538_v29  ;;  %580 = vadd.xlane.f32.xlu0 %v579_v28  ;;  %v541_v34 = vpop.xlane.xlu1 %540  ;;  %v567_v35 = vmul.f32 %v1887_v26, %v1887_v26  ;;  %v568_v33 = vmul.f32 %v1891_v27, %v1891_v27  ;;  %v1949_v24 = vsub.s32 1, %v624_v12  ;;  %v621_v28 = vld [vmem:[%s2119_s3] sm:$0x3] }
  0xd5   : > { %v548_v37 = vmul.f32 0.00390625, %v541_v34  ;;  %v563_v38 = vmul.f32 %v1895_v30, %v1895_v30  ;;  %v564_v40 = vmul.f32 %v1899_v31, %v1899_v31 }
  0xd6   : > { %v1911_v39 = vsub.f32 %v520_v49, %v547_v32  ;;  %v1915_v41 = vsub.f32 %v521_v50, %v547_v32  ;;  %v582_v43 = vadd.f32 %v568_v33, %v567_v35  ;;  %v626_v35 = vrot.slane %v621_v28, %v1947_v23 }
  0xd7   : > { %v1919_v44 = vsub.f32 %v522_v52, %v548_v37  ;;  %v1923_v45 = vsub.f32 %v523_v53, %v548_v37  ;;  %v576_v48 = vadd.f32 %v564_v40, %v563_v38  ;;  %v1527_v52 = vld [vmem:[%s1841_s8 + $0x94] ss:$8 sps:$4 sm:$0xff]   ;;  %v1529_v53 = vld [vmem:[%s1841_s8 + $0x90] ss:$8 sps:$4 sm:$0xff]   ;;  %v630_v33 = vrot.slane %v621_v28, %v1949_v24  ;;  %v645_v37 = vld [vmem:[%s2120_s4] sm:$0x3] }
  0xd8   : > { %583 = vadd.xlane.f32.xlu1 %v582_v43  ;;  %574 = vadd.xlane.f32.xlu0 %v573_v36  ;;  %v569_v47 = vmul.f32 %v1911_v39, %v1911_v39  ;;  %v570_v42 = vmul.f32 %v1915_v41, %v1915_v41 }
  0xd9   : > { %v571_v49 = vmul.f32 %v1919_v44, %v1919_v44  ;;  %v572_v50 = vmul.f32 %v1923_v45, %v1923_v45  ;;  %1436 = vmatprep.subr.bf16.mxu1 %v1527_v52  ;;  %913 = vmatprep.subr.bf16.mxu0 %v1527_v52 }
  0xda   : > { %v585_v46 = vadd.f32 %v570_v42, %v569_v47  ;;  %1452 = vmatpush1.bf16.msra.mxu1 %v1529_v53  ;;  %914 = vmatpush1.bf16.msra.mxu0 %v1529_v53  ;;  %v650_v47 = vrot.slane %v645_v37, %v1947_v23  ;;  %v654_v42 = vrot.slane %v645_v37, %v1949_v24 }
  0xdb   : > { %v588_v51 = vadd.f32 %v572_v50, %v571_v49  ;;  %1437 = vmatprep.subr.bf16.mxu1 %v1530_v54  ;;  %915 = vmatprep.subr.bf16.mxu0 %v1530_v54 }
  0xdc   : > { %586 = vadd.xlane.f32.xlu0 %v585_v46  ;;  %577 = vadd.xlane.f32.xlu1 %v576_v48 }
  0xde   : > { %1453 = vmatpush1.bf16.msra.mxu1 %v1532_v55  ;;  %916 = vmatpush1.bf16.msra.mxu0 %v1532_v55 }
  0xdf   : > { %1438 = vmatprep.subr.bf16.mxu1 %v1533_v56  ;;  %917 = vmatprep.subr.bf16.mxu0 %v1533_v56 }
  0xe0   : > { %589 = vadd.xlane.f32.xlu1 %v588_v51 }
  0xe2   : > { %1454 = vmatpush1.bf16.msra.mxu1 %v1535_v57  ;;  %918 = vmatpush1.bf16.msra.mxu0 %v1535_v57 }
  0xe3   : > { %1439 = vmatprep.subr.bf16.mxu1 %v1536_v58  ;;  %919 = vmatprep.subr.bf16.mxu0 %v1536_v58 }
  0xe6   : > { %1455 = vmatpush1.bf16.msra.mxu1 %v1538_v59  ;;  %920 = vmatpush1.bf16.msra.mxu0 %v1538_v59 }
  0xe7   : > { %1440 = vmatprep.subr.bf16.mxu1 %v1539_v60  ;;  %921 = vmatprep.subr.bf16.mxu0 %v1539_v60 }
  0xea   : > { %1456 = vmatpush1.bf16.msra.mxu1 %v1541_v61  ;;  %922 = vmatpush1.bf16.msra.mxu0 %v1541_v61 }
  0xeb   : > { %1441 = vmatprep.subr.bf16.mxu1 %v1542_v62  ;;  %923 = vmatprep.subr.bf16.mxu0 %v1542_v62 }
  0xee   : > { %1457 = vmatpush1.bf16.msra.mxu1 %v1544_v63  ;;  %924 = vmatpush1.bf16.msra.mxu0 %v1544_v63 }
  0xef   : > { %1442 = vmatprep.subr.bf16.mxu1 %v1545_v0  ;;  %925 = vmatprep.subr.bf16.mxu0 %v1545_v0 }
  0xf2   : > { %1458 = vmatpush1.bf16.msra.mxu1 %v1547_v1  ;;  %926 = vmatpush1.bf16.msra.mxu0 %v1547_v1 }
 0x161   : > { %v581_v2 = vpop.xlane.xlu0 %580 }
 0x162   : > { %v593_v3 = vmul.f32 0.00390625, %v581_v2 }
 0x164   : > { %v599_v4 = vadd.f32 1e-06, %v593_v3 }
 0x165   : > { %v575_v6 = vpop.xlane.xlu0 %574  ;;  %v584_v7 = vpop.xlane.xlu1 %583 }
 0x166   : > { %1548 = vrsqrt.f32 %v599_v4  ;;  %v591_v8 = vmul.f32 0.00390625, %v575_v6  ;;  %v594_v9 = vmul.f32 0.00390625, %v584_v7 }
 0x168   : > { %v597_v10 = vadd.f32 1e-06, %v591_v8  ;;  %v600_v11 = vadd.f32 1e-06, %v594_v9 }
 0x169   : > { %v587_v13 = vpop.xlane.xlu0 %586  ;;  %v578_v16 = vpop.xlane.xlu1 %577 }
 0x16a   : > { %1550 = vrsqrt.f32 %v597_v10  ;;  %v595_v19 = vmul.f32 0.00390625, %v587_v13  ;;  %v592_v20 = vmul.f32 0.00390625, %v578_v16  ;;  %v997_v16 = vld [vmem:[%s492_s16] sm:$0x3] }
 0x16b   : > { %1552 = vrsqrt.f32 %v600_v11 }
 0x16c   : > { %v601_v21 = vadd.f32 1e-06, %v595_v19  ;;  %v598_v22 = vadd.f32 1e-06, %v592_v20  ;;  %v1978_v19 = vrot.slane %v997_v16, %v1947_v23  ;;  %v1981_v20 = vrot.slane %v997_v16, %v1949_v24 }
 0x16d   : > { %v590_v25 = vpop.xlane.xlu1 %589 }
 0x16e   : > { %1554 = vrsqrt.f32 %v601_v21  ;;  %v596_v29 = vmul.f32 0.00390625, %v590_v25 }
 0x16f   : > { %1556 = vrsqrt.f32 %v598_v22 }
 0x170   : > { %v1549_v32 = vpop.eup %1548  ;;  %v602_v34 = vadd.f32 1e-06, %v596_v29 }
 0x171   : > { %v614_v36 = vmul.f32 %v1549_v32, %v1867_v15  ;;  %v613_v38 = vmul.f32 %v1549_v32, %v1863_v14 }
 0x172   : > { %1558 = vrsqrt.f32 %v602_v34 }
 0x173   : > { %v638_v43 = vmul.f32 %v630_v33, %v614_v36  ;;  %v637_v48 = vmul.f32 %v626_v35, %v613_v38 }
 0x174   : > { %v1551_v40 = vpop.eup %1550 }
 0x175   : > { %v1553_v49 = vpop.eup %1552  ;;  %v610_v50 = vmul.f32 %v1551_v40, %v1875_v18  ;;  %v609_v46 = vmul.f32 %v1551_v40, %v1871_v17  ;;  %v662_v14 = vadd.f32 %v654_v42, %v638_v43  ;;  %v661_v55 = vadd.f32 %v650_v47, %v637_v48 }
 0x176   : > { %v616_v15 = vmul.f32 %v1553_v49, %v1891_v27  ;;  %v615_v51 = vmul.f32 %v1553_v49, %v1887_v26 }
 0x177   : > { %v634_v57 = vmul.f32 %v630_v33, %v610_v50  ;;  %v633_v58 = vmul.f32 %v626_v35, %v609_v46 }
 0x178   : > { %v1555_v52 = vpop.eup %1554  ;;  %v640_v53 = vmul.f32 %v630_v33, %v616_v15  ;;  %v639_v54 = vmul.f32 %v626_v35, %v615_v51 }
 0x179   : > { %v1557_v56 = vpop.eup %1556  ;;  %v618_v59 = vmul.f32 %v1555_v52, %v1915_v41  ;;  %v617_v60 = vmul.f32 %v1555_v52, %v1911_v39  ;;  %v658_v41 = vadd.f32 %v654_v42, %v634_v57  ;;  %v657_v6 = vadd.f32 %v650_v47, %v633_v58 }
 0x17a   : > { %v664_v61 = vadd.f32 %v654_v42, %v640_v53  ;;  %v663_v18 = vadd.f32 %v650_v47, %v639_v54  ;;  %v612_v17 = vmul.f32 %v1557_v56, %v1899_v31  ;;  %v611_v27 = vmul.f32 %v1557_v56, %v1895_v30 }
 0x17b   : > { %v642_v3 = vmul.f32 %v630_v33, %v618_v59  ;;  %v641_v5 = vmul.f32 %v626_v35, %v617_v60 }
 0x17c   : > { %v1559_v62 = vpop.eup %1558  ;;  %v672_v26 = vpack.c.bf16 %v664_v61, %v662_v14  ;;  %v671_v63 = vpack.c.bf16 %v663_v18, %v661_v55  ;;  %v636_v0 = vmul.f32 %v630_v33, %v612_v17  ;;  %v635_v1 = vmul.f32 %v626_v35, %v611_v27 }
 0x17d   : > { %v620_v2 = vmul.f32 %v1559_v62, %v1923_v45  ;;  %v619_v4 = vmul.f32 %v1559_v62, %v1919_v44  ;;  %v666_v10 = vadd.f32 %v654_v42, %v642_v3  ;;  %v665_v12 = vadd.f32 %v650_v47, %v641_v5 }
 0x17e   : > { %937 = vmatprep.mubr.bf16.mxu1 %v672_v26  ;;  %v660_v39 = vadd.f32 %v654_v42, %v636_v0  ;;  %v659_v7 = vadd.f32 %v650_v47, %v635_v1 }
 0x17f   : > { %938 = vmatmul.mubr.bf16.vlgmr.msra.gmra.mrb[0].mxu1 %v671_v63  ;;  %v644_v31 = vmul.f32 %v630_v33, %v620_v2  ;;  %v643_v30 = vmul.f32 %v626_v35, %v619_v4 }
 0x180   : > { %v670_v8 = vpack.c.bf16 %v660_v39, %v658_v41  ;;  %v669_v9 = vpack.c.bf16 %v659_v7, %v657_v6 }
 0x181   : > { %v668_v11 = vadd.f32 %v654_v42, %v644_v31  ;;  %v667_v13 = vadd.f32 %v650_v47, %v643_v30 }
 0x182   : > { %927 = vmatprep.mubr.bf16.mxu0 %v670_v8 }
 0x183   : > { %928 = vmatmul.mubr.bf16.vlgmr.msra.gmra.mrb[0].mxu0 %v669_v9  ;;  %v674_v45 = vpack.c.bf16 %v668_v11, %v666_v10  ;;  %v673_v44 = vpack.c.bf16 %v667_v13, %v665_v12 }
 0x185   : > { %947 = vmatprep.mubr.bf16.mxu1 %v674_v45 }
 0x187   : > { %948 = vmatmul.mubr.bf16.gmra.mrb[4].mxu1 %v673_v44 }
 0x252   : > { %v939_v21 = vpop.f32.mrb[0].mxu1 }
 0x253   : > { %v1984_v22 = vadd.f32 %v1978_v19, %v939_v21  ;;  %v941_v25 = vpop.f32.mrb[1].mxu1 }
 0x254   : > { %v1987_v28 = vadd.f32 %v1981_v20, %v941_v25  ;;  %v943_v29 = vpop.f32.mrb[2].mxu1 }
 0x255   : > { %v1037_v32 = vmul.f32 0.044715, %v1984_v22  ;;  %v1991_v34 = vadd.f32 %v1978_v19, %v943_v29  ;;  %v945_v35 = vpop.f32.mrb[3].mxu1  ;;  %v1025_v29 = vmul.f32 0.5, %v1984_v22 }
 0x256   : > { %v1038_v23 = vmul.f32 0.044715, %v1987_v28  ;;  %v1995_v24 = vadd.f32 %v1981_v20, %v945_v35  ;;  %v929_v33 = vpop.f32.mrb[0].mxu0 }
 0x257   : > { %v1049_v36 = vmul.f32 %v1037_v32, %v1984_v22  ;;  %v1039_v37 = vmul.f32 0.044715, %v1991_v34  ;;  %v2000_v38 = vadd.f32 %v1978_v19, %v929_v33  ;;  %v931_v40 = vpop.f32.mrb[1].mxu0  ;;  %v1026_v32 = vmul.f32 0.5, %v1987_v28 }
 0x258   : > { %v1050_v43 = vmul.f32 %v1038_v23, %v1987_v28  ;;  %v1040_v47 = vmul.f32 0.044715, %v1995_v24  ;;  %v2005_v42 = vadd.f32 %v1981_v20, %v931_v40  ;;  %v933_v48 = vpop.f32.mrb[2].mxu0  ;;  %v1027_v33 = vmul.f32 0.5, %v1991_v34 }
 0x259   : > { %v1061_v49 = vmul.f32 %v1049_v36, %v1984_v22  ;;  %v1051_v50 = vmul.f32 %v1039_v37, %v1991_v34  ;;  %v1033_v46 = vmul.f32 0.044715, %v2000_v38  ;;  %v935_v15 = vpop.f32.mrb[3].mxu0  ;;  %v2017_v57 = vadd.f32 %v1978_v19, %v933_v48 }
 0x25a   : > { %v1062_v51 = vmul.f32 %v1050_v43, %v1987_v28  ;;  %v1052_v52 = vmul.f32 %v1040_v47, %v1995_v24  ;;  %v1034_v53 = vmul.f32 0.044715, %v2005_v42  ;;  %v949_v14 = vpop.f32.mrb[4].mxu1  ;;  %v2025_v26 = vadd.f32 %v1981_v20, %v935_v15 }
 0x25b   : > { %v1073_v54 = vadd.f32 %v1061_v49, %v1984_v22  ;;  %v1063_v55 = vmul.f32 %v1051_v50, %v1991_v34  ;;  %v1045_v56 = vmul.f32 %v1033_v46, %v2000_v38  ;;  %v951_v58 = vpop.f32.mrb[5].mxu1  ;;  %v1035_v3 = vmul.f32 0.044715, %v2017_v57 }
 0x25c   : > { %v1074_v59 = vadd.f32 %v1062_v51, %v1987_v28  ;;  %v1064_v60 = vmul.f32 %v1052_v52, %v1995_v24  ;;  %v1046_v61 = vmul.f32 %v1034_v53, %v2005_v42  ;;  %v953_v18 = vpop.f32.mrb[6].mxu1  ;;  %v1036_v31 = vmul.f32 0.044715, %v2025_v26 }
 0x25d   : > { %v1085_v17 = vmul.f32 0.7978846, %v1073_v54  ;;  %v1075_v27 = vadd.f32 %v1063_v55, %v1991_v34  ;;  %v1057_v62 = vmul.f32 %v1045_v56, %v2000_v38  ;;  %v955_v63 = vpop.f32.mrb[7].mxu1  ;;  %v1047_v6 = vmul.f32 %v1035_v3, %v2017_v57 }
 0x25e   : > { %v1086_v0 = vmul.f32 0.7978846, %v1074_v59  ;;  %v1076_v1 = vadd.f32 %v1064_v60, %v1995_v24  ;;  %v1058_v2 = vmul.f32 %v1046_v61, %v2005_v42  ;;  %v2035_v30 = vadd.f32 %v1978_v19, %v949_v14 }
 0x25f   : > { %1560 = vtanh.f32 %v1085_v17  ;;  %v1087_v4 = vmul.f32 0.7978846, %v1075_v27  ;;  %v1069_v5 = vadd.f32 %v1057_v62, %v2000_v38  ;;  %v1059_v9 = vmul.f32 %v1047_v6, %v2017_v57 }
 0x260   : > { %1562 = vtanh.f32 %v1086_v0  ;;  %v1088_v41 = vmul.f32 0.7978846, %v1076_v1  ;;  %v1070_v39 = vadd.f32 %v1058_v2, %v2005_v42  ;;  %v2039_v10 = vadd.f32 %v1981_v20, %v951_v58 }
 0x261   : > { %1564 = vtanh.f32 %v1087_v4  ;;  %v1081_v7 = vmul.f32 0.7978846, %v1069_v5  ;;  %v1048_v11 = vmul.f32 %v1036_v31, %v2025_v26  ;;  %v1041_v12 = vmul.f32 0.044715, %v2035_v30 }
 0x262   : > { %1566 = vtanh.f32 %v1088_v41  ;;  %v1082_v8 = vmul.f32 0.7978846, %v1070_v39  ;;  %v1071_v13 = vadd.f32 %v1059_v9, %v2017_v57  ;;  %v1042_v45 = vmul.f32 0.044715, %v2039_v10 }
 0x263   : > { %1568 = vtanh.f32 %v1081_v7  ;;  %v1060_v44 = vmul.f32 %v1048_v11, %v2025_v26  ;;  %v1053_v16 = vmul.f32 %v1041_v12, %v2035_v30  ;;  %v2048_v21 = vadd.f32 %v1978_v19, %v953_v18 }
 0x264   : > { %1570 = vtanh.f32 %v1082_v8  ;;  %v2051_v25 = vadd.f32 %v1981_v20, %v955_v63  ;;  %v1083_v35 = vmul.f32 0.7978846, %v1071_v13  ;;  %v1054_v23 = vmul.f32 %v1042_v45, %v2039_v10 }
 0x265   : > { %v1072_v36 = vadd.f32 %v1060_v44, %v2025_v26  ;;  %v1065_v37 = vmul.f32 %v1053_v16, %v2035_v30  ;;  %v1043_v19 = vmul.f32 0.044715, %v2048_v21  ;;  %v1028_v40 = vmul.f32 0.5, %v1995_v24 }
 0x266   : > { %1572 = vtanh.f32 %v1083_v35  ;;  %v1066_v20 = vmul.f32 %v1054_v23, %v2039_v10  ;;  %v1044_v22 = vmul.f32 0.044715, %v2051_v25  ;;  %v1021_v43 = vmul.f32 0.5, %v2000_v38 }
 0x267   : > { %v1084_v47 = vmul.f32 0.7978846, %v1072_v36  ;;  %v1077_v48 = vadd.f32 %v1065_v37, %v2035_v30  ;;  %v1055_v34 = vmul.f32 %v1043_v19, %v2048_v21  ;;  %v1022_v46 = vmul.f32 0.5, %v2005_v42 }
 0x268   : > { %v1078_v24 = vadd.f32 %v1066_v20, %v2039_v10  ;;  %v1056_v15 = vmul.f32 %v1044_v22, %v2051_v25  ;;  %v1023_v31 = vmul.f32 0.5, %v2017_v57  ;;  %v1024_v11 = vmul.f32 0.5, %v2025_v26 }
 0x269   : > { %v1561_v28 = vpop.eup %1560  ;;  %1574 = vtanh.f32 %v1084_v47  ;;  %v1089_v53 = vmul.f32 0.7978846, %v1077_v48  ;;  %v1067_v38 = vmul.f32 %v1055_v34, %v2048_v21  ;;  %v1029_v16 = vmul.f32 0.5, %v2035_v30 }
 0x26a   : > { %v1563_v49 = vpop.eup %1562  ;;  %v1109_v50 = vadd.f32 1.0, %v1561_v28  ;;  %v1090_v56 = vmul.f32 0.7978846, %v1078_v24  ;;  %v1068_v58 = vmul.f32 %v1056_v15, %v2051_v25  ;;  %v1031_v26 = vmul.f32 0.5, %v2048_v21 }
 0x26b   : > { %v1565_v51 = vpop.eup %1564  ;;  %v1110_v52 = vadd.f32 1.0, %v1563_v49  ;;  %1576 = vtanh.f32 %v1089_v53  ;;  %v1079_v42 = vadd.f32 %v1067_v38, %v2048_v21  ;;  %v1032_v20 = vmul.f32 0.5, %v2051_v25 }
 0x26c   : > { %v1567_v14 = vpop.eup %1566  ;;  %v1121_v54 = vmul.f32 %v1109_v50, %v1025_v29  ;;  %v1111_v55 = vadd.f32 1.0, %v1565_v51  ;;  %1578 = vtanh.f32 %v1090_v56  ;;  %v1080_v62 = vadd.f32 %v1068_v58, %v2051_v25 }
 0x26d   : > { %v1569_v59 = vpop.eup %1568  ;;  %v1122_v60 = vmul.f32 %v1110_v52, %v1026_v32  ;;  %v1112_v61 = vadd.f32 1.0, %v1567_v14  ;;  %v1091_v2 = vmul.f32 0.7978846, %v1079_v42  ;;  %v1030_v32 = vmul.f32 0.5, %v2039_v10 }
 0x26e   : > { %v1571_v18 = vpop.eup %1570  ;;  %v1123_v17 = vmul.f32 %v1111_v55, %v1027_v33  ;;  %v1105_v27 = vadd.f32 1.0, %v1569_v59  ;;  %v1092_v4 = vmul.f32 0.7978846, %v1080_v62 }
 0x26f   : > { %v1422_v63 = vpack.c.bf16 %v1122_v60, %v1121_v54  ;;  %v1124_v0 = vmul.f32 %v1112_v61, %v1028_v40  ;;  %v1106_v1 = vadd.f32 1.0, %v1571_v18  ;;  %1580 = vtanh.f32 %v1091_v2 }
 0x270   : > { %v1117_v3 = vmul.f32 %v1105_v27, %v1021_v43  ;;  %v1573_v39 = vpop.eup %1572  ;;  %1582 = vtanh.f32 %v1092_v4 }
 0x271   : > { %1167 = vst [vmem:[%s2075_s18 + $0x10] sm:$0xff] %v1422_v63  ;;  %v1423_v5 = vpack.c.bf16 %v1124_v0, %v1123_v17  ;;  %v1118_v41 = vmul.f32 %v1106_v1, %v1022_v46  ;;  %v1107_v7 = vadd.f32 1.0, %v1573_v39 }
 0x273   : > { %1168 = vst [vmem:[%s2075_s18 + $0x18] sm:$0xff] %v1423_v5  ;;  %v1420_v6 = vpack.c.bf16 %v1118_v41, %v1117_v3  ;;  %v1575_v8 = vpop.eup %1574  ;;  %v1119_v9 = vmul.f32 %v1107_v7, %v1023_v31 }
 0x274   : > { %v1108_v12 = vadd.f32 1.0, %v1575_v8 }
 0x275   : > { %1165 = vst [vmem:[%s2075_s18] sm:$0xff] %v1420_v6  ;;  %v1577_v13 = vpop.eup %1576 }
 0x276   : > { %v1579_v45 = vpop.eup %1578  ;;  %v1120_v44 = vmul.f32 %v1108_v12, %v1024_v11  ;;  %v1113_v29 = vadd.f32 1.0, %v1577_v13 }
 0x277   : > { %v1114_v35 = vadd.f32 1.0, %v1579_v45 }
 0x278   : > { %v1421_v23 = vpack.c.bf16 %v1120_v44, %v1119_v9  ;;  %v1125_v57 = vmul.f32 %v1113_v29, %v1029_v16  ;;  %v1225_v25 = vld [vmem:[%s2075_s18 + $0x10] sm:$0xff] (%p1689_p6) }
 0x279   : > { %v1581_v33 = vpop.eup %1580  ;;  %v1126_v36 = vmul.f32 %v1114_v35, %v1030_v32  ;;  %1226 = vst [vmem:[%s1183_s29 + $0x40] sm:$0xff] (%p1689_p6), %v1225_v25 }
 0x27a   : > { %v1583_v37 = vpop.eup %1582  ;;  %1166 = vst [vmem:[%s2075_s18 + $0x8] sm:$0xff] %v1421_v23  ;;  %v1115_v19 = vadd.f32 1.0, %v1581_v33  ;;  %v1227_v47 = vld [vmem:[%s2075_s18 + $0x18] sm:$0xff] (%p1689_p6) }
 0x27b   : > { %v1424_v40 = vpack.c.bf16 %v1126_v36, %v1125_v57  ;;  %v1116_v22 = vadd.f32 1.0, %v1583_v37  ;;  %1177 = sbr.rel (!%p1689_p6) target bundleno = 650 (0x28a), region = 90  ;;  %1228 = vst [vmem:[%s1183_s29 + $0x60] sm:$0xff] (%p1689_p6), %v1227_v47 }
 0x27c   : > { %v1127_v30 = vmul.f32 %v1115_v19, %v1031_v26  ;;  %v1221_v10 = vld [vmem:[%s2075_s18] sm:$0xff] (%p1689_p6) }
 0x27d   : > { %1169 = vst [vmem:[%s2075_s18 + $0x20] sm:$0xff] %v1424_v40  ;;  %v1128_v28 = vmul.f32 %v1116_v22, %v1032_v20  ;;  %1222 = vst [vmem:[%s1183_s29] sm:$0xff] (%p1689_p6), %v1221_v10 }
 0x27f   : > { %v1425_v43 = vpack.c.bf16 %v1128_v28, %v1127_v30 }
 0x281   : > { %1170 = vst [vmem:[%s2075_s18 + $0x28] sm:$0xff] %v1425_v43  ;;  %v1223_v21 = vld [vmem:[%s2075_s18 + $0x8] sm:$0xff] (%p1689_p6) }
 0x282   : > { %1224 = vst [vmem:[%s1183_s29 + $0x20] sm:$0xff] %v1223_v21 }
 0x284   : > { %v1229_v48 = vld [vmem:[%s2075_s18 + $0x20] sm:$0xff] }
 0x285   : > { %1230 = vst [vmem:[%s1183_s29 + $0x80] sm:$0xff] %v1229_v48 }
 0x288   : > { %v1231_v34 = vld [vmem:[%s2075_s18 + $0x28] sm:$0xff] }
 0x289   : > { %1232 = vst [vmem:[%s1183_s29 + $0xa0] sm:$0xff] %v1231_v34 }
 0x28a PF: > { %s15_s22 = sadd.s32 1, %s1622_s22   ;;  %s2123_s18 = smov %s1610_s19 }
 0x28b   : > { %p12_p12 = scmp.ge.s32.totalorder %s15_s22, 6   ;;  %s2124_s19 = smov %s1694_s28 }
 0x28c   : > { %s2125_s20 = smov %s1618_s21  ;;  %s2126_s21 = smov %s2128_s23 }
 0x28d   :  { %14 = sbr.rel (!%p12_p12) target bundleno = 3 (0x3), region = 171 }

// kernel: vit_forward.43
= control target key start
LH: loop header
LB: loop body
LE: loop exit
PB: predicated region body
PF: predicated region fallthrough
CT: control target
= control target key end

     0   :  { %s345_s0 = inlined_call_operand.vmem [shape: bf16[48,256], index: 0, kind: input, shape index: {}]   ;;  %s346_s1 = inlined_call_operand.vmem [shape: f32[1,256], index: 1, kind: input, shape index: {}]   ;;  %s347_s2 = inlined_call_operand.vmem [shape: f32[1,256], index: 2, kind: input, shape index: {}]   ;;  %s348_s3 = inlined_call_operand.vmem [shape: f32[48,256], index: 3, kind: output, shape index: {}]  }
   0x1   :  { %v14_v0 = vld [vmem:[%s345_s0] sm:$0xff]  ;;  %v16_v1 = vld [vmem:[%s345_s0 + $0x10] sm:$0xff]  ;;  %v15_v2 = vld [vmem:[%s345_s0 + $0x8] sm:$0xff] }
   0x2   :  { %v20_v3 = vunpack.c.l.bf16 %v14_v0  ;;  %v21_v4 = vunpack.c.h.bf16 %v14_v0  ;;  %v24_v5 = vunpack.c.l.bf16 %v16_v1  ;;  %v25_v6 = vunpack.c.h.bf16 %v16_v1  ;;  %v17_v7 = vld [vmem:[%s345_s0 + $0x18] sm:$0xff]  ;;  %v18_v8 = vld [vmem:[%s345_s0 + $0x20] sm:$0xff]  ;;  %v19_v13 = vld [vmem:[%s345_s0 + $0x28] sm:$0xff] }
   0x3   :  { %v22_v9 = vunpack.c.l.bf16 %v15_v2  ;;  %v23_v10 = vunpack.c.h.bf16 %v15_v2  ;;  %v26_v11 = vunpack.c.l.bf16 %v17_v7  ;;  %v27_v12 = vunpack.c.h.bf16 %v17_v7 }
   0x4   :  { %v32_v14 = vadd.f32 %v21_v4, %v20_v3  ;;  %v38_v15 = vadd.f32 %v25_v6, %v24_v5  ;;  %v28_v16 = vunpack.c.l.bf16 %v18_v8  ;;  %v29_v17 = vunpack.c.h.bf16 %v18_v8 }
   0x5   :  { %v35_v18 = vadd.f32 %v23_v10, %v22_v9  ;;  %v41_v19 = vadd.f32 %v27_v12, %v26_v11  ;;  %v30_v20 = vunpack.c.l.bf16 %v19_v13  ;;  %v31_v21 = vunpack.c.h.bf16 %v19_v13 }
   0x6   :  { %33 = vadd.xlane.f32.xlu0 %v32_v14  ;;  %39 = vadd.xlane.f32.xlu1 %v38_v15  ;;  %v44_v22 = vadd.f32 %v29_v17, %v28_v16 }
   0x7   :  { %v47_v23 = vadd.f32 %v31_v21, %v30_v20 }
   0xa   :  { %36 = vadd.xlane.f32.xlu0 %v35_v18  ;;  %42 = vadd.xlane.f32.xlu1 %v41_v19  ;;  %v129_v19 = vld [vmem:[%s346_s1] sm:$0x3] }
   0xe   :  { %45 = vadd.xlane.f32.xlu0 %v44_v22  ;;  %48 = vadd.xlane.f32.xlu1 %v47_v23  ;;  %v153_v23 = vld [vmem:[%s347_s2] sm:$0x3] }
  0x93   :  { %v34_v24 = vpop.xlane.xlu0 %33  ;;  %v40_v25 = vpop.xlane.xlu1 %39 }
  0x94   :  { %v51_v26 = vmul.f32 0.00390625, %v34_v24  ;;  %v53_v27 = vmul.f32 0.00390625, %v40_v25 }
  0x96   :  { %v243_v28 = vsub.f32 %v20_v3, %v51_v26  ;;  %v245_v29 = vsub.f32 %v21_v4, %v51_v26  ;;  %v247_v30 = vsub.f32 %v24_v5, %v53_v27  ;;  %v249_v31 = vsub.f32 %v25_v6, %v53_v27 }
  0x97   :  { %v37_v32 = vpop.xlane.xlu0 %36  ;;  %v43_v33 = vpop.xlane.xlu1 %42  ;;  %v131_v4 = vlaneseq }
  0x98   :  { %v52_v34 = vmul.f32 0.00390625, %v37_v32  ;;  %v54_v35 = vmul.f32 0.00390625, %v43_v33  ;;  %v69_v36 = vmul.f32 %v243_v28, %v243_v28  ;;  %v70_v37 = vmul.f32 %v245_v29, %v245_v29 }
  0x99   :  { %v73_v38 = vmul.f32 %v247_v30, %v247_v30  ;;  %v74_v39 = vmul.f32 %v249_v31, %v249_v31 }
  0x9a   :  { %v259_v40 = vsub.f32 %v22_v9, %v52_v34  ;;  %v261_v41 = vsub.f32 %v23_v10, %v52_v34  ;;  %v263_v42 = vsub.f32 %v26_v11, %v54_v35  ;;  %v265_v43 = vsub.f32 %v27_v12, %v54_v35 }
  0x9b   :  { %v46_v44 = vpop.xlane.xlu0 %45  ;;  %v81_v45 = vadd.f32 %v70_v37, %v69_v36  ;;  %v49_v46 = vpop.xlane.xlu1 %48  ;;  %v87_v51 = vadd.f32 %v74_v39, %v73_v38  ;;  %v132_v10 = vshrl.u32 %v131_v4, 7 }
  0x9c   :  { %v55_v47 = vmul.f32 0.00390625, %v46_v44  ;;  %v56_v48 = vmul.f32 0.00390625, %v49_v46  ;;  %v71_v49 = vmul.f32 %v259_v40, %v259_v40  ;;  %v72_v50 = vmul.f32 %v261_v41, %v261_v41 }
  0x9d   :  { %82 = vadd.xlane.f32.xlu0 %v81_v45  ;;  %v75_v52 = vmul.f32 %v263_v42, %v263_v42  ;;  %v76_v53 = vmul.f32 %v265_v43, %v265_v43  ;;  %v137_v18 = vsub.s32 1, %v132_v10 }
  0x9e   :  { %v275_v54 = vsub.f32 %v28_v16, %v55_v47  ;;  %v277_v55 = vsub.f32 %v29_v17, %v55_v47  ;;  %v279_v56 = vsub.f32 %v30_v20, %v56_v48  ;;  %v281_v57 = vsub.f32 %v31_v21, %v56_v48 }
  0x9f   :  { %v84_v58 = vadd.f32 %v72_v50, %v71_v49  ;;  %v90_v61 = vadd.f32 %v76_v53, %v75_v52  ;;  %v133_v17 = vsub.s32 0, %v132_v10  ;;  %v138_v26 = vrot.slane %v129_v19, %v137_v18 }
  0xa0   :  { %v77_v59 = vmul.f32 %v275_v54, %v275_v54  ;;  %v78_v60 = vmul.f32 %v277_v55, %v277_v55  ;;  %v79_v62 = vmul.f32 %v279_v56, %v279_v56  ;;  %v80_v63 = vmul.f32 %v281_v57, %v281_v57 }
  0xa1   :  { %88 = vadd.xlane.f32.xlu0 %v87_v51  ;;  %85 = vadd.xlane.f32.xlu1 %v84_v58  ;;  %v134_v25 = vrot.slane %v129_v19, %v133_v17  ;;  %v158_v33 = vrot.slane %v153_v23, %v133_v17  ;;  %v162_v34 = vrot.slane %v153_v23, %v137_v18 }
  0xa2   :  { %v93_v0 = vadd.f32 %v78_v60, %v77_v59  ;;  %v96_v1 = vadd.f32 %v80_v63, %v79_v62 }
  0xa5   :  { %91 = vadd.xlane.f32.xlu1 %v90_v61  ;;  %94 = vadd.xlane.f32.xlu0 %v93_v0 }
  0xa9   :  { %97 = vadd.xlane.f32.xlu1 %v96_v1 }
 0x12a   :  { %v83_v2 = vpop.xlane.xlu0 %82 }
 0x12b   :  { %v99_v3 = vmul.f32 0.00390625, %v83_v2 }
 0x12d   :  { %v105_v5 = vadd.f32 1e-06, %v99_v3 }
 0x12e   :  { %v86_v6 = vpop.xlane.xlu1 %85  ;;  %v89_v7 = vpop.xlane.xlu0 %88 }
 0x12f   :  { %193 = vrsqrt.f32 %v105_v5  ;;  %v100_v8 = vmul.f32 0.00390625, %v86_v6  ;;  %v101_v9 = vmul.f32 0.00390625, %v89_v7 }
 0x131   :  { %v106_v11 = vadd.f32 1e-06, %v100_v8  ;;  %v107_v12 = vadd.f32 1e-06, %v101_v9 }
 0x132   :  { %v92_v13 = vpop.xlane.xlu1 %91  ;;  %v95_v14 = vpop.xlane.xlu0 %94 }
 0x133   :  { %195 = vrsqrt.f32 %v106_v11  ;;  %v102_v15 = vmul.f32 0.00390625, %v92_v13  ;;  %v103_v16 = vmul.f32 0.00390625, %v95_v14 }
 0x134   :  { %197 = vrsqrt.f32 %v107_v12 }
 0x135   :  { %v108_v20 = vadd.f32 1e-06, %v102_v15  ;;  %v109_v21 = vadd.f32 1e-06, %v103_v16 }
 0x136   :  { %v98_v22 = vpop.xlane.xlu1 %97 }
 0x137   :  { %199 = vrsqrt.f32 %v108_v20  ;;  %v104_v24 = vmul.f32 0.00390625, %v98_v22 }
 0x138   :  { %201 = vrsqrt.f32 %v109_v21 }
 0x139   :  { %v194_v27 = vpop.eup %193  ;;  %v110_v32 = vadd.f32 1e-06, %v104_v24 }
 0x13a   :  { %v117_v35 = vmul.f32 %v194_v27, %v243_v28  ;;  %v118_v36 = vmul.f32 %v194_v27, %v245_v29 }
 0x13b   :  { %203 = vrsqrt.f32 %v110_v32 }
 0x13c   :  { %v141_v37 = vmul.f32 %v134_v25, %v117_v35  ;;  %v142_v38 = vmul.f32 %v138_v26, %v118_v36 }
 0x13d   :  { %v196_v39 = vpop.eup %195 }
 0x13e   :  { %v198_v44 = vpop.eup %197  ;;  %v165_v45 = vadd.f32 %v158_v33, %v141_v37  ;;  %v166_v46 = vadd.f32 %v162_v34, %v142_v38  ;;  %v119_v47 = vmul.f32 %v196_v39, %v259_v40  ;;  %v120_v48 = vmul.f32 %v196_v39, %v261_v41 }
 0x13f   :  { %v121_v49 = vmul.f32 %v198_v44, %v247_v30  ;;  %v122_v50 = vmul.f32 %v198_v44, %v249_v31 }
 0x140   :  { %177 = vst [vmem:[%s348_s3] sm:$0xff] %v165_v45  ;;  %178 = vst [vmem:[%s348_s3 + $0x8] sm:$0xff] %v166_v46  ;;  %v143_v28 = vmul.f32 %v134_v25, %v119_v47  ;;  %v144_v29 = vmul.f32 %v138_v26, %v120_v48 }
 0x141   :  { %v200_v51 = vpop.eup %199  ;;  %v145_v52 = vmul.f32 %v134_v25, %v121_v49  ;;  %v146_v53 = vmul.f32 %v138_v26, %v122_v50 }
 0x142   :  { %v202_v40 = vpop.eup %201  ;;  %v167_v58 = vadd.f32 %v158_v33, %v143_v28  ;;  %v168_v41 = vadd.f32 %v162_v34, %v144_v29  ;;  %v123_v30 = vmul.f32 %v200_v51, %v263_v42  ;;  %v124_v31 = vmul.f32 %v200_v51, %v265_v43 }
 0x143   :  { %v169_v59 = vadd.f32 %v158_v33, %v145_v52  ;;  %v170_v60 = vadd.f32 %v162_v34, %v146_v53  ;;  %v125_v61 = vmul.f32 %v202_v40, %v275_v54  ;;  %v126_v62 = vmul.f32 %v202_v40, %v277_v55 }
 0x144   :  { %179 = vst [vmem:[%s348_s3 + $0x10] sm:$0xff] %v167_v58  ;;  %180 = vst [vmem:[%s348_s3 + $0x18] sm:$0xff] %v168_v41  ;;  %v147_v63 = vmul.f32 %v134_v25, %v123_v30  ;;  %v148_v0 = vmul.f32 %v138_v26, %v124_v31 }
 0x145   :  { %v204_v1 = vpop.eup %203  ;;  %181 = vst [vmem:[%s348_s3 + $0x20] sm:$0xff] %v169_v59  ;;  %182 = vst [vmem:[%s348_s3 + $0x28] sm:$0xff] %v170_v60  ;;  %v149_v42 = vmul.f32 %v134_v25, %v125_v61  ;;  %v150_v43 = vmul.f32 %v138_v26, %v126_v62 }
 0x146   :  { %v171_v54 = vadd.f32 %v158_v33, %v147_v63  ;;  %v172_v55 = vadd.f32 %v162_v34, %v148_v0  ;;  %v127_v2 = vmul.f32 %v204_v1, %v279_v56  ;;  %v128_v3 = vmul.f32 %v204_v1, %v281_v57 }
 0x147   :  { %v173_v4 = vadd.f32 %v158_v33, %v149_v42  ;;  %v174_v5 = vadd.f32 %v162_v34, %v150_v43 }
 0x148   :  { %183 = vst [vmem:[%s348_s3 + $0x30] sm:$0xff] %v171_v54  ;;  %184 = vst [vmem:[%s348_s3 + $0x38] sm:$0xff] %v172_v55  ;;  %v151_v6 = vmul.f32 %v134_v25, %v127_v2  ;;  %v152_v7 = vmul.f32 %v138_v26, %v128_v3 }
 0x149   :  { %185 = vst [vmem:[%s348_s3 + $0x40] sm:$0xff] %v173_v4  ;;  %186 = vst [vmem:[%s348_s3 + $0x48] sm:$0xff] %v174_v5 }
 0x14a   :  { %v175_v56 = vadd.f32 %v158_v33, %v151_v6  ;;  %v176_v57 = vadd.f32 %v162_v34, %v152_v7 }
 0x14c   :  { %187 = vst [vmem:[%s348_s3 + $0x50] sm:$0xff] %v175_v56  ;;  %188 = vst [vmem:[%s348_s3 + $0x58] sm:$0xff] %v176_v57 }

// kernel: vit_forward.27
= control target key start
LH: loop header
LB: loop body
LE: loop exit
PB: predicated region body
PF: predicated region fallthrough
CT: control target
= control target key end

     0   :  { %s2292_s1 = inlined_call_operand.vmem [shape: bf16[1024,256], index: 1, kind: input, shape index: {}]   ;;  %s2293_s0 = inlined_call_operand.vmem [shape: bf16[48,1024], index: 0, kind: input, shape index: {}]   ;;  %s2294_s2 = inlined_call_operand.vmem [shape: f32[1,256], index: 2, kind: input, shape index: {}]   ;;  %s2295_s3 = inlined_call_operand.vmem [shape: bf16[48,256], index: 3, kind: input, shape index: {}]   ;;  %s2296_s4 = inlined_call_operand.vmem [shape: bf16[48,256], index: 4, kind: output, shape index: {}]  }
   0x1   :  { %v1548_v0 = vld [vmem:[%s2292_s1 + $0x4] ss:$8 sps:$4 sm:$0xff]   ;;  %v1552_v2 = vld [vmem:[%s2292_s1] ss:$8 sps:$4 sm:$0xff]   ;;  %v1554_v4 = vld [vmem:[%s2292_s1 + $0x14] ss:$8 sps:$4 sm:$0xff]  }
   0x2   :  { %v1550_v1 = vld [vmem:[%s2292_s1 + $0x204] ss:$8 sps:$4 sm:$0xff]   ;;  %957 = vmatprep.subr.bf16.mxu1 %v1548_v0  ;;  %v1553_v3 = vld [vmem:[%s2292_s1 + $0x200] ss:$8 sps:$4 sm:$0xff]   ;;  %v1556_v5 = vld [vmem:[%s2292_s1 + $0x214] ss:$8 sps:$4 sm:$0xff]  }
   0x3   :  { %1083 = vmatprep.subr.bf16.mxu0 %v1550_v1  ;;  %958 = vmatpush1.bf16.msra.mxu1 %v1552_v2  ;;  %v1558_v6 = vld [vmem:[%s2292_s1 + $0x10] ss:$8 sps:$4 sm:$0xff]   ;;  %v1560_v8 = vld [vmem:[%s2292_s1 + $0x24] ss:$8 sps:$4 sm:$0xff]   ;;  %v1564_v10 = vld [vmem:[%s2292_s1 + $0x20] ss:$8 sps:$4 sm:$0xff]  }
   0x4   :  { %1084 = vmatpush1.bf16.msra.mxu0 %v1553_v3  ;;  %959 = vmatprep.subr.bf16.mxu1 %v1554_v4  ;;  %v1559_v7 = vld [vmem:[%s2292_s1 + $0x210] ss:$8 sps:$4 sm:$0xff]   ;;  %v1562_v9 = vld [vmem:[%s2292_s1 + $0x224] ss:$8 sps:$4 sm:$0xff]   ;;  %v1565_v11 = vld [vmem:[%s2292_s1 + $0x220] ss:$8 sps:$4 sm:$0xff]  }
   0x5   :  { %1085 = vmatprep.subr.bf16.mxu0 %v1556_v5  ;;  %v1566_v12 = vld [vmem:[%s2292_s1 + $0x34] ss:$8 sps:$4 sm:$0xff]   ;;  %v1570_v14 = vld [vmem:[%s2292_s1 + $0x30] ss:$8 sps:$4 sm:$0xff]   ;;  %v1572_v16 = vld [vmem:[%s2292_s1 + $0x44] ss:$8 sps:$4 sm:$0xff]  }
   0x6   :  { %v1568_v13 = vld [vmem:[%s2292_s1 + $0x234] ss:$8 sps:$4 sm:$0xff]   ;;  %v1571_v15 = vld [vmem:[%s2292_s1 + $0x230] ss:$8 sps:$4 sm:$0xff]   ;;  %v1574_v17 = vld [vmem:[%s2292_s1 + $0x244] ss:$8 sps:$4 sm:$0xff]  }
   0x7   :  { %960 = vmatpush1.bf16.msra.mxu1 %v1558_v6  ;;  %v1576_v18 = vld [vmem:[%s2292_s1 + $0x40] ss:$8 sps:$4 sm:$0xff]   ;;  %v1578_v20 = vld [vmem:[%s2292_s1 + $0x54] ss:$8 sps:$4 sm:$0xff]   ;;  %v1582_v22 = vld [vmem:[%s2292_s1 + $0x50] ss:$8 sps:$4 sm:$0xff]  }
   0x8   :  { %1086 = vmatpush1.bf16.msra.mxu0 %v1559_v7  ;;  %961 = vmatprep.subr.bf16.mxu1 %v1560_v8  ;;  %v1577_v19 = vld [vmem:[%s2292_s1 + $0x240] ss:$8 sps:$4 sm:$0xff]   ;;  %v1580_v21 = vld [vmem:[%s2292_s1 + $0x254] ss:$8 sps:$4 sm:$0xff]   ;;  %v1583_v23 = vld [vmem:[%s2292_s1 + $0x250] ss:$8 sps:$4 sm:$0xff]  }
   0x9   :  { %1087 = vmatprep.subr.bf16.mxu0 %v1562_v9  ;;  %v1584_v24 = vld [vmem:[%s2292_s1 + $0x64] ss:$8 sps:$4 sm:$0xff]   ;;  %v1588_v26 = vld [vmem:[%s2292_s1 + $0x60] ss:$8 sps:$4 sm:$0xff]   ;;  %v1590_v28 = vld [vmem:[%s2292_s1 + $0x74] ss:$8 sps:$4 sm:$0xff]  }
   0xa   :  { %v1586_v25 = vld [vmem:[%s2292_s1 + $0x264] ss:$8 sps:$4 sm:$0xff]   ;;  %v1589_v27 = vld [vmem:[%s2292_s1 + $0x260] ss:$8 sps:$4 sm:$0xff]   ;;  %v1592_v29 = vld [vmem:[%s2292_s1 + $0x274] ss:$8 sps:$4 sm:$0xff]  }
   0xb   :  { %962 = vmatpush1.bf16.msra.mxu1 %v1564_v10  ;;  %v1594_v30 = vld [vmem:[%s2292_s1 + $0x70] ss:$8 sps:$4 sm:$0xff]   ;;  %v1596_v32 = vld [vmem:[%s2292_s1 + $0x84] ss:$8 sps:$4 sm:$0xff]   ;;  %v1600_v34 = vld [vmem:[%s2292_s1 + $0x80] ss:$8 sps:$4 sm:$0xff]  }
   0xc   :  { %1088 = vmatpush1.bf16.msra.mxu0 %v1565_v11  ;;  %963 = vmatprep.subr.bf16.mxu1 %v1566_v12  ;;  %v1595_v31 = vld [vmem:[%s2292_s1 + $0x270] ss:$8 sps:$4 sm:$0xff]   ;;  %v1598_v33 = vld [vmem:[%s2292_s1 + $0x284] ss:$8 sps:$4 sm:$0xff]   ;;  %v1601_v35 = vld [vmem:[%s2292_s1 + $0x280] ss:$8 sps:$4 sm:$0xff]  }
   0xd   :  { %1089 = vmatprep.subr.bf16.mxu0 %v1568_v13  ;;  %v1602_v36 = vld [vmem:[%s2292_s1 + $0x94] ss:$8 sps:$4 sm:$0xff]   ;;  %v1606_v38 = vld [vmem:[%s2292_s1 + $0x90] ss:$8 sps:$4 sm:$0xff]   ;;  %v1608_v40 = vld [vmem:[%s2292_s1 + $0xa4] ss:$8 sps:$4 sm:$0xff]  }
   0xe   :  { %v1604_v37 = vld [vmem:[%s2292_s1 + $0x294] ss:$8 sps:$4 sm:$0xff]   ;;  %v1607_v39 = vld [vmem:[%s2292_s1 + $0x290] ss:$8 sps:$4 sm:$0xff]   ;;  %v1610_v41 = vld [vmem:[%s2292_s1 + $0x2a4] ss:$8 sps:$4 sm:$0xff]  }
   0xf   :  { %964 = vmatpush1.bf16.msra.mxu1 %v1570_v14  ;;  %v1612_v42 = vld [vmem:[%s2292_s1 + $0xa0] ss:$8 sps:$4 sm:$0xff]   ;;  %v1614_v44 = vld [vmem:[%s2292_s1 + $0xb4] ss:$8 sps:$4 sm:$0xff]   ;;  %v1618_v46 = vld [vmem:[%s2292_s1 + $0xb0] ss:$8 sps:$4 sm:$0xff]  }
  0x10   :  { %1090 = vmatpush1.bf16.msra.mxu0 %v1571_v15  ;;  %965 = vmatprep.subr.bf16.mxu1 %v1572_v16  ;;  %v1613_v43 = vld [vmem:[%s2292_s1 + $0x2a0] ss:$8 sps:$4 sm:$0xff]   ;;  %v1616_v45 = vld [vmem:[%s2292_s1 + $0x2b4] ss:$8 sps:$4 sm:$0xff]   ;;  %v1619_v47 = vld [vmem:[%s2292_s1 + $0x2b0] ss:$8 sps:$4 sm:$0xff]  }
  0x11   :  { %1091 = vmatprep.subr.bf16.mxu0 %v1574_v17  ;;  %v17_v48 = vld [vmem:[%s2293_s0] sm:$0xff]  ;;  %v19_v53 = vld [vmem:[%s2293_s0 + $0x10] sm:$0xff] }
  0x12   :  { %v21_v49 = vld [vmem:[%s2293_s0 + $0x20] sm:$0xff]  ;;  %v23_v54 = vld [vmem:[%s2293_s0 + $0x30] sm:$0xff] }
  0x13   :  { %966 = vmatpush1.bf16.msra.mxu1 %v1576_v18  ;;  %v1620_v50 = vld [vmem:[%s2292_s1 + $0xc4] ss:$8 sps:$4 sm:$0xff]   ;;  %v1349_v52 = vcombine.high %v17_v48, %v21_v49  ;;  %v1353_v55 = vcombine.high %v19_v53, %v23_v54  ;;  %v1624_v56 = vld [vmem:[%s2292_s1 + $0xc0] ss:$8 sps:$4 sm:$0xff]   ;;  %v1626_v58 = vld [vmem:[%s2292_s1 + $0xd4] ss:$8 sps:$4 sm:$0xff]   ;;  %v1348_v8 = vcombine.low %v17_v48, %v21_v49  ;;  %v1352_v10 = vcombine.low %v19_v53, %v23_v54 }
  0x14   :  { %1092 = vmatpush1.bf16.msra.mxu0 %v1577_v19  ;;  %967 = vmatprep.subr.bf16.mxu1 %v1578_v20  ;;  %v1622_v51 = vld [vmem:[%s2292_s1 + $0x2c4] ss:$8 sps:$4 sm:$0xff]   ;;  %v1625_v57 = vld [vmem:[%s2292_s1 + $0x2c0] ss:$8 sps:$4 sm:$0xff]   ;;  %v1628_v59 = vld [vmem:[%s2292_s1 + $0x2d4] ss:$8 sps:$4 sm:$0xff]  }
  0x15   :  { %1093 = vmatprep.subr.bf16.mxu0 %v1580_v21  ;;  %989 = vmatprep.mubr.bf16.mxu1 %v1349_v52  ;;  %v1630_v60 = vld [vmem:[%s2292_s1 + $0xd0] ss:$8 sps:$4 sm:$0xff]   ;;  %v1632_v62 = vld [vmem:[%s2292_s1 + $0xe4] ss:$8 sps:$4 sm:$0xff]   ;;  %v1636_v0 = vld [vmem:[%s2292_s1 + $0xe0] ss:$8 sps:$4 sm:$0xff]  }
  0x16   :  { %1115 = vmatprep.mubr.bf16.mxu0 %v1353_v55  ;;  %v1631_v61 = vld [vmem:[%s2292_s1 + $0x2d0] ss:$8 sps:$4 sm:$0xff]   ;;  %v1634_v63 = vld [vmem:[%s2292_s1 + $0x2e4] ss:$8 sps:$4 sm:$0xff]   ;;  %v1637_v1 = vld [vmem:[%s2292_s1 + $0x2e0] ss:$8 sps:$4 sm:$0xff]  }
  0x17   :  { %968 = vmatpush1.bf16.msra.mxu1 %v1582_v22  ;;  %v1638_v2 = vld [vmem:[%s2292_s1 + $0xf4] ss:$8 sps:$4 sm:$0xff]   ;;  %v1642_v4 = vld [vmem:[%s2292_s1 + $0xf0] ss:$8 sps:$4 sm:$0xff]   ;;  %v1646_v6 = vld [vmem:[%s2292_s1 + $0x104] ss:$8 sps:$4 sm:$0xff]  }
  0x18   :  { %1094 = vmatpush1.bf16.msra.mxu0 %v1583_v23  ;;  %969 = vmatprep.subr.bf16.mxu1 %v1584_v24  ;;  %v1640_v3 = vld [vmem:[%s2292_s1 + $0x2f4] ss:$8 sps:$4 sm:$0xff]   ;;  %v1643_v5 = vld [vmem:[%s2292_s1 + $0x2f0] ss:$8 sps:$4 sm:$0xff]   ;;  %v1649_v7 = vld [vmem:[%s2292_s1 + $0x304] ss:$8 sps:$4 sm:$0xff]  }
  0x19   :  { %1095 = vmatprep.subr.bf16.mxu0 %v1586_v25  ;;  %v1644_v9 = vld [vmem:[%s2292_s1 + $0x100] ss:$8 sps:$4 sm:$0xff]   ;;  %v1652_v12 = vld [vmem:[%s2292_s1 + $0x114] ss:$8 sps:$4 sm:$0xff]   ;;  %v1650_v14 = vld [vmem:[%s2292_s1 + $0x110] ss:$8 sps:$4 sm:$0xff]  }
  0x1a   :  { %v1647_v11 = vld [vmem:[%s2292_s1 + $0x300] ss:$8 sps:$4 sm:$0xff]   ;;  %v1655_v13 = vld [vmem:[%s2292_s1 + $0x314] ss:$8 sps:$4 sm:$0xff]   ;;  %v1653_v15 = vld [vmem:[%s2292_s1 + $0x310] ss:$8 sps:$4 sm:$0xff]  }
  0x1b   :  { %970 = vmatpush1.bf16.msra.mxu1 %v1588_v26  ;;  %v1658_v16 = vld [vmem:[%s2292_s1 + $0x124] ss:$8 sps:$4 sm:$0xff]   ;;  %v1656_v18 = vld [vmem:[%s2292_s1 + $0x120] ss:$8 sps:$4 sm:$0xff]   ;;  %v1664_v20 = vld [vmem:[%s2292_s1 + $0x134] ss:$8 sps:$4 sm:$0xff]  }
  0x1c   :  { %1096 = vmatpush1.bf16.msra.mxu0 %v1589_v27  ;;  %971 = vmatprep.subr.bf16.mxu1 %v1590_v28  ;;  %v1661_v17 = vld [vmem:[%s2292_s1 + $0x324] ss:$8 sps:$4 sm:$0xff]   ;;  %v1659_v19 = vld [vmem:[%s2292_s1 + $0x320] ss:$8 sps:$4 sm:$0xff]   ;;  %v1667_v21 = vld [vmem:[%s2292_s1 + $0x334] ss:$8 sps:$4 sm:$0xff]  }
  0x1d   :  { %1097 = vmatprep.subr.bf16.mxu0 %v1592_v29  ;;  %v1662_v22 = vld [vmem:[%s2292_s1 + $0x130] ss:$8 sps:$4 sm:$0xff]   ;;  %v1670_v24 = vld [vmem:[%s2292_s1 + $0x144] ss:$8 sps:$4 sm:$0xff]   ;;  %v1680_v49 = vld [vmem:[%s2292_s1 + $0x160] ss:$8 sps:$4 sm:$0xff]  }
  0x1e   :  { %v1665_v23 = vld [vmem:[%s2292_s1 + $0x330] ss:$8 sps:$4 sm:$0xff]   ;;  %v1673_v25 = vld [vmem:[%s2292_s1 + $0x344] ss:$8 sps:$4 sm:$0xff]   ;;  %v1688_v52 = vld [vmem:[%s2292_s1 + $0x174] ss:$8 sps:$4 sm:$0xff]  }
  0x1f   :  { %972 = vmatpush1.bf16.msra.mxu1 %v1594_v30  ;;  %v25_v26 = vld [vmem:[%s2293_s0 + $0x40] sm:$0xff]  ;;  %v27_v28 = vld [vmem:[%s2293_s0 + $0x50] sm:$0xff]  ;;  %v2086_v54 = vld [vmem:[%s2293_s0 + $0x8] sm:$0xff] }
  0x20   :  { %1098 = vmatpush1.bf16.msra.mxu0 %v1595_v31  ;;  %973 = vmatprep.subr.bf16.mxu1 %v1596_v32  ;;  %v29_v27 = vld [vmem:[%s2293_s0 + $0x60] sm:$0xff]  ;;  %v31_v30 = vld [vmem:[%s2293_s0 + $0x70] sm:$0xff]  ;;  %v2091_v55 = vld [vmem:[%s2293_s0 + $0x28] sm:$0xff] }
  0x21   :  { %1099 = vmatprep.subr.bf16.mxu0 %v1598_v33  ;;  %v1357_v29 = vcombine.high %v25_v26, %v29_v27  ;;  %v1361_v31 = vcombine.high %v27_v28, %v31_v30  ;;  %v1356_v32 = vcombine.low %v25_v26, %v29_v27  ;;  %v1668_v33 = vld [vmem:[%s2292_s1 + $0x140] ss:$8 sps:$4 sm:$0xff]   ;;  %v1691_v53 = vld [vmem:[%s2292_s1 + $0x374] ss:$8 sps:$4 sm:$0xff]  }
  0x22   :  { %v1736_v26 = vld [vmem:[%s2292_s1 + $0x1f4] ss:$8 sps:$4 sm:$0xff]  }
  0x23   :  { %974 = vmatpush1.bf16.msra.mxu1 %v1600_v34  ;;  %v1671_v34 = vld [vmem:[%s2292_s1 + $0x340] ss:$8 sps:$4 sm:$0xff]   ;;  %v1739_v27 = vld [vmem:[%s2292_s1 + $0x3f4] ss:$8 sps:$4 sm:$0xff]  }
  0x24   :  { %1100 = vmatpush1.bf16.msra.mxu0 %v1601_v35  ;;  %975 = vmatprep.subr.bf16.mxu1 %v1602_v36  ;;  %v1360_v35 = vcombine.low %v27_v28, %v31_v30  ;;  %v1676_v36 = vld [vmem:[%s2292_s1 + $0x154] ss:$8 sps:$4 sm:$0xff]   ;;  %v1734_v28 = vld [vmem:[%s2292_s1 + $0x1f0] ss:$8 sps:$4 sm:$0xff]   ;;  %v26_v30 = vld [vmem:[%s2293_s0 + $0x48] sm:$0xff] }
  0x25   :  { %1101 = vmatprep.subr.bf16.mxu0 %v1604_v37  ;;  %v1679_v37 = vld [vmem:[%s2292_s1 + $0x354] ss:$8 sps:$4 sm:$0xff]  }
  0x27   :  { %976 = vmatpush1.bf16.msra.mxu1 %v1606_v38  ;;  %v1674_v38 = vld [vmem:[%s2292_s1 + $0x150] ss:$8 sps:$4 sm:$0xff]  }
  0x28   :  { %1102 = vmatpush1.bf16.msra.mxu0 %v1607_v39  ;;  %977 = vmatprep.subr.bf16.mxu1 %v1608_v40  ;;  %v1677_v39 = vld [vmem:[%s2292_s1 + $0x350] ss:$8 sps:$4 sm:$0xff]   ;;  %v33_v40 = vld [vmem:[%s2293_s0 + $0x80] sm:$0xff] }
  0x29   :  { %1103 = vmatprep.subr.bf16.mxu0 %v1610_v41  ;;  %v37_v41 = vld [vmem:[%s2293_s0 + $0xa0] sm:$0xff] }
  0x2a   :  { %v1364_v48 = vcombine.low %v33_v40, %v37_v41 }
  0x2b   :  { %978 = vmatpush1.bf16.msra.mxu1 %v1612_v42  ;;  %v35_v42 = vld [vmem:[%s2293_s0 + $0x90] sm:$0xff] }
  0x2c   :  { %1104 = vmatpush1.bf16.msra.mxu0 %v1613_v43  ;;  %979 = vmatprep.subr.bf16.mxu1 %v1614_v44  ;;  %v39_v43 = vld [vmem:[%s2293_s0 + $0xb0] sm:$0xff]  ;;  %v1682_v44 = vld [vmem:[%s2292_s1 + $0x164] ss:$8 sps:$4 sm:$0xff]  }
  0x2d   :  { %1105 = vmatprep.subr.bf16.mxu0 %v1616_v45  ;;  %v1365_v45 = vcombine.high %v33_v40, %v37_v41  ;;  %v36_v40 = vld [vmem:[%s2293_s0 + $0x98] sm:$0xff] }
  0x2e   :  { %v40_v41 = vld [vmem:[%s2293_s0 + $0xb8] sm:$0xff] }
  0x2f   :  { %980 = vmatpush1.bf16.msra.mxu1 %v1618_v46  ;;  %v1369_v46 = vcombine.high %v35_v42, %v39_v43 }
  0x30   :  { %1106 = vmatpush1.bf16.msra.mxu0 %v1619_v47  ;;  %981 = vmatprep.subr.bf16.mxu1 %v1620_v50  ;;  %v1685_v47 = vld [vmem:[%s2292_s1 + $0x364] ss:$8 sps:$4 sm:$0xff]   ;;  %v1683_v50 = vld [vmem:[%s2292_s1 + $0x360] ss:$8 sps:$4 sm:$0xff]  }
  0x31   :  { %1107 = vmatprep.subr.bf16.mxu0 %v1622_v51  ;;  %v1368_v51 = vcombine.low %v35_v42, %v39_v43 }
  0x33   :  { %982 = vmatpush1.bf16.msra.mxu1 %v1624_v56  ;;  %v1351_v56 = vcombine.high %v2086_v54, %v2091_v55 }
  0x34   :  { %1108 = vmatpush1.bf16.msra.mxu0 %v1625_v57  ;;  %983 = vmatprep.subr.bf16.mxu1 %v1626_v58  ;;  %v2098_v57 = vld [vmem:[%s2293_s0 + $0x18] sm:$0xff] }
  0x35   :  { %1109 = vmatprep.subr.bf16.mxu0 %v1628_v59  ;;  %v2103_v58 = vld [vmem:[%s2293_s0 + $0x38] sm:$0xff] }
  0x36   :  { %v1355_v59 = vcombine.high %v2098_v57, %v2103_v58 }
  0x37   :  { %984 = vmatpush1.bf16.msra.mxu1 %v1630_v60  ;;  %v1686_v60 = vld [vmem:[%s2292_s1 + $0x170] ss:$8 sps:$4 sm:$0xff]  }
  0x38   :  { %1110 = vmatpush1.bf16.msra.mxu0 %v1631_v61  ;;  %985 = vmatprep.subr.bf16.mxu1 %v1632_v62  ;;  %v1689_v61 = vld [vmem:[%s2292_s1 + $0x370] ss:$8 sps:$4 sm:$0xff]   ;;  %v1694_v62 = vld [vmem:[%s2292_s1 + $0x184] ss:$8 sps:$4 sm:$0xff]  }
  0x39   :  { %1111 = vmatprep.subr.bf16.mxu0 %v1634_v63  ;;  %v1697_v63 = vld [vmem:[%s2292_s1 + $0x384] ss:$8 sps:$4 sm:$0xff]  }
  0x3b   :  { %986 = vmatpush1.bf16.msra.mxu1 %v1636_v0  ;;  %v1692_v0 = vld [vmem:[%s2292_s1 + $0x180] ss:$8 sps:$4 sm:$0xff]  }
  0x3c   :  { %1112 = vmatpush1.bf16.msra.mxu0 %v1637_v1  ;;  %987 = vmatprep.subr.bf16.mxu1 %v1638_v2  ;;  %v1695_v1 = vld [vmem:[%s2292_s1 + $0x380] ss:$8 sps:$4 sm:$0xff]   ;;  %v1700_v2 = vld [vmem:[%s2292_s1 + $0x194] ss:$8 sps:$4 sm:$0xff]  }
  0x3d   :  { %1113 = vmatprep.subr.bf16.mxu0 %v1640_v3  ;;  %v1703_v3 = vld [vmem:[%s2292_s1 + $0x394] ss:$8 sps:$4 sm:$0xff]  }
  0x3f   :  { %988 = vmatpush1.bf16.msra.mxu1 %v1642_v4  ;;  %v1698_v4 = vld [vmem:[%s2292_s1 + $0x190] ss:$8 sps:$4 sm:$0xff]  }
  0x40   :  { %1114 = vmatpush1.bf16.msra.mxu0 %v1643_v5  ;;  %1020 = vmatprep.subr.bf16.mxu1 %v1646_v6  ;;  %v1701_v5 = vld [vmem:[%s2292_s1 + $0x390] ss:$8 sps:$4 sm:$0xff]   ;;  %v1706_v6 = vld [vmem:[%s2292_s1 + $0x1a4] ss:$8 sps:$4 sm:$0xff]  }
  0x41   :  { %1146 = vmatprep.subr.bf16.mxu0 %v1649_v7  ;;  %v1709_v7 = vld [vmem:[%s2292_s1 + $0x3a4] ss:$8 sps:$4 sm:$0xff]  }
  0x42   :  { %990 = vmatmul.mubr.bf16.vlgmr.msra.gmra.mrb[0].mxu1 %v1348_v8  ;;  %v1704_v8 = vld [vmem:[%s2292_s1 + $0x1a0] ss:$8 sps:$4 sm:$0xff]  }
  0x43   :  { %1116 = vmatmul.mubr.bf16.vlgmr.msra.gmra.mrb[0].mxu0 %v1352_v10  ;;  %1021 = vmatpush1.bf16.msra.mxu1 %v1644_v9  ;;  %v1707_v9 = vld [vmem:[%s2292_s1 + $0x3a0] ss:$8 sps:$4 sm:$0xff]   ;;  %v1712_v10 = vld [vmem:[%s2292_s1 + $0x1b4] ss:$8 sps:$4 sm:$0xff]  }
  0x44   :  { %1147 = vmatpush1.bf16.msra.mxu0 %v1647_v11  ;;  %1022 = vmatprep.subr.bf16.mxu1 %v1652_v12  ;;  %v1715_v11 = vld [vmem:[%s2292_s1 + $0x3b4] ss:$8 sps:$4 sm:$0xff]   ;;  %v1710_v12 = vld [vmem:[%s2292_s1 + $0x1b0] ss:$8 sps:$4 sm:$0xff]  }
  0x45   :  { %1148 = vmatprep.subr.bf16.mxu0 %v1655_v13  ;;  %999 = vmatprep.mubr.bf16.mxu1 %v1357_v29  ;;  %v1713_v13 = vld [vmem:[%s2292_s1 + $0x3b0] ss:$8 sps:$4 sm:$0xff]  }
  0x46   :  { %1125 = vmatprep.mubr.bf16.mxu0 %v1361_v31  ;;  %v1737_v29 = vld [vmem:[%s2292_s1 + $0x3f0] ss:$8 sps:$4 sm:$0xff]   ;;  %v30_v31 = vld [vmem:[%s2293_s0 + $0x68] sm:$0xff] }
  0x47   :  { %1023 = vmatpush1.bf16.msra.mxu1 %v1650_v14  ;;  %v1718_v14 = vld [vmem:[%s2292_s1 + $0x1c4] ss:$8 sps:$4 sm:$0xff]   ;;  %v1358_v42 = vcombine.low %v26_v30, %v30_v31 }
  0x48   :  { %1149 = vmatpush1.bf16.msra.mxu0 %v1653_v15  ;;  %1024 = vmatprep.subr.bf16.mxu1 %v1658_v16  ;;  %v1721_v15 = vld [vmem:[%s2292_s1 + $0x3c4] ss:$8 sps:$4 sm:$0xff]   ;;  %v1716_v16 = vld [vmem:[%s2292_s1 + $0x1c0] ss:$8 sps:$4 sm:$0xff]  }
  0x49   :  { %1150 = vmatprep.subr.bf16.mxu0 %v1661_v17  ;;  %v1719_v17 = vld [vmem:[%s2292_s1 + $0x3c0] ss:$8 sps:$4 sm:$0xff]  }
  0x4a   :  { %1000 = vmatmul.mubr.bf16.gmra.mrb[4].mxu1 %v1356_v32  ;;  %v28_v32 = vld [vmem:[%s2293_s0 + $0x58] sm:$0xff] }
  0x4b   :  { %1025 = vmatpush1.bf16.msra.mxu1 %v1656_v18  ;;  %1126 = vmatmul.mubr.bf16.gmra.mrb[4].mxu0 %v1360_v35  ;;  %v1724_v18 = vld [vmem:[%s2292_s1 + $0x1d4] ss:$8 sps:$4 sm:$0xff]   ;;  %v1354_v35 = vcombine.low %v2098_v57, %v2103_v58  ;;  %v1273_v58 = vld [vmem:[%s2295_s3 + $0x8] sm:$0xff] }
  0x4c   :  { %1151 = vmatpush1.bf16.msra.mxu0 %v1659_v19  ;;  %1026 = vmatprep.subr.bf16.mxu1 %v1664_v20  ;;  %v1727_v19 = vld [vmem:[%s2292_s1 + $0x3d4] ss:$8 sps:$4 sm:$0xff]   ;;  %v1722_v20 = vld [vmem:[%s2292_s1 + $0x1d0] ss:$8 sps:$4 sm:$0xff]  }
  0x4d   :  { %1152 = vmatprep.subr.bf16.mxu0 %v1667_v21  ;;  %1009 = vmatprep.mubr.bf16.mxu1 %v1365_v45  ;;  %v1725_v21 = vld [vmem:[%s2292_s1 + $0x3d0] ss:$8 sps:$4 sm:$0xff]   ;;  %v1371_v45 = vcombine.high %v36_v40, %v40_v41 }
  0x4e   :  { %1135 = vmatprep.mubr.bf16.mxu0 %v1369_v46 }
  0x4f   :  { %1027 = vmatpush1.bf16.msra.mxu1 %v1662_v22  ;;  %v1730_v22 = vld [vmem:[%s2292_s1 + $0x1e4] ss:$8 sps:$4 sm:$0xff]  }
  0x50   :  { %1153 = vmatpush1.bf16.msra.mxu0 %v1665_v23  ;;  %1028 = vmatprep.subr.bf16.mxu1 %v1670_v24  ;;  %v1733_v23 = vld [vmem:[%s2292_s1 + $0x3e4] ss:$8 sps:$4 sm:$0xff]   ;;  %v1728_v24 = vld [vmem:[%s2292_s1 + $0x1e0] ss:$8 sps:$4 sm:$0xff]  }
  0x51   :  { %1154 = vmatprep.subr.bf16.mxu0 %v1673_v25  ;;  %v1731_v25 = vld [vmem:[%s2292_s1 + $0x3e0] ss:$8 sps:$4 sm:$0xff]  }
  0x52   :  { %1010 = vmatmul.mubr.bf16.gmra.mrb[8].mxu1 %v1364_v48  ;;  %v1250_v48 = vlaneseq }
  0x53   :  { %1029 = vmatpush1.bf16.msra.mxu1 %v1668_v33  ;;  %1136 = vmatmul.mubr.bf16.gmra.mrb[8].mxu0 %v1368_v51  ;;  %v32_v33 = vld [vmem:[%s2293_s0 + $0x78] sm:$0xff]  ;;  %v1248_v51 = vld [vmem:[%s2294_s2] sm:$0x3] }
  0x54   :  { %1155 = vmatpush1.bf16.msra.mxu0 %v1671_v34  ;;  %1030 = vmatprep.subr.bf16.mxu1 %v1676_v36  ;;  %v1350_v34 = vcombine.low %v2086_v54, %v2091_v55  ;;  %v1359_v36 = vcombine.high %v26_v30, %v30_v31  ;;  %v1362_v43 = vcombine.low %v28_v32, %v32_v33 }
  0x55   :  { %1156 = vmatprep.subr.bf16.mxu0 %v1679_v37  ;;  %1052 = vmatprep.mubr.bf16.mxu1 %v1351_v56  ;;  %v1363_v37 = vcombine.high %v28_v32, %v32_v33 }
  0x56   :  { %1178 = vmatprep.mubr.bf16.mxu0 %v1355_v59 }
  0x57   :  { %1031 = vmatpush1.bf16.msra.mxu1 %v1674_v38  ;;  %v34_v38 = vld [vmem:[%s2293_s0 + $0x88] sm:$0xff] }
  0x58   :  { %1157 = vmatpush1.bf16.msra.mxu0 %v1677_v39  ;;  %1032 = vmatprep.subr.bf16.mxu1 %v1682_v44  ;;  %v38_v39 = vld [vmem:[%s2293_s0 + $0xa8] sm:$0xff] }
  0x59   :  { %1158 = vmatprep.subr.bf16.mxu0 %v1685_v47  ;;  %v1367_v44 = vcombine.high %v34_v38, %v38_v39  ;;  %v1366_v46 = vcombine.low %v34_v38, %v38_v39  ;;  %v1370_v47 = vcombine.low %v36_v40, %v40_v41 }
  0x5b   :  { %1033 = vmatpush1.bf16.msra.mxu1 %v1680_v49  ;;  %v1251_v49 = vshrl.u32 %v1250_v48, 7 }
  0x5c   :  { %1159 = vmatpush1.bf16.msra.mxu0 %v1683_v50  ;;  %1034 = vmatprep.subr.bf16.mxu1 %v1688_v52 }
  0x5d   :  { %1160 = vmatprep.subr.bf16.mxu0 %v1691_v53  ;;  %v1252_v50 = vsub.s32 0, %v1251_v49  ;;  %v1256_v52 = vsub.s32 1, %v1251_v49  ;;  %v1272_v53 = vld [vmem:[%s2295_s3] sm:$0xff]  ;;  %v1277_v49 = vld [vmem:[%s2295_s3 + $0x28] sm:$0xff] }
  0x5f   :  { %1035 = vmatpush1.bf16.msra.mxu1 %v1686_v60  ;;  %v2243_v54 = vrot.slane %v1248_v51, %v1252_v50  ;;  %v2245_v57 = vrot.slane %v1248_v51, %v1256_v52  ;;  %v1278_v60 = vunpack.c.l.bf16 %v1272_v53 }
  0x60   :  { %1161 = vmatpush1.bf16.msra.mxu0 %v1689_v61  ;;  %1036 = vmatprep.subr.bf16.mxu1 %v1694_v62 }
  0x61   :  { %1162 = vmatprep.subr.bf16.mxu0 %v1697_v63 }
  0x63   :  { %1037 = vmatpush1.bf16.msra.mxu1 %v1692_v0  ;;  %v1279_v0 = vunpack.c.h.bf16 %v1272_v53 }
  0x64   :  { %1163 = vmatpush1.bf16.msra.mxu0 %v1695_v1  ;;  %1038 = vmatprep.subr.bf16.mxu1 %v1700_v2 }
  0x65   :  { %1164 = vmatprep.subr.bf16.mxu0 %v1703_v3 }
  0x67   :  { %1039 = vmatpush1.bf16.msra.mxu1 %v1698_v4 }
  0x68   :  { %1165 = vmatpush1.bf16.msra.mxu0 %v1701_v5  ;;  %1040 = vmatprep.subr.bf16.mxu1 %v1706_v6  ;;  %v1280_v5 = vunpack.c.l.bf16 %v1273_v58 }
  0x69   :  { %1166 = vmatprep.subr.bf16.mxu0 %v1709_v7 }
  0x6b   :  { %1041 = vmatpush1.bf16.msra.mxu1 %v1704_v8 }
  0x6c   :  { %1167 = vmatpush1.bf16.msra.mxu0 %v1707_v9  ;;  %1042 = vmatprep.subr.bf16.mxu1 %v1712_v10  ;;  %v1281_v10 = vunpack.c.h.bf16 %v1273_v58 }
  0x6d   :  { %1168 = vmatprep.subr.bf16.mxu0 %v1715_v11 }
  0x6f   :  { %1043 = vmatpush1.bf16.msra.mxu1 %v1710_v12 }
  0x70   :  { %1169 = vmatpush1.bf16.msra.mxu0 %v1713_v13  ;;  %1044 = vmatprep.subr.bf16.mxu1 %v1718_v14 }
  0x71   :  { %1170 = vmatprep.subr.bf16.mxu0 %v1721_v15  ;;  %v1274_v15 = vld [vmem:[%s2295_s3 + $0x10] sm:$0xff] }
  0x73   :  { %1045 = vmatpush1.bf16.msra.mxu1 %v1716_v16 }
  0x74   :  { %1171 = vmatpush1.bf16.msra.mxu0 %v1719_v17  ;;  %1046 = vmatprep.subr.bf16.mxu1 %v1724_v18 }
  0x75   :  { %1172 = vmatprep.subr.bf16.mxu0 %v1727_v19 }
  0x77   :  { %1047 = vmatpush1.bf16.msra.mxu1 %v1722_v20 }
  0x78   :  { %1173 = vmatpush1.bf16.msra.mxu0 %v1725_v21  ;;  %1048 = vmatprep.subr.bf16.mxu1 %v1730_v22  ;;  %v1275_v21 = vld [vmem:[%s2295_s3 + $0x18] sm:$0xff] }
  0x79   :  { %1174 = vmatprep.subr.bf16.mxu0 %v1733_v23  ;;  %v1282_v23 = vunpack.c.l.bf16 %v1274_v15  ;;  %v1284_v33 = vunpack.c.l.bf16 %v1275_v21  ;;  %v1285_v38 = vunpack.c.h.bf16 %v1275_v21 }
  0x7b   :  { %1049 = vmatpush1.bf16.msra.mxu1 %v1728_v24 }
  0x7c   :  { %1175 = vmatpush1.bf16.msra.mxu0 %v1731_v25  ;;  %1050 = vmatprep.subr.bf16.mxu1 %v1736_v26 }
  0x7d   :  { %1176 = vmatprep.subr.bf16.mxu0 %v1739_v27 }
  0x7f   :  { %1051 = vmatpush1.bf16.msra.mxu1 %v1734_v28  ;;  %v1283_v28 = vunpack.c.h.bf16 %v1274_v15 }
  0x80   :  { %1177 = vmatpush1.bf16.msra.mxu0 %v1737_v29 }
  0x82   :  { %1053 = vmatmul.mubr.bf16.vlgmr.msra.gmra.mrb[0].mxu1 %v1350_v34 }
  0x83   :  { %1179 = vmatmul.mubr.bf16.vlgmr.msra.gmra.mrb[0].mxu0 %v1354_v35  ;;  %1062 = vmatprep.mubr.bf16.mxu1 %v1359_v36 }
  0x84   :  { %1188 = vmatprep.mubr.bf16.mxu0 %v1363_v37 }
  0x8a   :  { %1063 = vmatmul.mubr.bf16.gmra.mrb[4].mxu1 %v1358_v42 }
  0x8b   :  { %1189 = vmatmul.mubr.bf16.gmra.mrb[4].mxu0 %v1362_v43  ;;  %1072 = vmatprep.mubr.bf16.mxu1 %v1367_v44  ;;  %v1276_v43 = vld [vmem:[%s2295_s3 + $0x20] sm:$0xff] }
  0x8c   :  { %1198 = vmatprep.mubr.bf16.mxu0 %v1371_v45  ;;  %v1286_v51 = vunpack.c.l.bf16 %v1276_v43  ;;  %v1287_v58 = vunpack.c.h.bf16 %v1276_v43 }
  0x92   :  { %1073 = vmatmul.mubr.bf16.gmra.mrb[8].mxu1 %v1366_v46 }
  0x93   :  { %1199 = vmatmul.mubr.bf16.gmra.mrb[8].mxu0 %v1370_v47 }
 0x155   :  { %v1054_v55 = vpop.f32.mrb[0].mxu1 }
 0x156   :  { %v1180_v56 = vpop.f32.mrb[0].mxu0  ;;  %v1056_v61 = vpop.f32.mrb[1].mxu1 }
 0x157   :  { %v1512_v59 = vadd.f32 %v1180_v56, %v1054_v55  ;;  %v1182_v62 = vpop.f32.mrb[1].mxu0  ;;  %v1058_v1 = vpop.f32.mrb[2].mxu1 }
 0x158   :  { %v1513_v63 = vadd.f32 %v1182_v62, %v1056_v61  ;;  %v1184_v2 = vpop.f32.mrb[2].mxu0  ;;  %v1060_v6 = vpop.f32.mrb[3].mxu1 }
 0x159   :  { %v1260_v3 = vadd.f32 %v1512_v59, %v2243_v54  ;;  %v1514_v4 = vadd.f32 %v1184_v2, %v1058_v1  ;;  %v1186_v7 = vpop.f32.mrb[3].mxu0 }
 0x15a   :  { %v1261_v8 = vadd.f32 %v1513_v63, %v2245_v57  ;;  %v1515_v9 = vadd.f32 %v1186_v7, %v1060_v6  ;;  %v1288_v63 = vunpack.c.l.bf16 %v1277_v49 }
 0x15b   :  { %v1290_v11 = vadd.f32 %v1278_v60, %v1260_v3  ;;  %v1262_v12 = vadd.f32 %v1514_v4, %v2243_v54  ;;  %v1289_v4 = vunpack.c.h.bf16 %v1277_v49 }
 0x15c   :  { %v1291_v13 = vadd.f32 %v1279_v0, %v1261_v8  ;;  %v1263_v14 = vadd.f32 %v1515_v9, %v2245_v57 }
 0x15d   :  { %v1292_v16 = vadd.f32 %v1280_v5, %v1262_v12  ;;  %v1064_v19 = vpop.f32.mrb[4].mxu1 }
 0x15e   :  { %v1506_v17 = vpack.c.bf16 %v1291_v13, %v1290_v11  ;;  %v1293_v18 = vadd.f32 %v1281_v10, %v1263_v14  ;;  %v1190_v20 = vpop.f32.mrb[4].mxu0  ;;  %v1066_v24 = vpop.f32.mrb[5].mxu1 }
 0x15f   :  { %v1516_v22 = vadd.f32 %v1190_v20, %v1064_v19  ;;  %v1192_v25 = vpop.f32.mrb[5].mxu0  ;;  %v1068_v29 = vpop.f32.mrb[6].mxu1 }
 0x160   :  { %1338 = vst [vmem:[%s2296_s4] sm:$0xff] %v1506_v17  ;;  %v1507_v26 = vpack.c.bf16 %v1293_v18, %v1292_v16  ;;  %v1517_v27 = vadd.f32 %v1192_v25, %v1066_v24  ;;  %v1194_v30 = vpop.f32.mrb[6].mxu0  ;;  %v1070_v34 = vpop.f32.mrb[7].mxu1 }
 0x161   :  { %v1264_v31 = vadd.f32 %v1516_v22, %v2243_v54  ;;  %v1518_v32 = vadd.f32 %v1194_v30, %v1068_v29  ;;  %v1196_v35 = vpop.f32.mrb[7].mxu0 }
 0x162   :  { %1339 = vst [vmem:[%s2296_s4 + $0x8] sm:$0xff] %v1507_v26  ;;  %v1265_v36 = vadd.f32 %v1517_v27, %v2245_v57  ;;  %v1519_v37 = vadd.f32 %v1196_v35, %v1070_v34 }
 0x163   :  { %v1294_v39 = vadd.f32 %v1282_v23, %v1264_v31  ;;  %v1266_v40 = vadd.f32 %v1518_v32, %v2243_v54 }
 0x164   :  { %v1295_v41 = vadd.f32 %v1283_v28, %v1265_v36  ;;  %v1267_v42 = vadd.f32 %v1519_v37, %v2245_v57 }
 0x165   :  { %v1296_v44 = vadd.f32 %v1284_v33, %v1266_v40  ;;  %v1074_v47 = vpop.f32.mrb[8].mxu1 }
 0x166   :  { %v1508_v45 = vpack.c.bf16 %v1295_v41, %v1294_v39  ;;  %v1297_v46 = vadd.f32 %v1285_v38, %v1267_v42  ;;  %v1200_v48 = vpop.f32.mrb[8].mxu0  ;;  %v1076_v52 = vpop.f32.mrb[9].mxu1 }
 0x167   :  { %v1520_v50 = vadd.f32 %v1200_v48, %v1074_v47  ;;  %v1202_v53 = vpop.f32.mrb[9].mxu0  ;;  %v1078_v59 = vpop.f32.mrb[10].mxu1 }
 0x168   :  { %1340 = vst [vmem:[%s2296_s4 + $0x10] sm:$0xff] %v1508_v45  ;;  %v1509_v55 = vpack.c.bf16 %v1297_v46, %v1296_v44  ;;  %v1521_v56 = vadd.f32 %v1202_v53, %v1076_v52  ;;  %v1204_v60 = vpop.f32.mrb[10].mxu0  ;;  %v1080_v0 = vpop.f32.mrb[11].mxu1 }
 0x169   :  { %v1268_v61 = vadd.f32 %v1520_v50, %v2243_v54  ;;  %v1522_v62 = vadd.f32 %v1204_v60, %v1078_v59  ;;  %v1206_v1 = vpop.f32.mrb[11].mxu0 }
 0x16a   :  { %1341 = vst [vmem:[%s2296_s4 + $0x18] sm:$0xff] %v1509_v55  ;;  %v1269_v2 = vadd.f32 %v1521_v56, %v2245_v57  ;;  %v1523_v3 = vadd.f32 %v1206_v1, %v1080_v0 }
 0x16b   :  { %v1298_v5 = vadd.f32 %v1286_v51, %v1268_v61  ;;  %v1270_v6 = vadd.f32 %v1522_v62, %v2243_v54 }
 0x16c   :  { %v1299_v7 = vadd.f32 %v1287_v58, %v1269_v2  ;;  %v1271_v8 = vadd.f32 %v1523_v3, %v2245_v57 }
 0x16d   :  { %v1300_v9 = vadd.f32 %v1288_v63, %v1270_v6 }
 0x16e   :  { %v1510_v10 = vpack.c.bf16 %v1299_v7, %v1298_v5  ;;  %v1301_v11 = vadd.f32 %v1289_v4, %v1271_v8 }
 0x170   :  { %1342 = vst [vmem:[%s2296_s4 + $0x20] sm:$0xff] %v1510_v10  ;;  %v1511_v12 = vpack.c.bf16 %v1301_v11, %v1300_v9 }
 0x172   :  { %1343 = vst [vmem:[%s2296_s4 + $0x28] sm:$0xff] %v1511_v12 }

</bundles_post_ra>
